<compile_context>
chip_gen: v5e
topology: v5e:2x2
jax: 0.10.0
libtpu: 0.0.40
codegen_flags: <defaults>
</compile_context>

<pallas_src>
import math
import functools

import numpy as np
import jax
import jax.numpy as jnp
from jax import lax
from jax.experimental import pallas as pl
from jax.experimental.pallas import tpu as pltpu

D_MODEL = 128
NHEAD = 8
HEAD_DIM = D_MODEL // NHEAD
DIM_FF = 512
NUM_LAYERS = 2
OUTPUT_LENGTH = 90
OUT_PAD = 128            # lane-dense decoder output, sliced to 90 outside the kernel
LN_EPS = 1e-5
ATTN_SCALE = 1.0 / math.sqrt(HEAD_DIM)
DENOM_FLOOR = 1e-20      # guards 0 * inf -> NaN for fully-masked / underflowed segments


# ----------------------------- fused kernel -----------------------------

def _layer_norm(z, g, b):
    mean = jnp.mean(z, axis=-1, keepdims=True)
    zc = z - mean
    var = jnp.mean(zc * zc, axis=-1, keepdims=True)
    return zc * lax.rsqrt(var + LN_EPS) * g + b


def _fused_forward_kernel(src_ref, pe_ref, emb_w_ref, emb_b_ref,
                          in_w_ref, in_b_ref, out_w_ref, out_b_ref,
                          ff1_w_ref, ff1_b_ref, ff2_w_ref, ff2_b_ref,
                          ln1_g_ref, ln1_b_ref, ln2_g_ref, ln2_b_ref,
                          dec_w_ref, dec_b_ref,
                          rep_ref, hmask_ref, seg_ref, amask_ref, sel_ref,
                          o_ref, *, bt, seq):
    f32 = jnp.float32
    bf16 = jnp.bfloat16
    S = seq

    # ---- embedding Linear (bf16 MXU) with positional-encoding epilogue ----
    x = jnp.dot(src_ref[...], emb_w_ref[...], preferred_element_type=f32)
    pe_rows = jnp.concatenate([pe_ref[...]] * bt, axis=0)            # (BT*S, D)
    x = x + emb_b_ref[...] + pe_rows                                  # f32 residual stream

    rep = rep_ref[...]            # (BT*H*S, BT*S)  bf16  replication matrix
    hmask = hmask_ref[...]        # (BT*H*S, D)     f32   per-head feature mask
    seg = seg_ref[...]            # (BT*H*S, BT*H*S) bf16 block-diag ones (segment sums)
    amask = amask_ref[...]        # (BT*S, BT*H*S)  f32   0 / -1e9 cross-batch mask

    for l in range(NUM_LAYERS):
        # --- multi-head self attention (post-norm), weights read at point of use ---
        qkv = jnp.dot(x.astype(bf16), in_w_ref[l],
                      preferred_element_type=f32) + in_b_ref[l]       # (BT*S, 3D)
        q = qkv[:, :D_MODEL]
        kv = qkv[:, D_MODEL:]                                         # (BT*S, 2D)

        # block-head replicas for ALL batches in the tile, masked to own head slice
        kv_rep = jnp.dot(rep, kv.astype(bf16), preferred_element_type=f32)  # (BT*H*S, 2D)
        k_blk = (kv_rep[:, :D_MODEL] * hmask).astype(bf16)
        v_blk = (kv_rep[:, D_MODEL:] * hmask).astype(bf16)

        # lane-dense scores: scores[b*S+s, b'*H*S+h*S+t] = q_h(b,s).k_h(b',t)
        scores = lax.dot_general(q.astype(bf16), k_blk, (((1,), (1,)), ((), ())),
                                 preferred_element_type=f32)          # (BT*S, BT*H*S)
        scores = scores * ATTN_SCALE + amask                          # kill cross-batch terms
        m = jnp.max(scores, axis=-1, keepdims=True)
        p = jnp.exp(scores - m)
        # per-(batch,head) softmax denominators via block-diagonal ones matmul
        denom = jnp.dot(p.astype(bf16), seg, preferred_element_type=f32)
        pn = p * pl.reciprocal(jnp.maximum(denom, DENOM_FLOOR), approx=True)
        # PV: heads land already concatenated on the 128-lane feature axis
        attn = jnp.dot(pn.astype(bf16), v_blk, preferred_element_type=f32)   # (BT*S, D)
        attn = jnp.dot(attn.astype(bf16), out_w_ref[l],
                       preferred_element_type=f32) + out_b_ref[l]
        x = _layer_norm(x + attn, ln1_g_ref[l], ln1_b_ref[l])

        # --- feed-forward (fused ReLU) ---
        h = jnp.maximum(jnp.dot(x.astype(bf16), ff1_w_ref[l],
                                preferred_element_type=f32) + ff1_b_ref[l], 0.0)
        ff = jnp.dot(h.astype(bf16), ff2_w_ref[l],
                     preferred_element_type=f32) + ff2_b_ref[l]
        x = _layer_norm(x + ff, ln2_g_ref[l], ln2_b_ref[l])

    # ---- last-token gather (selection matmul) + lane-dense padded decoder ----
    last = jnp.dot(sel_ref[...], x.astype(bf16), preferred_element_type=f32)  # (BT, D)
    out = jnp.dot(last.astype(bf16), dec_w_ref[...],
                  preferred_element_type=f32) + dec_b_ref[...]                # (BT, 128)
    o_ref[0] = out.astype(o_ref.dtype)


# ----------------------------- mask precompute (trace-time constants) -----------------------------

def _build_masks(bt, seq):
    HS = NHEAD * seq
    BHS = bt * HS
    BS = bt * seq
    r = np.arange(BHS)
    b_r = r // HS
    t_r = r % seq
    h_r = (r % HS) // seq
    rep = np.zeros((BHS, BS), np.float32)
    rep[r, b_r * seq + t_r] = 1.0                                   # replicate K/V per head
    d = np.arange(D_MODEL)
    hmask = (h_r[:, None] == (d[None, :] // HEAD_DIM)).astype(np.float32)
    seg = (r[:, None] // seq == r[None, :] // seq).astype(np.float32)   # (batch,head) segments
    rows = np.arange(BS)
    amask = np.where(rows[:, None] // seq == r[None, :] // HS,
                     0.0, -1e9).astype(np.float32)                  # cross-batch additive mask
    sel = np.zeros((bt, BS), np.float32)
    sel[np.arange(bt), np.arange(bt) * seq + seq - 1] = 1.0         # last-token selector
    return rep, hmask, seg, amask, sel


# ----------------------------- model glue -----------------------------

def make_pe(max_len, d_model):
    position = jnp.arange(max_len, dtype=jnp.float32)[:, None]
    div_term = jnp.exp(
        jnp.arange(0, d_model, 2, dtype=jnp.float32) * (-math.log(10000.0) / d_model)
    )
    pe = jnp.zeros((max_len, d_model), dtype=jnp.float32)
    pe = pe.at[:, 0::2].set(jnp.sin(position * div_term))
    pe = pe.at[:, 1::2].set(jnp.cos(position * div_term))
    return pe


def init_params(key, input_size):
    def nrm(k, shape, scale=0.05):
        return scale * jax.random.normal(k, shape, dtype=jnp.float32)

    keys = iter(jax.random.split(key, 32))
    L = NUM_LAYERS
    dec_w = nrm(next(keys), (D_MODEL, OUTPUT_LENGTH))
    dec_b = nrm(next(keys), (OUTPUT_LENGTH,))
    params = {
        "emb_w": nrm(next(keys), (input_size, D_MODEL)),
        "emb_b": nrm(next(keys), (1, D_MODEL)),
        "pe": make_pe(64, D_MODEL),
        # per-layer weights stacked along a leading layer axis
        "in_w": nrm(next(keys), (L, D_MODEL, 3 * D_MODEL)),
        "in_b": nrm(next(keys), (L, 1, 3 * D_MODEL)),
        "out_w": nrm(next(keys), (L, D_MODEL, D_MODEL)),
        "out_b": nrm(next(keys), (L, 1, D_MODEL)),
        "ff1_w": nrm(next(keys), (L, D_MODEL, DIM_FF)),
        "ff1_b": nrm(next(keys), (L, 1, DIM_FF)),
        "ff2_w": nrm(next(keys), (L, DIM_FF, D_MODEL)),
        "ff2_b": nrm(next(keys), (L, 1, D_MODEL)),
        "ln1_g": jnp.ones((L, 1, D_MODEL), jnp.float32),
        "ln1_b": jnp.zeros((L, 1, D_MODEL), jnp.float32),
        "ln2_g": jnp.ones((L, 1, D_MODEL), jnp.float32),
        "ln2_b": jnp.zeros((L, 1, D_MODEL), jnp.float32),
        # decoder padded to 128 output lanes (columns 90..127 are zero)
        "dec_w_pad": jnp.zeros((D_MODEL, OUT_PAD), jnp.float32).at[:, :OUTPUT_LENGTH].set(dec_w),
        "dec_b_pad": jnp.zeros((1, OUT_PAD), jnp.float32).at[0, :OUTPUT_LENGTH].set(dec_b),
    }
    return params


@jax.jit
def transformer_forward(src, params):
    # src: (B, S, F)
    B, S, F = src.shape
    bf16 = jnp.bfloat16

    # batch-tile size: keep BT*H*S <= 512 so attention stays lane-dense but VMEM bounded;
    # tiles beyond that go to the (parallel) grid instead.
    bt = B
    while bt > 1 and (bt * NHEAD * S > 512 or B % bt != 0):
        bt -= 1
    num_tiles = B // bt
    L = NUM_LAYERS

    rep, hmask, seg, amask, sel = _build_masks(bt, S)

    src2d = src.reshape(B * S, F).astype(bf16)     # row = b*S + s
    pe = params["pe"][:S]                          # (S, D), tiled in-kernel

    kernel = functools.partial(_fused_forward_kernel, bt=bt, seq=S)

    const = lambda *shape: (lambda i: tuple(0 for _ in shape))
    in_specs = [
        pl.BlockSpec((bt * S, F), lambda i: (i, 0)),                       # src
        pl.BlockSpec((S, D_MODEL), lambda i: (0, 0)),                      # pe
        pl.BlockSpec((F, D_MODEL), lambda i: (0, 0)),                      # emb_w
        pl.BlockSpec((1, D_MODEL), lambda i: (0, 0)),                      # emb_b
        pl.BlockSpec((L, D_MODEL, 3 * D_MODEL), lambda i: (0, 0, 0)),      # in_w
        pl.BlockSpec((L, 1, 3 * D_MODEL), lambda i: (0, 0, 0)),            # in_b
        pl.BlockSpec((L, D_MODEL, D_MODEL), lambda i: (0, 0, 0)),          # out_w
        pl.BlockSpec((L, 1, D_MODEL), lambda i: (0, 0, 0)),                # out_b
        pl.BlockSpec((L, D_MODEL, DIM_FF), lambda i: (0, 0, 0)),           # ff1_w
        pl.BlockSpec((L, 1, DIM_FF), lambda i: (0, 0, 0)),                 # ff1_b
        pl.BlockSpec((L, DIM_FF, D_MODEL), lambda i: (0, 0, 0)),           # ff2_w
        pl.BlockSpec((L, 1, D_MODEL), lambda i: (0, 0, 0)),                # ff2_b
        pl.BlockSpec((L, 1, D_MODEL), lambda i: (0, 0, 0)),                # ln1_g
        pl.BlockSpec((L, 1, D_MODEL), lambda i: (0, 0, 0)),                # ln1_b
        pl.BlockSpec((L, 1, D_MODEL), lambda i: (0, 0, 0)),                # ln2_g
        pl.BlockSpec((L, 1, D_MODEL), lambda i: (0, 0, 0)),                # ln2_b
        pl.BlockSpec((D_MODEL, OUT_PAD), lambda i: (0, 0)),                # dec_w
        pl.BlockSpec((1, OUT_PAD), lambda i: (0, 0)),                      # dec_b
        pl.BlockSpec((bt * NHEAD * S, bt * S), lambda i: (0, 0)),          # rep
        pl.BlockSpec((bt * NHEAD * S, D_MODEL), lambda i: (0, 0)),         # head mask
        pl.BlockSpec((bt * NHEAD * S, bt * NHEAD * S), lambda i: (0, 0)),  # seg sum
        pl.BlockSpec((bt * S, bt * NHEAD * S), lambda i: (0, 0)),          # cross-batch mask
        pl.BlockSpec((bt, bt * S), lambda i: (0, 0)),                      # last-token select
    ]
    out_spec = pl.BlockSpec((1, bt, OUT_PAD), lambda i: (i, 0, 0))

    out_pad = pl.pallas_call(
        kernel,
        out_shape=jax.ShapeDtypeStruct((num_tiles, bt, OUT_PAD), jnp.float32),
        grid=(num_tiles,),
        in_specs=in_specs,
        out_specs=out_spec,
        compiler_params=pltpu.CompilerParams(dimension_semantics=("parallel",)),
    )(src2d, pe,
      params["emb_w"].astype(bf16), params["emb_b"],
      params["in_w"].astype(bf16), params["in_b"],
      params["out_w"].astype(bf16), params["out_b"],
      params["ff1_w"].astype(bf16), params["ff1_b"],
      params["ff2_w"].astype(bf16), params["ff2_b"],
      params["ln1_g"], params["ln1_b"],
      params["ln2_g"], params["ln2_b"],
      params["dec_w_pad"].astype(bf16), params["dec_b_pad"],
      jnp.asarray(rep, bf16), jnp.asarray(hmask, jnp.float32),
      jnp.asarray(seg, bf16), jnp.asarray(amask, jnp.float32),
      jnp.asarray(sel, bf16))

    return out_pad.reshape(B, OUT_PAD)[:, :OUTPUT_LENGTH]


# ----------------------------- pure-JAX reference (for validation) -----------------------------

def _ln_ref(z, g, b):
    mean = jnp.mean(z, axis=-1, keepdims=True)
    var = jnp.mean((z - mean) ** 2, axis=-1, keepdims=True)
    return (z - mean) / jnp.sqrt(var + LN_EPS) * g + b


def reference_forward(src, params):
    B, S, F = src.shape
    x = src.reshape(B * S, F) @ params["emb_w"] + params["emb_b"]
    x = x.reshape(B, S, D_MODEL) + params["pe"][:S][None, :, :]
    for l in range(NUM_LAYERS):
        qkv = x @ params["in_w"][l] + params["in_b"][l]
        q, k, v = jnp.split(qkv, 3, axis=-1)
        def sh(t):
            return t.reshape(B, S, NHEAD, HEAD_DIM).transpose(0, 2, 1, 3)
        qh, kh, vh = sh(q), sh(k), sh(v)
        scores = jnp.einsum("bhqd,bhkd->bhqk", qh, kh) / math.sqrt(HEAD_DIM)
        p = jax.nn.softmax(scores, axis=-1)
        o = jnp.einsum("bhqk,bhkd->bhqd", p, vh).transpose(0, 2, 1, 3).reshape(B, S, D_MODEL)
        o = o @ params["out_w"][l] + params["out_b"][l]
        x = _ln_ref(x + o, params["ln1_g"][l], params["ln1_b"][l])
        h = jax.nn.relu(x @ params["ff1_w"][l] + params["ff1_b"][l])
        ff = h @ params["ff2_w"][l] + params["ff2_b"][l]
        x = _ln_ref(x + ff, params["ln2_g"][l], params["ln2_b"][l])
    last = x[:, S - 1, :]
    return last @ params["dec_w_pad"][:, :OUTPUT_LENGTH] + params["dec_b_pad"][0, :OUTPUT_LENGTH]


if __name__ == "__main__":
    B, S, F = 2, 8, 4  # batch, seq_len, input_size
    key = jax.random.PRNGKey(0)
    k_x, k_p = jax.random.split(key)
    src = jax.random.normal(k_x, (B, S, F), dtype=jnp.float32)
    params = init_params(k_p, F)

    out = transformer_forward(src, params)
    out = jax.block_until_ready(out)
    assert out.shape == (B, OUTPUT_LENGTH), out.shape
    assert bool(jnp.all(jnp.isfinite(out)))

    ref = reference_forward(src, params)
    # bf16 MXU inputs + approx reciprocal: allow a looser (but still bug-catching) tolerance.
    max_err = float(jnp.max(jnp.abs(out - ref)))
    assert max_err < 5e-2, f"kernel vs reference max abs error = {max_err}"

    print("KERNEL_OK")
</pallas_src>

<mosaic_0001>
module attributes {stable_mosaic.version = 11 : i64} {
  func.func @_fused_forward_kernel(%arg0: i32, %arg1: memref<16x4xbf16, #tpu.memory_space<vmem>>, %arg2: memref<8x128xf32, #tpu.memory_space<vmem>>, %arg3: memref<4x128xbf16, #tpu.memory_space<vmem>>, %arg4: memref<1x128xf32, #tpu.memory_space<vmem>>, %arg5: memref<2x128x384xbf16, #tpu.memory_space<vmem>>, %arg6: memref<2x1x384xf32, #tpu.memory_space<vmem>>, %arg7: memref<2x128x128xbf16, #tpu.memory_space<vmem>>, %arg8: memref<2x1x128xf32, #tpu.memory_space<vmem>>, %arg9: memref<2x128x512xbf16, #tpu.memory_space<vmem>>, %arg10: memref<2x1x512xf32, #tpu.memory_space<vmem>>, %arg11: memref<2x512x128xbf16, #tpu.memory_space<vmem>>, %arg12: memref<2x1x128xf32, #tpu.memory_space<vmem>>, %arg13: memref<2x1x128xf32, #tpu.memory_space<vmem>>, %arg14: memref<2x1x128xf32, #tpu.memory_space<vmem>>, %arg15: memref<2x1x128xf32, #tpu.memory_space<vmem>>, %arg16: memref<2x1x128xf32, #tpu.memory_space<vmem>>, %arg17: memref<128x128xbf16, #tpu.memory_space<vmem>>, %arg18: memref<1x128xf32, #tpu.memory_space<vmem>>, %arg19: memref<128x16xbf16, #tpu.memory_space<vmem>>, %arg20: memref<128x128xf32, #tpu.memory_space<vmem>>, %arg21: memref<128x128xbf16, #tpu.memory_space<vmem>>, %arg22: memref<16x128xf32, #tpu.memory_space<vmem>>, %arg23: memref<2x16xbf16, #tpu.memory_space<vmem>>, %arg24: memref<1x2x128xf32, #tpu.memory_space<vmem>>) attributes {dimension_semantics = [#tpu.dimension_semantics<parallel>], iteration_bounds = array<i64: 1>, scalar_prefetch = 0 : i64, scratch_operands = 0 : i64, tpu.core_type = #tpu.core_type<tc>, window_params = [{transform_indices = @transform_0, window_bounds = array<i64: 16, 4>}, {pipeline_mode = #tpu.pipeline_mode<synchronous>, transform_indices = @transform_1, window_bounds = array<i64: 8, 128>}, {pipeline_mode = #tpu.pipeline_mode<synchronous>, transform_indices = @transform_2, window_bounds = array<i64: 4, 128>}, {pipeline_mode = #tpu.pipeline_mode<synchronous>, transform_indices = @transform_3, window_bounds = array<i64: 1, 128>}, {pipeline_mode = #tpu.pipeline_mode<synchronous>, transform_indices = @transform_4, window_bounds = array<i64: 2, 128, 384>}, {pipeline_mode = #tpu.pipeline_mode<synchronous>, transform_indices = @transform_5, window_bounds = array<i64: 2, 1, 384>}, {pipeline_mode = #tpu.pipeline_mode<synchronous>, transform_indices = @transform_6, window_bounds = array<i64: 2, 128, 128>}, {pipeline_mode = #tpu.pipeline_mode<synchronous>, transform_indices = @transform_7, window_bounds = array<i64: 2, 1, 128>}, {pipeline_mode = #tpu.pipeline_mode<synchronous>, transform_indices = @transform_8, window_bounds = array<i64: 2, 128, 512>}, {pipeline_mode = #tpu.pipeline_mode<synchronous>, transform_indices = @transform_9, window_bounds = array<i64: 2, 1, 512>}, {pipeline_mode = #tpu.pipeline_mode<synchronous>, transform_indices = @transform_10, window_bounds = array<i64: 2, 512, 128>}, {pipeline_mode = #tpu.pipeline_mode<synchronous>, transform_indices = @transform_11, window_bounds = array<i64: 2, 1, 128>}, {pipeline_mode = #tpu.pipeline_mode<synchronous>, transform_indices = @transform_12, window_bounds = array<i64: 2, 1, 128>}, {pipeline_mode = #tpu.pipeline_mode<synchronous>, transform_indices = @transform_13, window_bounds = array<i64: 2, 1, 128>}, {pipeline_mode = #tpu.pipeline_mode<synchronous>, transform_indices = @transform_14, window_bounds = array<i64: 2, 1, 128>}, {pipeline_mode = #tpu.pipeline_mode<synchronous>, transform_indices = @transform_15, window_bounds = array<i64: 2, 1, 128>}, {pipeline_mode = #tpu.pipeline_mode<synchronous>, transform_indices = @transform_16, window_bounds = array<i64: 128, 128>}, {pipeline_mode = #tpu.pipeline_mode<synchronous>, transform_indices = @transform_17, window_bounds = array<i64: 1, 128>}, {pipeline_mode = #tpu.pipeline_mode<synchronous>, transform_indices = @transform_18, window_bounds = array<i64: 128, 16>}, {pipeline_mode = #tpu.pipeline_mode<synchronous>, transform_indices = @transform_19, window_bounds = array<i64: 128, 128>}, {pipeline_mode = #tpu.pipeline_mode<synchronous>, transform_indices = @transform_20, window_bounds = array<i64: 128, 128>}, {pipeline_mode = #tpu.pipeline_mode<synchronous>, transform_indices = @transform_21, window_bounds = array<i64: 16, 128>}, {pipeline_mode = #tpu.pipeline_mode<synchronous>, transform_indices = @transform_22, window_bounds = array<i64: 2, 16>}, {transform_indices = @transform_23, window_bounds = array<i64: 1, 2, 128>}]} {
    %c0 = arith.constant 0 : index
    %c0_0 = arith.constant 0 : index
    %0 = vector.load %arg1[%c0, %c0_0] : memref<16x4xbf16, #tpu.memory_space<vmem>>, vector<16x4xbf16>
    %c0_1 = arith.constant 0 : index
    %c0_2 = arith.constant 0 : index
    %1 = vector.load %arg3[%c0_1, %c0_2] : memref<4x128xbf16, #tpu.memory_space<vmem>>, vector<4x128xbf16>
    %cst = arith.constant dense<0.000000e+00> : vector<16x128xf32>
    %2 = tpu.matmul %0, %1, %cst {dimension_numbers = #tpu.dot_dimension_numbers<[1], [0], [0], [1], [0, 0, 1, 1], [], []>} : vector<16x4xbf16>, vector<4x128xbf16>, vector<16x128xf32> -> vector<16x128xf32>
    %c0_3 = arith.constant 0 : index
    %c0_4 = arith.constant 0 : index
    %3 = vector.load %arg2[%c0_3, %c0_4] : memref<8x128xf32, #tpu.memory_space<vmem>>, vector<8x128xf32>
    %4 = tpu.concatenate %3, %3 in 0 : vector<8x128xf32>, vector<8x128xf32> -> vector<16x128xf32>
    %c0_5 = arith.constant 0 : index
    %c0_6 = arith.constant 0 : index
    %5 = vector.load %arg4[%c0_5, %c0_6] : memref<1x128xf32, #tpu.memory_space<vmem>>, vector<1x128xf32>
    %6 = vector.broadcast %5 : vector<1x128xf32> to vector<16x128xf32>
    %7 = arith.addf %2, %6 : vector<16x128xf32>
    %8 = arith.addf %7, %4 : vector<16x128xf32>
    %c0_7 = arith.constant 0 : index
    %c0_8 = arith.constant 0 : index
    %9 = vector.load %arg19[%c0_7, %c0_8] : memref<128x16xbf16, #tpu.memory_space<vmem>>, vector<128x16xbf16>
    %c0_9 = arith.constant 0 : index
    %c0_10 = arith.constant 0 : index
    %10 = vector.load %arg20[%c0_9, %c0_10] : memref<128x128xf32, #tpu.memory_space<vmem>>, vector<128x128xf32>
    %c0_11 = arith.constant 0 : index
    %c0_12 = arith.constant 0 : index
    %11 = vector.load %arg21[%c0_11, %c0_12] : memref<128x128xbf16, #tpu.memory_space<vmem>>, vector<128x128xbf16>
    %c0_13 = arith.constant 0 : index
    %c0_14 = arith.constant 0 : index
    %12 = vector.load %arg22[%c0_13, %c0_14] : memref<16x128xf32, #tpu.memory_space<vmem>>, vector<16x128xf32>
    %13 = arith.truncf %8 : vector<16x128xf32> to vector<16x128xbf16>
    %c0_15 = arith.constant 0 : index
    %c0_16 = arith.constant 0 : index
    %c0_17 = arith.constant 0 : index
    %14 = vector.load %arg5[%c0_15, %c0_16, %c0_17] : memref<2x128x384xbf16, #tpu.memory_space<vmem>>, vector<1x128x384xbf16>
    %15 = vector.shape_cast %14 : vector<1x128x384xbf16> to vector<128x384xbf16>
    %cst_18 = arith.constant dense<0.000000e+00> : vector<16x384xf32>
    %16 = tpu.matmul %13, %15, %cst_18 {dimension_numbers = #tpu.dot_dimension_numbers<[1], [0], [0], [1], [0, 0, 1, 1], [], []>} : vector<16x128xbf16>, vector<128x384xbf16>, vector<16x384xf32> -> vector<16x384xf32>
    %c0_19 = arith.constant 0 : index
    %c0_20 = arith.constant 0 : index
    %c0_21 = arith.constant 0 : index
    %17 = vector.load %arg6[%c0_19, %c0_20, %c0_21] : memref<2x1x384xf32, #tpu.memory_space<vmem>>, vector<1x1x384xf32>
    %18 = vector.shape_cast %17 : vector<1x1x384xf32> to vector<1x384xf32>
    %19 = vector.broadcast %18 : vector<1x384xf32> to vector<16x384xf32>
    %20 = arith.addf %16, %19 : vector<16x384xf32>
    %21 = vector.extract_strided_slice %20 {offsets = [0, 0], sizes = [16, 128], strides = [1, 1]} : vector<16x384xf32> to vector<16x128xf32>
    %22 = vector.extract_strided_slice %20 {offsets = [0, 128], sizes = [16, 256], strides = [1, 1]} : vector<16x384xf32> to vector<16x256xf32>
    %23 = arith.truncf %22 : vector<16x256xf32> to vector<16x256xbf16>
    %cst_22 = arith.constant dense<0.000000e+00> : vector<128x256xf32>
    %24 = tpu.matmul %9, %23, %cst_22 {dimension_numbers = #tpu.dot_dimension_numbers<[1], [0], [0], [1], [0, 0, 1, 1], [], []>} : vector<128x16xbf16>, vector<16x256xbf16>, vector<128x256xf32> -> vector<128x256xf32>
    %25 = vector.extract_strided_slice %24 {offsets = [0, 0], sizes = [128, 128], strides = [1, 1]} : vector<128x256xf32> to vector<128x128xf32>
    %26 = arith.mulf %25, %10 : vector<128x128xf32>
    %27 = arith.truncf %26 : vector<128x128xf32> to vector<128x128xbf16>
    %28 = vector.extract_strided_slice %24 {offsets = [0, 128], sizes = [128, 128], strides = [1, 1]} : vector<128x256xf32> to vector<128x128xf32>
    %29 = arith.mulf %28, %10 : vector<128x128xf32>
    %30 = arith.truncf %29 : vector<128x128xf32> to vector<128x128xbf16>
    %31 = arith.truncf %21 : vector<16x128xf32> to vector<16x128xbf16>
    %cst_23 = arith.constant dense<0.000000e+00> : vector<16x128xf32>
    %32 = tpu.matmul %31, %27, %cst_23 {dimension_numbers = #tpu.dot_dimension_numbers<[1], [1], [0], [0], [0, 0, 1, 0], [], []>} : vector<16x128xbf16>, vector<128x128xbf16>, vector<16x128xf32> -> vector<16x128xf32>
    %cst_24 = arith.constant 2.500000e-01 : f32
    %33 = vector.broadcast %cst_24 : f32 to vector<16x128xf32>
    %34 = arith.mulf %32, %33 : vector<16x128xf32>
    %35 = arith.addf %34, %12 : vector<16x128xf32>
    %cst_25 = arith.constant dense<0xFF800000> : vector<16xf32>
    %36 = vector.multi_reduction <maximumf>, %35, %cst_25 [1] : vector<16x128xf32> to vector<16xf32>
    %37 = vector.shape_cast %36 : vector<16xf32> to vector<16x1xf32>
    %38 = vector.broadcast %37 : vector<16x1xf32> to vector<16x128xf32>
    %39 = arith.subf %35, %38 : vector<16x128xf32>
    %40 = math.exp %39 : vector<16x128xf32>
    %41 = arith.truncf %40 : vector<16x128xf32> to vector<16x128xbf16>
    %cst_26 = arith.constant dense<0.000000e+00> : vector<16x128xf32>
    %42 = tpu.matmul %41, %11, %cst_26 {dimension_numbers = #tpu.dot_dimension_numbers<[1], [0], [0], [1], [0, 0, 1, 1], [], []>} : vector<16x128xbf16>, vector<128x128xbf16>, vector<16x128xf32> -> vector<16x128xf32>
    %cst_27 = arith.constant 9.99999968E-21 : f32
    %43 = vector.broadcast %cst_27 : f32 to vector<16x128xf32>
    %44 = arith.maximumf %42, %43 : vector<16x128xf32>
    %45 = tpu.reciprocal %44 {approx = true} : vector<16x128xf32> -> vector<16x128xf32>
    %46 = arith.mulf %40, %45 : vector<16x128xf32>
    %47 = arith.truncf %46 : vector<16x128xf32> to vector<16x128xbf16>
    %cst_28 = arith.constant dense<0.000000e+00> : vector<16x128xf32>
    %48 = tpu.matmul %47, %30, %cst_28 {dimension_numbers = #tpu.dot_dimension_numbers<[1], [0], [0], [1], [0, 0, 1, 1], [], []>} : vector<16x128xbf16>, vector<128x128xbf16>, vector<16x128xf32> -> vector<16x128xf32>
    %49 = arith.truncf %48 : vector<16x128xf32> to vector<16x128xbf16>
    %c0_29 = arith.constant 0 : index
    %c0_30 = arith.constant 0 : index
    %c0_31 = arith.constant 0 : index
    %50 = vector.load %arg7[%c0_29, %c0_30, %c0_31] : memref<2x128x128xbf16, #tpu.memory_space<vmem>>, vector<1x128x128xbf16>
    %51 = vector.shape_cast %50 : vector<1x128x128xbf16> to vector<128x128xbf16>
    %cst_32 = arith.constant dense<0.000000e+00> : vector<16x128xf32>
    %52 = tpu.matmul %49, %51, %cst_32 {dimension_numbers = #tpu.dot_dimension_numbers<[1], [0], [0], [1], [0, 0, 1, 1], [], []>} : vector<16x128xbf16>, vector<128x128xbf16>, vector<16x128xf32> -> vector<16x128xf32>
    %c0_33 = arith.constant 0 : index
    %c0_34 = arith.constant 0 : index
    %c0_35 = arith.constant 0 : index
    %53 = vector.load %arg8[%c0_33, %c0_34, %c0_35] : memref<2x1x128xf32, #tpu.memory_space<vmem>>, vector<1x1x128xf32>
    %54 = vector.shape_cast %53 : vector<1x1x128xf32> to vector<1x128xf32>
    %55 = vector.broadcast %54 : vector<1x128xf32> to vector<16x128xf32>
    %56 = arith.addf %52, %55 : vector<16x128xf32>
    %57 = arith.addf %8, %56 : vector<16x128xf32>
    %c0_36 = arith.constant 0 : index
    %c0_37 = arith.constant 0 : index
    %c0_38 = arith.constant 0 : index
    %58 = vector.load %arg13[%c0_36, %c0_37, %c0_38] : memref<2x1x128xf32, #tpu.memory_space<vmem>>, vector<1x1x128xf32>
    %59 = vector.shape_cast %58 : vector<1x1x128xf32> to vector<1x128xf32>
    %c0_39 = arith.constant 0 : index
    %c0_40 = arith.constant 0 : index
    %c0_41 = arith.constant 0 : index
    %60 = vector.load %arg14[%c0_39, %c0_40, %c0_41] : memref<2x1x128xf32, #tpu.memory_space<vmem>>, vector<1x1x128xf32>
    %61 = vector.shape_cast %60 : vector<1x1x128xf32> to vector<1x128xf32>
    %cst_42 = arith.constant dense<0.000000e+00> : vector<16xf32>
    %62 = vector.multi_reduction <add>, %57, %cst_42 [1] : vector<16x128xf32> to vector<16xf32>
    %63 = vector.shape_cast %62 : vector<16xf32> to vector<16x1xf32>
    %cst_43 = arith.constant 1.280000e+02 : f32
    %64 = vector.broadcast %cst_43 : f32 to vector<16x1xf32>
    %65 = arith.divf %63, %64 : vector<16x1xf32>
    %66 = vector.broadcast %65 : vector<16x1xf32> to vector<16x128xf32>
    %67 = arith.subf %57, %66 : vector<16x128xf32>
    %68 = arith.mulf %67, %67 : vector<16x128xf32>
    %cst_44 = arith.constant dense<0.000000e+00> : vector<16xf32>
    %69 = vector.multi_reduction <add>, %68, %cst_44 [1] : vector<16x128xf32> to vector<16xf32>
    %70 = vector.shape_cast %69 : vector<16xf32> to vector<16x1xf32>
    %cst_45 = arith.constant 1.280000e+02 : f32
    %71 = vector.broadcast %cst_45 : f32 to vector<16x1xf32>
    %72 = arith.divf %70, %71 : vector<16x1xf32>
    %cst_46 = arith.constant 9.99999974E-6 : f32
    %73 = vector.broadcast %cst_46 : f32 to vector<16x1xf32>
    %74 = arith.addf %72, %73 : vector<16x1xf32>
    %75 = math.rsqrt %74 : vector<16x1xf32>
    %76 = vector.broadcast %75 : vector<16x1xf32> to vector<16x128xf32>
    %77 = arith.mulf %67, %76 : vector<16x128xf32>
    %78 = vector.broadcast %59 : vector<1x128xf32> to vector<16x128xf32>
    %79 = arith.mulf %77, %78 : vector<16x128xf32>
    %80 = vector.broadcast %61 : vector<1x128xf32> to vector<16x128xf32>
    %81 = arith.addf %79, %80 : vector<16x128xf32>
    %82 = arith.truncf %81 : vector<16x128xf32> to vector<16x128xbf16>
    %c0_47 = arith.constant 0 : index
    %c0_48 = arith.constant 0 : index
    %c0_49 = arith.constant 0 : index
    %83 = vector.load %arg9[%c0_47, %c0_48, %c0_49] : memref<2x128x512xbf16, #tpu.memory_space<vmem>>, vector<1x128x512xbf16>
    %84 = vector.shape_cast %83 : vector<1x128x512xbf16> to vector<128x512xbf16>
    %cst_50 = arith.constant dense<0.000000e+00> : vector<16x512xf32>
    %85 = tpu.matmul %82, %84, %cst_50 {dimension_numbers = #tpu.dot_dimension_numbers<[1], [0], [0], [1], [0, 0, 1, 1], [], []>} : vector<16x128xbf16>, vector<128x512xbf16>, vector<16x512xf32> -> vector<16x512xf32>
    %c0_51 = arith.constant 0 : index
    %c0_52 = arith.constant 0 : index
    %c0_53 = arith.constant 0 : index
    %86 = vector.load %arg10[%c0_51, %c0_52, %c0_53] : memref<2x1x512xf32, #tpu.memory_space<vmem>>, vector<1x1x512xf32>
    %87 = vector.shape_cast %86 : vector<1x1x512xf32> to vector<1x512xf32>
    %88 = vector.broadcast %87 : vector<1x512xf32> to vector<16x512xf32>
    %89 = arith.addf %85, %88 : vector<16x512xf32>
    %cst_54 = arith.constant 0.000000e+00 : f32
    %90 = vector.broadcast %cst_54 : f32 to vector<16x512xf32>
    %91 = arith.maximumf %89, %90 : vector<16x512xf32>
    %92 = arith.truncf %91 : vector<16x512xf32> to vector<16x512xbf16>
    %c0_55 = arith.constant 0 : index
    %c0_56 = arith.constant 0 : index
    %c0_57 = arith.constant 0 : index
    %93 = vector.load %arg11[%c0_55, %c0_56, %c0_57] : memref<2x512x128xbf16, #tpu.memory_space<vmem>>, vector<1x512x128xbf16>
    %94 = vector.shape_cast %93 : vector<1x512x128xbf16> to vector<512x128xbf16>
    %cst_58 = arith.constant dense<0.000000e+00> : vector<16x128xf32>
    %95 = tpu.matmul %92, %94, %cst_58 {dimension_numbers = #tpu.dot_dimension_numbers<[1], [0], [0], [1], [0, 0, 1, 1], [], []>} : vector<16x512xbf16>, vector<512x128xbf16>, vector<16x128xf32> -> vector<16x128xf32>
    %c0_59 = arith.constant 0 : index
    %c0_60 = arith.constant 0 : index
    %c0_61 = arith.constant 0 : index
    %96 = vector.load %arg12[%c0_59, %c0_60, %c0_61] : memref<2x1x128xf32, #tpu.memory_space<vmem>>, vector<1x1x128xf32>
    %97 = vector.shape_cast %96 : vector<1x1x128xf32> to vector<1x128xf32>
    %98 = vector.broadcast %97 : vector<1x128xf32> to vector<16x128xf32>
    %99 = arith.addf %95, %98 : vector<16x128xf32>
    %100 = arith.addf %81, %99 : vector<16x128xf32>
    %c0_62 = arith.constant 0 : index
    %c0_63 = arith.constant 0 : index
    %c0_64 = arith.constant 0 : index
    %101 = vector.load %arg15[%c0_62, %c0_63, %c0_64] : memref<2x1x128xf32, #tpu.memory_space<vmem>>, vector<1x1x128xf32>
    %102 = vector.shape_cast %101 : vector<1x1x128xf32> to vector<1x128xf32>
    %c0_65 = arith.constant 0 : index
    %c0_66 = arith.constant 0 : index
    %c0_67 = arith.constant 0 : index
    %103 = vector.load %arg16[%c0_65, %c0_66, %c0_67] : memref<2x1x128xf32, #tpu.memory_space<vmem>>, vector<1x1x128xf32>
    %104 = vector.shape_cast %103 : vector<1x1x128xf32> to vector<1x128xf32>
    %cst_68 = arith.constant dense<0.000000e+00> : vector<16xf32>
    %105 = vector.multi_reduction <add>, %100, %cst_68 [1] : vector<16x128xf32> to vector<16xf32>
    %106 = vector.shape_cast %105 : vector<16xf32> to vector<16x1xf32>
    %cst_69 = arith.constant 1.280000e+02 : f32
    %107 = vector.broadcast %cst_69 : f32 to vector<16x1xf32>
    %108 = arith.divf %106, %107 : vector<16x1xf32>
    %109 = vector.broadcast %108 : vector<16x1xf32> to vector<16x128xf32>
    %110 = arith.subf %100, %109 : vector<16x128xf32>
    %111 = arith.mulf %110, %110 : vector<16x128xf32>
    %cst_70 = arith.constant dense<0.000000e+00> : vector<16xf32>
    %112 = vector.multi_reduction <add>, %111, %cst_70 [1] : vector<16x128xf32> to vector<16xf32>
    %113 = vector.shape_cast %112 : vector<16xf32> to vector<16x1xf32>
    %cst_71 = arith.constant 1.280000e+02 : f32
    %114 = vector.broadcast %cst_71 : f32 to vector<16x1xf32>
    %115 = arith.divf %113, %114 : vector<16x1xf32>
    %cst_72 = arith.constant 9.99999974E-6 : f32
    %116 = vector.broadcast %cst_72 : f32 to vector<16x1xf32>
    %117 = arith.addf %115, %116 : vector<16x1xf32>
    %118 = math.rsqrt %117 : vector<16x1xf32>
    %119 = vector.broadcast %118 : vector<16x1xf32> to vector<16x128xf32>
    %120 = arith.mulf %110, %119 : vector<16x128xf32>
    %121 = vector.broadcast %102 : vector<1x128xf32> to vector<16x128xf32>
    %122 = arith.mulf %120, %121 : vector<16x128xf32>
    %123 = vector.broadcast %104 : vector<1x128xf32> to vector<16x128xf32>
    %124 = arith.addf %122, %123 : vector<16x128xf32>
    %125 = arith.truncf %124 : vector<16x128xf32> to vector<16x128xbf16>
    %c1 = arith.constant 1 : index
    %c0_73 = arith.constant 0 : index
    %c0_74 = arith.constant 0 : index
    %126 = vector.load %arg5[%c1, %c0_73, %c0_74] : memref<2x128x384xbf16, #tpu.memory_space<vmem>>, vector<1x128x384xbf16>
    %127 = vector.shape_cast %126 : vector<1x128x384xbf16> to vector<128x384xbf16>
    %cst_75 = arith.constant dense<0.000000e+00> : vector<16x384xf32>
    %128 = tpu.matmul %125, %127, %cst_75 {dimension_numbers = #tpu.dot_dimension_numbers<[1], [0], [0], [1], [0, 0, 1, 1], [], []>} : vector<16x128xbf16>, vector<128x384xbf16>, vector<16x384xf32> -> vector<16x384xf32>
    %c1_76 = arith.constant 1 : index
    %c0_77 = arith.constant 0 : index
    %c0_78 = arith.constant 0 : index
    %129 = vector.load %arg6[%c1_76, %c0_77, %c0_78] : memref<2x1x384xf32, #tpu.memory_space<vmem>>, vector<1x1x384xf32>
    %130 = vector.shape_cast %129 : vector<1x1x384xf32> to vector<1x384xf32>
    %131 = vector.broadcast %130 : vector<1x384xf32> to vector<16x384xf32>
    %132 = arith.addf %128, %131 : vector<16x384xf32>
    %133 = vector.extract_strided_slice %132 {offsets = [0, 0], sizes = [16, 128], strides = [1, 1]} : vector<16x384xf32> to vector<16x128xf32>
    %134 = vector.extract_strided_slice %132 {offsets = [0, 128], sizes = [16, 256], strides = [1, 1]} : vector<16x384xf32> to vector<16x256xf32>
    %135 = arith.truncf %134 : vector<16x256xf32> to vector<16x256xbf16>
    %cst_79 = arith.constant dense<0.000000e+00> : vector<128x256xf32>
    %136 = tpu.matmul %9, %135, %cst_79 {dimension_numbers = #tpu.dot_dimension_numbers<[1], [0], [0], [1], [0, 0, 1, 1], [], []>} : vector<128x16xbf16>, vector<16x256xbf16>, vector<128x256xf32> -> vector<128x256xf32>
    %137 = vector.extract_strided_slice %136 {offsets = [0, 0], sizes = [128, 128], strides = [1, 1]} : vector<128x256xf32> to vector<128x128xf32>
    %138 = arith.mulf %137, %10 : vector<128x128xf32>
    %139 = arith.truncf %138 : vector<128x128xf32> to vector<128x128xbf16>
    %140 = vector.extract_strided_slice %136 {offsets = [0, 128], sizes = [128, 128], strides = [1, 1]} : vector<128x256xf32> to vector<128x128xf32>
    %141 = arith.mulf %140, %10 : vector<128x128xf32>
    %142 = arith.truncf %141 : vector<128x128xf32> to vector<128x128xbf16>
    %143 = arith.truncf %133 : vector<16x128xf32> to vector<16x128xbf16>
    %cst_80 = arith.constant dense<0.000000e+00> : vector<16x128xf32>
    %144 = tpu.matmul %143, %139, %cst_80 {dimension_numbers = #tpu.dot_dimension_numbers<[1], [1], [0], [0], [0, 0, 1, 0], [], []>} : vector<16x128xbf16>, vector<128x128xbf16>, vector<16x128xf32> -> vector<16x128xf32>
    %cst_81 = arith.constant 2.500000e-01 : f32
    %145 = vector.broadcast %cst_81 : f32 to vector<16x128xf32>
    %146 = arith.mulf %144, %145 : vector<16x128xf32>
    %147 = arith.addf %146, %12 : vector<16x128xf32>
    %cst_82 = arith.constant dense<0xFF800000> : vector<16xf32>
    %148 = vector.multi_reduction <maximumf>, %147, %cst_82 [1] : vector<16x128xf32> to vector<16xf32>
    %149 = vector.shape_cast %148 : vector<16xf32> to vector<16x1xf32>
    %150 = vector.broadcast %149 : vector<16x1xf32> to vector<16x128xf32>
    %151 = arith.subf %147, %150 : vector<16x128xf32>
    %152 = math.exp %151 : vector<16x128xf32>
    %153 = arith.truncf %152 : vector<16x128xf32> to vector<16x128xbf16>
    %cst_83 = arith.constant dense<0.000000e+00> : vector<16x128xf32>
    %154 = tpu.matmul %153, %11, %cst_83 {dimension_numbers = #tpu.dot_dimension_numbers<[1], [0], [0], [1], [0, 0, 1, 1], [], []>} : vector<16x128xbf16>, vector<128x128xbf16>, vector<16x128xf32> -> vector<16x128xf32>
    %cst_84 = arith.constant 9.99999968E-21 : f32
    %155 = vector.broadcast %cst_84 : f32 to vector<16x128xf32>
    %156 = arith.maximumf %154, %155 : vector<16x128xf32>
    %157 = tpu.reciprocal %156 {approx = true} : vector<16x128xf32> -> vector<16x128xf32>
    %158 = arith.mulf %152, %157 : vector<16x128xf32>
    %159 = arith.truncf %158 : vector<16x128xf32> to vector<16x128xbf16>
    %cst_85 = arith.constant dense<0.000000e+00> : vector<16x128xf32>
    %160 = tpu.matmul %159, %142, %cst_85 {dimension_numbers = #tpu.dot_dimension_numbers<[1], [0], [0], [1], [0, 0, 1, 1], [], []>} : vector<16x128xbf16>, vector<128x128xbf16>, vector<16x128xf32> -> vector<16x128xf32>
    %161 = arith.truncf %160 : vector<16x128xf32> to vector<16x128xbf16>
    %c1_86 = arith.constant 1 : index
    %c0_87 = arith.constant 0 : index
    %c0_88 = arith.constant 0 : index
    %162 = vector.load %arg7[%c1_86, %c0_87, %c0_88] : memref<2x128x128xbf16, #tpu.memory_space<vmem>>, vector<1x128x128xbf16>
    %163 = vector.shape_cast %162 : vector<1x128x128xbf16> to vector<128x128xbf16>
    %cst_89 = arith.constant dense<0.000000e+00> : vector<16x128xf32>
    %164 = tpu.matmul %161, %163, %cst_89 {dimension_numbers = #tpu.dot_dimension_numbers<[1], [0], [0], [1], [0, 0, 1, 1], [], []>} : vector<16x128xbf16>, vector<128x128xbf16>, vector<16x128xf32> -> vector<16x128xf32>
    %c1_90 = arith.constant 1 : index
    %c0_91 = arith.constant 0 : index
    %c0_92 = arith.constant 0 : index
    %165 = vector.load %arg8[%c1_90, %c0_91, %c0_92] : memref<2x1x128xf32, #tpu.memory_space<vmem>>, vector<1x1x128xf32>
    %166 = vector.shape_cast %165 : vector<1x1x128xf32> to vector<1x128xf32>
    %167 = vector.broadcast %166 : vector<1x128xf32> to vector<16x128xf32>
    %168 = arith.addf %164, %167 : vector<16x128xf32>
    %169 = arith.addf %124, %168 : vector<16x128xf32>
    %c1_93 = arith.constant 1 : index
    %c0_94 = arith.constant 0 : index
    %c0_95 = arith.constant 0 : index
    %170 = vector.load %arg13[%c1_93, %c0_94, %c0_95] : memref<2x1x128xf32, #tpu.memory_space<vmem>>, vector<1x1x128xf32>
    %171 = vector.shape_cast %170 : vector<1x1x128xf32> to vector<1x128xf32>
    %c1_96 = arith.constant 1 : index
    %c0_97 = arith.constant 0 : index
    %c0_98 = arith.constant 0 : index
    %172 = vector.load %arg14[%c1_96, %c0_97, %c0_98] : memref<2x1x128xf32, #tpu.memory_space<vmem>>, vector<1x1x128xf32>
    %173 = vector.shape_cast %172 : vector<1x1x128xf32> to vector<1x128xf32>
    %cst_99 = arith.constant dense<0.000000e+00> : vector<16xf32>
    %174 = vector.multi_reduction <add>, %169, %cst_99 [1] : vector<16x128xf32> to vector<16xf32>
    %175 = vector.shape_cast %174 : vector<16xf32> to vector<16x1xf32>
    %cst_100 = arith.constant 1.280000e+02 : f32
    %176 = vector.broadcast %cst_100 : f32 to vector<16x1xf32>
    %177 = arith.divf %175, %176 : vector<16x1xf32>
    %178 = vector.broadcast %177 : vector<16x1xf32> to vector<16x128xf32>
    %179 = arith.subf %169, %178 : vector<16x128xf32>
    %180 = arith.mulf %179, %179 : vector<16x128xf32>
    %cst_101 = arith.constant dense<0.000000e+00> : vector<16xf32>
    %181 = vector.multi_reduction <add>, %180, %cst_101 [1] : vector<16x128xf32> to vector<16xf32>
    %182 = vector.shape_cast %181 : vector<16xf32> to vector<16x1xf32>
    %cst_102 = arith.constant 1.280000e+02 : f32
    %183 = vector.broadcast %cst_102 : f32 to vector<16x1xf32>
    %184 = arith.divf %182, %183 : vector<16x1xf32>
    %cst_103 = arith.constant 9.99999974E-6 : f32
    %185 = vector.broadcast %cst_103 : f32 to vector<16x1xf32>
    %186 = arith.addf %184, %185 : vector<16x1xf32>
    %187 = math.rsqrt %186 : vector<16x1xf32>
    %188 = vector.broadcast %187 : vector<16x1xf32> to vector<16x128xf32>
    %189 = arith.mulf %179, %188 : vector<16x128xf32>
    %190 = vector.broadcast %171 : vector<1x128xf32> to vector<16x128xf32>
    %191 = arith.mulf %189, %190 : vector<16x128xf32>
    %192 = vector.broadcast %173 : vector<1x128xf32> to vector<16x128xf32>
    %193 = arith.addf %191, %192 : vector<16x128xf32>
    %194 = arith.truncf %193 : vector<16x128xf32> to vector<16x128xbf16>
    %c1_104 = arith.constant 1 : index
    %c0_105 = arith.constant 0 : index
    %c0_106 = arith.constant 0 : index
    %195 = vector.load %arg9[%c1_104, %c0_105, %c0_106] : memref<2x128x512xbf16, #tpu.memory_space<vmem>>, vector<1x128x512xbf16>
    %196 = vector.shape_cast %195 : vector<1x128x512xbf16> to vector<128x512xbf16>
    %cst_107 = arith.constant dense<0.000000e+00> : vector<16x512xf32>
    %197 = tpu.matmul %194, %196, %cst_107 {dimension_numbers = #tpu.dot_dimension_numbers<[1], [0], [0], [1], [0, 0, 1, 1], [], []>} : vector<16x128xbf16>, vector<128x512xbf16>, vector<16x512xf32> -> vector<16x512xf32>
    %c1_108 = arith.constant 1 : index
    %c0_109 = arith.constant 0 : index
    %c0_110 = arith.constant 0 : index
    %198 = vector.load %arg10[%c1_108, %c0_109, %c0_110] : memref<2x1x512xf32, #tpu.memory_space<vmem>>, vector<1x1x512xf32>
    %199 = vector.shape_cast %198 : vector<1x1x512xf32> to vector<1x512xf32>
    %200 = vector.broadcast %199 : vector<1x512xf32> to vector<16x512xf32>
    %201 = arith.addf %197, %200 : vector<16x512xf32>
    %cst_111 = arith.constant 0.000000e+00 : f32
    %202 = vector.broadcast %cst_111 : f32 to vector<16x512xf32>
    %203 = arith.maximumf %201, %202 : vector<16x512xf32>
    %204 = arith.truncf %203 : vector<16x512xf32> to vector<16x512xbf16>
    %c1_112 = arith.constant 1 : index
    %c0_113 = arith.constant 0 : index
    %c0_114 = arith.constant 0 : index
    %205 = vector.load %arg11[%c1_112, %c0_113, %c0_114] : memref<2x512x128xbf16, #tpu.memory_space<vmem>>, vector<1x512x128xbf16>
    %206 = vector.shape_cast %205 : vector<1x512x128xbf16> to vector<512x128xbf16>
    %cst_115 = arith.constant dense<0.000000e+00> : vector<16x128xf32>
    %207 = tpu.matmul %204, %206, %cst_115 {dimension_numbers = #tpu.dot_dimension_numbers<[1], [0], [0], [1], [0, 0, 1, 1], [], []>} : vector<16x512xbf16>, vector<512x128xbf16>, vector<16x128xf32> -> vector<16x128xf32>
    %c1_116 = arith.constant 1 : index
    %c0_117 = arith.constant 0 : index
    %c0_118 = arith.constant 0 : index
    %208 = vector.load %arg12[%c1_116, %c0_117, %c0_118] : memref<2x1x128xf32, #tpu.memory_space<vmem>>, vector<1x1x128xf32>
    %209 = vector.shape_cast %208 : vector<1x1x128xf32> to vector<1x128xf32>
    %210 = vector.broadcast %209 : vector<1x128xf32> to vector<16x128xf32>
    %211 = arith.addf %207, %210 : vector<16x128xf32>
    %212 = arith.addf %193, %211 : vector<16x128xf32>
    %c1_119 = arith.constant 1 : index
    %c0_120 = arith.constant 0 : index
    %c0_121 = arith.constant 0 : index
    %213 = vector.load %arg15[%c1_119, %c0_120, %c0_121] : memref<2x1x128xf32, #tpu.memory_space<vmem>>, vector<1x1x128xf32>
    %214 = vector.shape_cast %213 : vector<1x1x128xf32> to vector<1x128xf32>
    %c1_122 = arith.constant 1 : index
    %c0_123 = arith.constant 0 : index
    %c0_124 = arith.constant 0 : index
    %215 = vector.load %arg16[%c1_122, %c0_123, %c0_124] : memref<2x1x128xf32, #tpu.memory_space<vmem>>, vector<1x1x128xf32>
    %216 = vector.shape_cast %215 : vector<1x1x128xf32> to vector<1x128xf32>
    %cst_125 = arith.constant dense<0.000000e+00> : vector<16xf32>
    %217 = vector.multi_reduction <add>, %212, %cst_125 [1] : vector<16x128xf32> to vector<16xf32>
    %218 = vector.shape_cast %217 : vector<16xf32> to vector<16x1xf32>
    %cst_126 = arith.constant 1.280000e+02 : f32
    %219 = vector.broadcast %cst_126 : f32 to vector<16x1xf32>
    %220 = arith.divf %218, %219 : vector<16x1xf32>
    %221 = vector.broadcast %220 : vector<16x1xf32> to vector<16x128xf32>
    %222 = arith.subf %212, %221 : vector<16x128xf32>
    %223 = arith.mulf %222, %222 : vector<16x128xf32>
    %cst_127 = arith.constant dense<0.000000e+00> : vector<16xf32>
    %224 = vector.multi_reduction <add>, %223, %cst_127 [1] : vector<16x128xf32> to vector<16xf32>
    %225 = vector.shape_cast %224 : vector<16xf32> to vector<16x1xf32>
    %cst_128 = arith.constant 1.280000e+02 : f32
    %226 = vector.broadcast %cst_128 : f32 to vector<16x1xf32>
    %227 = arith.divf %225, %226 : vector<16x1xf32>
    %cst_129 = arith.constant 9.99999974E-6 : f32
    %228 = vector.broadcast %cst_129 : f32 to vector<16x1xf32>
    %229 = arith.addf %227, %228 : vector<16x1xf32>
    %230 = math.rsqrt %229 : vector<16x1xf32>
    %231 = vector.broadcast %230 : vector<16x1xf32> to vector<16x128xf32>
    %232 = arith.mulf %222, %231 : vector<16x128xf32>
    %233 = vector.broadcast %214 : vector<1x128xf32> to vector<16x128xf32>
    %234 = arith.mulf %232, %233 : vector<16x128xf32>
    %235 = vector.broadcast %216 : vector<1x128xf32> to vector<16x128xf32>
    %236 = arith.addf %234, %235 : vector<16x128xf32>
    %c0_130 = arith.constant 0 : index
    %c0_131 = arith.constant 0 : index
    %237 = vector.load %arg23[%c0_130, %c0_131] : memref<2x16xbf16, #tpu.memory_space<vmem>>, vector<2x16xbf16>
    %238 = arith.truncf %236 : vector<16x128xf32> to vector<16x128xbf16>
    %cst_132 = arith.constant dense<0.000000e+00> : vector<2x128xf32>
    %239 = tpu.matmul %237, %238, %cst_132 {dimension_numbers = #tpu.dot_dimension_numbers<[1], [0], [0], [1], [0, 0, 1, 1], [], []>} : vector<2x16xbf16>, vector<16x128xbf16>, vector<2x128xf32> -> vector<2x128xf32>
    %240 = arith.truncf %239 : vector<2x128xf32> to vector<2x128xbf16>
    %c0_133 = arith.constant 0 : index
    %c0_134 = arith.constant 0 : index
    %241 = vector.load %arg17[%c0_133, %c0_134] : memref<128x128xbf16, #tpu.memory_space<vmem>>, vector<128x128xbf16>
    %cst_135 = arith.constant dense<0.000000e+00> : vector<2x128xf32>
    %242 = tpu.matmul %240, %241, %cst_135 {dimension_numbers = #tpu.dot_dimension_numbers<[1], [0], [0], [1], [0, 0, 1, 1], [], []>} : vector<2x128xbf16>, vector<128x128xbf16>, vector<2x128xf32> -> vector<2x128xf32>
    %c0_136 = arith.constant 0 : index
    %c0_137 = arith.constant 0 : index
    %243 = vector.load %arg18[%c0_136, %c0_137] : memref<1x128xf32, #tpu.memory_space<vmem>>, vector<1x128xf32>
    %244 = vector.broadcast %243 : vector<1x128xf32> to vector<2x128xf32>
    %245 = arith.addf %242, %244 : vector<2x128xf32>
    %c0_138 = arith.constant 0 : index
    %c0_139 = arith.constant 0 : index
    %c0_140 = arith.constant 0 : index
    %246 = vector.load %arg24[%c0_138, %c0_139, %c0_140] : memref<1x2x128xf32, #tpu.memory_space<vmem>>, vector<1x2x128xf32>
    %247 = vector.shape_cast %246 : vector<1x2x128xf32> to vector<2x128xf32>
    %248 = vector.shape_cast %245 : vector<2x128xf32> to vector<1x2x128xf32>
    tpu.vector_store %arg24[%c0_138, %c0_139, %c0_140], %248 {strides = array<i32>} : memref<1x2x128xf32, #tpu.memory_space<vmem>>, vector<1x2x128xf32>,
    return
  }
  func.func @transform_0(%arg0: i32) -> (i32, i32) {
    %c0_i32 = arith.constant 0 : i32
    %c0_i32_0 = arith.constant 0 : i32
    return %arg0, %c0_i32 : i32, i32
  }
  func.func @transform_1(%arg0: i32) -> (i32, i32) {
    %c0_i32 = arith.constant 0 : i32
    %c0_i32_0 = arith.constant 0 : i32
    %c0_i32_1 = arith.constant 0 : i32
    return %c0_i32, %c0_i32_0 : i32, i32
  }
  func.func @transform_2(%arg0: i32) -> (i32, i32) {
    %c0_i32 = arith.constant 0 : i32
    %c0_i32_0 = arith.constant 0 : i32
    %c0_i32_1 = arith.constant 0 : i32
    return %c0_i32, %c0_i32_0 : i32, i32
  }
  func.func @transform_3(%arg0: i32) -> (i32, i32) {
    %c0_i32 = arith.constant 0 : i32
    %c0_i32_0 = arith.constant 0 : i32
    %c0_i32_1 = arith.constant 0 : i32
    return %c0_i32, %c0_i32_0 : i32, i32
  }
  func.func @transform_4(%arg0: i32) -> (i32, i32, i32) {
    %c0_i32 = arith.constant 0 : i32
    %c0_i32_0 = arith.constant 0 : i32
    %c0_i32_1 = arith.constant 0 : i32
    %c0_i32_2 = arith.constant 0 : i32
    return %c0_i32, %c0_i32_0, %c0_i32_1 : i32, i32, i32
  }
  func.func @transform_5(%arg0: i32) -> (i32, i32, i32) {
    %c0_i32 = arith.constant 0 : i32
    %c0_i32_0 = arith.constant 0 : i32
    %c0_i32_1 = arith.constant 0 : i32
    %c0_i32_2 = arith.constant 0 : i32
    return %c0_i32, %c0_i32_0, %c0_i32_1 : i32, i32, i32
  }
  func.func @transform_6(%arg0: i32) -> (i32, i32, i32) {
    %c0_i32 = arith.constant 0 : i32
    %c0_i32_0 = arith.constant 0 : i32
    %c0_i32_1 = arith.constant 0 : i32
    %c0_i32_2 = arith.constant 0 : i32
    return %c0_i32, %c0_i32_0, %c0_i32_1 : i32, i32, i32
  }
  func.func @transform_7(%arg0: i32) -> (i32, i32, i32) {
    %c0_i32 = arith.constant 0 : i32
    %c0_i32_0 = arith.constant 0 : i32
    %c0_i32_1 = arith.constant 0 : i32
    %c0_i32_2 = arith.constant 0 : i32
    return %c0_i32, %c0_i32_0, %c0_i32_1 : i32, i32, i32
  }
  func.func @transform_8(%arg0: i32) -> (i32, i32, i32) {
    %c0_i32 = arith.constant 0 : i32
    %c0_i32_0 = arith.constant 0 : i32
    %c0_i32_1 = arith.constant 0 : i32
    %c0_i32_2 = arith.constant 0 : i32
    return %c0_i32, %c0_i32_0, %c0_i32_1 : i32, i32, i32
  }
  func.func @transform_9(%arg0: i32) -> (i32, i32, i32) {
    %c0_i32 = arith.constant 0 : i32
    %c0_i32_0 = arith.constant 0 : i32
    %c0_i32_1 = arith.constant 0 : i32
    %c0_i32_2 = arith.constant 0 : i32
    return %c0_i32, %c0_i32_0, %c0_i32_1 : i32, i32, i32
  }
  func.func @transform_10(%arg0: i32) -> (i32, i32, i32) {
    %c0_i32 = arith.constant 0 : i32
    %c0_i32_0 = arith.constant 0 : i32
    %c0_i32_1 = arith.constant 0 : i32
    %c0_i32_2 = arith.constant 0 : i32
    return %c0_i32, %c0_i32_0, %c0_i32_1 : i32, i32, i32
  }
  func.func @transform_11(%arg0: i32) -> (i32, i32, i32) {
    %c0_i32 = arith.constant 0 : i32
    %c0_i32_0 = arith.constant 0 : i32
    %c0_i32_1 = arith.constant 0 : i32
    %c0_i32_2 = arith.constant 0 : i32
    return %c0_i32, %c0_i32_0, %c0_i32_1 : i32, i32, i32
  }
  func.func @transform_12(%arg0: i32) -> (i32, i32, i32) {
    %c0_i32 = arith.constant 0 : i32
    %c0_i32_0 = arith.constant 0 : i32
    %c0_i32_1 = arith.constant 0 : i32
    %c0_i32_2 = arith.constant 0 : i32
    return %c0_i32, %c0_i32_0, %c0_i32_1 : i32, i32, i32
  }
  func.func @transform_13(%arg0: i32) -> (i32, i32, i32) {
    %c0_i32 = arith.constant 0 : i32
    %c0_i32_0 = arith.constant 0 : i32
    %c0_i32_1 = arith.constant 0 : i32
    %c0_i32_2 = arith.constant 0 : i32
    return %c0_i32, %c0_i32_0, %c0_i32_1 : i32, i32, i32
  }
  func.func @transform_14(%arg0: i32) -> (i32, i32, i32) {
    %c0_i32 = arith.constant 0 : i32
    %c0_i32_0 = arith.constant 0 : i32
    %c0_i32_1 = arith.constant 0 : i32
    %c0_i32_2 = arith.constant 0 : i32
    return %c0_i32, %c0_i32_0, %c0_i32_1 : i32, i32, i32
  }
  func.func @transform_15(%arg0: i32) -> (i32, i32, i32) {
    %c0_i32 = arith.constant 0 : i32
    %c0_i32_0 = arith.constant 0 : i32
    %c0_i32_1 = arith.constant 0 : i32
    %c0_i32_2 = arith.constant 0 : i32
    return %c0_i32, %c0_i32_0, %c0_i32_1 : i32, i32, i32
  }
  func.func @transform_16(%arg0: i32) -> (i32, i32) {
    %c0_i32 = arith.constant 0 : i32
    %c0_i32_0 = arith.constant 0 : i32
    %c0_i32_1 = arith.constant 0 : i32
    return %c0_i32, %c0_i32_0 : i32, i32
  }
  func.func @transform_17(%arg0: i32) -> (i32, i32) {
    %c0_i32 = arith.constant 0 : i32
    %c0_i32_0 = arith.constant 0 : i32
    %c0_i32_1 = arith.constant 0 : i32
    return %c0_i32, %c0_i32_0 : i32, i32
  }
  func.func @transform_18(%arg0: i32) -> (i32, i32) {
    %c0_i32 = arith.constant 0 : i32
    %c0_i32_0 = arith.constant 0 : i32
    %c0_i32_1 = arith.constant 0 : i32
    return %c0_i32, %c0_i32_0 : i32, i32
  }
  func.func @transform_19(%arg0: i32) -> (i32, i32) {
    %c0_i32 = arith.constant 0 : i32
    %c0_i32_0 = arith.constant 0 : i32
    %c0_i32_1 = arith.constant 0 : i32
    return %c0_i32, %c0_i32_0 : i32, i32
  }
  func.func @transform_20(%arg0: i32) -> (i32, i32) {
    %c0_i32 = arith.constant 0 : i32
    %c0_i32_0 = arith.constant 0 : i32
    %c0_i32_1 = arith.constant 0 : i32
    return %c0_i32, %c0_i32_0 : i32, i32
  }
  func.func @transform_21(%arg0: i32) -> (i32, i32) {
    %c0_i32 = arith.constant 0 : i32
    %c0_i32_0 = arith.constant 0 : i32
    %c0_i32_1 = arith.constant 0 : i32
    return %c0_i32, %c0_i32_0 : i32, i32
  }
  func.func @transform_22(%arg0: i32) -> (i32, i32) {
    %c0_i32 = arith.constant 0 : i32
    %c0_i32_0 = arith.constant 0 : i32
    %c0_i32_1 = arith.constant 0 : i32
    return %c0_i32, %c0_i32_0 : i32, i32
  }
  func.func @transform_23(%arg0: i32) -> (i32, i32, i32) {
    %c0_i32 = arith.constant 0 : i32
    %c0_i32_0 = arith.constant 0 : i32
    %c0_i32_1 = arith.constant 0 : i32
    return %arg0, %c0_i32, %c0_i32_0 : i32, i32, i32
  }
}

</mosaic_0001>

<bundles_post_ra>
// kernel: transformer_forward.1
= control target key start
LH: loop header
LB: loop body
LE: loop exit
PB: predicated region body
PF: predicated region fallthrough
CT: control target
= control target key end

     0   :  { %s5781_s0 = inlined_call_operand.vmem [shape: bf16[16,4], index: 0, kind: input, shape index: {}]   ;;  %s5782_s1 = inlined_call_operand.vmem [shape: f32[8,128], index: 1, kind: input, shape index: {}]   ;;  %s5783_s2 = inlined_call_operand.vmem [shape: bf16[4,128], index: 2, kind: input, shape index: {}]   ;;  %s5784_s3 = inlined_call_operand.vmem [shape: f32[1,128], index: 3, kind: input, shape index: {}]   ;;  %s5785_s4 = inlined_call_operand.vmem [shape: bf16[2,128,384], index: 4, kind: input, shape index: {}]   ;;  %s5786_s5 = inlined_call_operand.vmem [shape: f32[2,1,384], index: 5, kind: input, shape index: {}]   ;;  %s5787_s6 = inlined_call_operand.vmem [shape: bf16[2,128,128], index: 6, kind: input, shape index: {}]   ;;  %s5788_s7 = inlined_call_operand.vmem [shape: f32[2,1,128], index: 7, kind: input, shape index: {}]   ;;  %s5789_s8 = inlined_call_operand.vmem [shape: bf16[2,128,512], index: 8, kind: input, shape index: {}]   ;;  %s5790_s9 = inlined_call_operand.vmem [shape: f32[2,1,512], index: 9, kind: input, shape index: {}]   ;;  %s5791_s10 = inlined_call_operand.vmem [shape: bf16[2,512,128], index: 10, kind: input, shape index: {}]   ;;  %s5792_s11 = inlined_call_operand.vmem [shape: f32[2,1,128], index: 11, kind: input, shape index: {}]   ;;  %s5793_s12 = inlined_call_operand.vmem [shape: f32[2,1,128], index: 12, kind: input, shape index: {}]   ;;  %s5794_s13 = inlined_call_operand.vmem [shape: f32[2,1,128], index: 13, kind: input, shape index: {}]   ;;  %s5795_s14 = inlined_call_operand.vmem [shape: f32[2,1,128], index: 14, kind: input, shape index: {}]   ;;  %s5796_s15 = inlined_call_operand.vmem [shape: f32[2,1,128], index: 15, kind: input, shape index: {}]   ;;  %s5797_s16 = inlined_call_operand.vmem [shape: bf16[128,128], index: 16, kind: input, shape index: {}]   ;;  %s5798_s17 = inlined_call_operand.vmem [shape: f32[1,128], index: 17, kind: input, shape index: {}]   ;;  %s5799_s18 = inlined_call_operand.vmem [shape: bf16[128,16], index: 18, kind: input, shape index: {}]   ;;  %s5800_s19 = inlined_call_operand.vmem [shape: f32[128,128], index: 19, kind: input, shape index: {}]   ;;  %s5801_s20 = inlined_call_operand.vmem [shape: bf16[128,128], index: 20, kind: input, shape index: {}]   ;;  %s5802_s21 = inlined_call_operand.vmem [shape: f32[16,128], index: 21, kind: input, shape index: {}]   ;;  %s5803_s22 = inlined_call_operand.vmem [shape: bf16[2,16], index: 22, kind: input, shape index: {}]   ;;  %s5804_s23 = inlined_call_operand.hbm [shape: f32[1,2,128], index: 23, kind: output, shape index: {}]  }
   0x1   :  { %5809 = sst [smem:[#allocation5_spill]] %s5781_s0 }
   0x2   :  { %5810 = sst [smem:[#allocation6_spill]] %s5782_s1 }
   0x3   :  { %5811 = sst [smem:[#allocation7_spill]] %s5783_s2 }
   0x4   :  { %5812 = sst [smem:[#allocation8_spill]] %s5784_s3 }
   0x5   :  { %5813 = sst [smem:[#allocation9_spill]] %s5785_s4 }
   0x6   :  { %5814 = sst [smem:[#allocation10_spill]] %s5786_s5 }
   0x7   :  { %5815 = sst [smem:[#allocation11_spill]] %s5787_s6 }
   0x8   :  { %5816 = sst [smem:[#allocation12_spill]] %s5788_s7 }
   0x9   :  { %s5817_s24 = sld [smem:[#allocation7_spill]]  ;;  %vm93_vm0 = vcmask 1041408   ;;  %vm89_vm1 = vcmask 31744  }
   0xa   :  { %s5818_s1 = sld [smem:[#allocation5_spill]] }
   0xb   :  { %s5819_s6 = sld [smem:[#allocation9_spill]] }
   0xf   :  { %v78_v0 = vld [vmem:[%s5817_s24] sm:$0x3] }
  0x10   :  { %v3870_v1 = vld [vmem:[%s5818_s1] sm:$0xff]  ;;  %v95_v2 = vsel %vm93_vm0, %v78_v0, 0 }
  0x11   :  { %v2907_v3 = vld [vmem:[%s5819_s6 + $0xa8] sm:$0xf]  ;;  %v3909_v4 = vld [vmem:[%s5819_s6 + $0xb0] sm:$0xf0]  ;;  %104 = vmatpush.bf16.msra.mxu0 %v95_v2  ;;  %v3908_v6 = vld [vmem:[%s5819_s6 + $0xac] sm:$0xf] }
  0x12   :  { %v2908_v5 = vor.u32 %v3909_v4, %v2907_v3  ;;  %v2909_v7 = vld [vmem:[%s5819_s6 + $0xb4] sm:$0xf0]  ;;  %v2915_v8 = vld [vmem:[%s5819_s6 + $0xb0] sm:$0xf]  ;;  %v3910_v10 = vld [vmem:[%s5819_s6 + $0xb8] sm:$0xf0] }
  0x13   :  { %v2912_v9 = vor.u32 %v3908_v6, %v2909_v7  ;;  %v2895_v11 = vld [vmem:[%s5819_s6 + $0x90] sm:$0xf]  ;;  %v3906_v12 = vld [vmem:[%s5819_s6 + $0x98] sm:$0xf0]  ;;  %v2916_v13 = vor.u32 %v3910_v10, %v2915_v8  ;;  %v3905_v15 = vld [vmem:[%s5819_s6 + $0x94] sm:$0xf] }
  0x14   :  { %332 = vmatpush.bf16.msra.mxu1 %v2908_v5  ;;  %v2896_v14 = vor.u32 %v3906_v12, %v2895_v11  ;;  %v2897_v16 = vld [vmem:[%s5819_s6 + $0x9c] sm:$0xf0]  ;;  %v2903_v17 = vld [vmem:[%s5819_s6 + $0x98] sm:$0xf]  ;;  %2820 = vmatmul.msk.bf16.vlgmr.msra.gmra.mxu0 %vm89_vm1, %v3870_v1  ;;  %v3907_v19 = vld [vmem:[%s5819_s6 + $0xa0] sm:$0xf0] }
  0x15   :  { %346 = vmatpush.bf16.msra.mxu2 %v2912_v9  ;;  %v2900_v18 = vor.u32 %v3905_v15, %v2897_v16  ;;  %v2883_v20 = vld [vmem:[%s5819_s6 + $0x78] sm:$0xf]  ;;  %v3903_v21 = vld [vmem:[%s5819_s6 + $0x80] sm:$0xf0]  ;;  %360 = vmatpush.bf16.msra.mxu3 %v2916_v13  ;;  %v2904_v22 = vor.u32 %v3907_v19, %v2903_v17  ;;  %v3902_v23 = vld [vmem:[%s5819_s6 + $0x7c] sm:$0xf] }
  0x16   :  { %v2885_v24 = vld [vmem:[%s5819_s6 + $0x84] sm:$0xf0]  ;;  %v2891_v25 = vld [vmem:[%s5819_s6 + $0x80] sm:$0xf]  ;;  %v3904_v26 = vld [vmem:[%s5819_s6 + $0x88] sm:$0xf0]  ;;  %v2884_v28 = vor.u32 %v3903_v21, %v2883_v20 }
  0x17   :  { %v2871_v27 = vld [vmem:[%s5819_s6 + $0x60] sm:$0xf]  ;;  %v3900_v29 = vld [vmem:[%s5819_s6 + $0x68] sm:$0xf0]  ;;  %v3899_v30 = vld [vmem:[%s5819_s6 + $0x64] sm:$0xf]  ;;  %v2888_v32 = vor.u32 %v3902_v23, %v2885_v24  ;;  %v2892_v35 = vor.u32 %v3904_v26, %v2891_v25 }
  0x18   :  { %333 = vmatpush.bf16.msra.mxu1 %v2896_v14  ;;  %v2873_v31 = vld [vmem:[%s5819_s6 + $0x6c] sm:$0xf0]  ;;  %v2879_v33 = vld [vmem:[%s5819_s6 + $0x68] sm:$0xf]  ;;  %v3901_v34 = vld [vmem:[%s5819_s6 + $0x70] sm:$0xf0]  ;;  %v2872_v36 = vor.u32 %v3900_v29, %v2871_v27 }
  0x19   :  { %347 = vmatpush.bf16.msra.mxu2 %v2900_v18  ;;  %361 = vmatpush.bf16.msra.mxu3 %v2904_v22  ;;  %v2876_v37 = vor.u32 %v3899_v30, %v2873_v31  ;;  %v2880_v38 = vor.u32 %v3901_v34, %v2879_v33 }
  0x1c   :  { %334 = vmatpush.bf16.msra.mxu1 %v2884_v28 }
  0x1d   :  { %348 = vmatpush.bf16.msra.mxu2 %v2888_v32  ;;  %362 = vmatpush.bf16.msra.mxu3 %v2892_v35 }
  0x1e   :  { %28 = vsyncpa [#allocation3], 0  ;;  %v2859_v39 = vld [vmem:[%s5819_s6 + $0x48] sm:$0xf]  ;;  %v3897_v40 = vld [vmem:[%s5819_s6 + $0x50] sm:$0xf0] }
  0x1f   :  { %v3896_v41 = vld [vmem:[%s5819_s6 + $0x4c] sm:$0xf]  ;;  %v2860_v42 = vor.u32 %v3897_v40, %v2859_v39  ;;  %v2861_v43 = vld [vmem:[%s5819_s6 + $0x54] sm:$0xf0]  ;;  %v2867_v44 = vld [vmem:[%s5819_s6 + $0x50] sm:$0xf] }
  0x20   :  { %335 = vmatpush.bf16.msra.mxu1 %v2872_v36  ;;  %v3898_v45 = vld [vmem:[%s5819_s6 + $0x58] sm:$0xf0]  ;;  %v2864_v46 = vor.u32 %v3896_v41, %v2861_v43  ;;  %v2847_v48 = vld [vmem:[%s5819_s6 + $0x30] sm:$0xf]  ;;  %v3893_v50 = vld [vmem:[%s5819_s6 + $0x34] sm:$0xf] }
  0x21   :  { %349 = vmatpush.bf16.msra.mxu2 %v2876_v37  ;;  %363 = vmatpush.bf16.msra.mxu3 %v2880_v38  ;;  %v2868_v47 = vor.u32 %v3898_v45, %v2867_v44  ;;  %v3894_v49 = vld [vmem:[%s5819_s6 + $0x38] sm:$0xf0]  ;;  %v2849_v52 = vld [vmem:[%s5819_s6 + $0x3c] sm:$0xf0]  ;;  %v2855_v53 = vld [vmem:[%s5819_s6 + $0x38] sm:$0xf] }
  0x22   :  { %v2848_v51 = vor.u32 %v3894_v49, %v2847_v48  ;;  %v3895_v54 = vld [vmem:[%s5819_s6 + $0x40] sm:$0xf0]  ;;  %v2852_v55 = vor.u32 %v3893_v50, %v2849_v52  ;;  %v2835_v57 = vld [vmem:[%s5819_s6 + $0x18] sm:$0xf]  ;;  %v3890_v59 = vld [vmem:[%s5819_s6 + $0x1c] sm:$0xf] }
  0x23   :  { %v2856_v56 = vor.u32 %v3895_v54, %v2855_v53  ;;  %v3891_v58 = vld [vmem:[%s5819_s6 + $0x20] sm:$0xf0]  ;;  %v2837_v61 = vld [vmem:[%s5819_s6 + $0x24] sm:$0xf0]  ;;  %v2843_v62 = vld [vmem:[%s5819_s6 + $0x20] sm:$0xf] }
  0x24   :  { %336 = vmatpush.bf16.msra.mxu1 %v2860_v42  ;;  %v2836_v60 = vor.u32 %v3891_v58, %v2835_v57  ;;  %v3892_v63 = vld [vmem:[%s5819_s6 + $0x28] sm:$0xf0]  ;;  %v2840_v0 = vor.u32 %v3890_v59, %v2837_v61  ;;  %v2823_v2 = vld [vmem:[%s5819_s6] sm:$0xf]  ;;  %v3887_v4 = vld [vmem:[%s5819_s6 + $0x4] sm:$0xf] }
  0x25   :  { %350 = vmatpush.bf16.msra.mxu2 %v2864_v46  ;;  %364 = vmatpush.bf16.msra.mxu3 %v2868_v47  ;;  %v2844_v1 = vor.u32 %v3892_v63, %v2843_v62  ;;  %v3888_v3 = vld [vmem:[%s5819_s6 + $0x8] sm:$0xf0]  ;;  %v2825_v6 = vld [vmem:[%s5819_s6 + $0xc] sm:$0xf0]  ;;  %v2831_v7 = vld [vmem:[%s5819_s6 + $0x8] sm:$0xf] }
  0x26   :  { %v2824_v5 = vor.u32 %v3888_v3, %v2823_v2  ;;  %v3889_v8 = vld [vmem:[%s5819_s6 + $0x10] sm:$0xf0]  ;;  %v2828_v9 = vor.u32 %v3887_v4, %v2825_v6  ;;  %s5820_s26 = sld [smem:[#allocation8_spill]]  ;;  %v3871_v33 = vld [vmem:[%s5799_s18] sm:$0xff]  ;;  %vm416_vm2 = vcmask 130048   ;;  %v3872_v34 = vld [vmem:[%s5799_s18 + $0x8] sm:$0xff] }
  0x27   :  { %v2832_v10 = vor.u32 %v3889_v8, %v2831_v7  ;;  %s5821_s7 = sld [smem:[#allocation6_spill]]  ;;  %v3873_v35 = vld [vmem:[%s5799_s18 + $0x10] sm:$0xff]  ;;  %v3874_v36 = vld [vmem:[%s5799_s18 + $0x18] sm:$0xff]  ;;  %v3875_v37 = vld [vmem:[%s5799_s18 + $0x20] sm:$0xff] }
  0x28   :  { %337 = vmatpush.bf16.msra.mxu1 %v2848_v51  ;;  %s5822_s3 = sld [smem:[#allocation10_spill]]  ;;  %v3876_v38 = vld [vmem:[%s5799_s18 + $0x28] sm:$0xff]  ;;  %v3877_v39 = vld [vmem:[%s5799_s18 + $0x30] sm:$0xff]  ;;  %v3878_v40 = vld [vmem:[%s5799_s18 + $0x38] sm:$0xff] }
  0x29   :  { %351 = vmatpush.bf16.msra.mxu2 %v2852_v55  ;;  %365 = vmatpush.bf16.msra.mxu3 %v2856_v56  ;;  %v4532_v48 = vld [vmem:[%s5800_s19 + $0x30] sm:$0xff]  ;;  %v4537_v49 = vld [vmem:[%s5800_s19 + $0x38] sm:$0xff]  ;;  %v4544_v55 = vld [vmem:[%s5800_s19 + $0x40] sm:$0xff]  ;;  %s5823_s5 = sld [smem:[#allocation11_spill]] }
  0x2a   :  { %v4549_v56 = vld [vmem:[%s5800_s19 + $0x48] sm:$0xff]  ;;  %v4556_v2 = vld [vmem:[%s5800_s19 + $0x70] sm:$0xff]  ;;  %v4561_v3 = vld [vmem:[%s5800_s19 + $0x78] sm:$0xff] }
  0x2b   :  { %v4568_v8 = vld [vmem:[%s5800_s19 + $0x68] sm:$0xff] }
  0x2c   :  { %338 = vmatpush.bf16.msra.mxu1 %v2836_v60  ;;  %v4089_v12 = vld [vmem:[%s5820_s26] ss:$0 sm:$0xff] }
  0x2d   :  { %352 = vmatpush.bf16.msra.mxu2 %v2840_v0  ;;  %366 = vmatpush.bf16.msra.mxu3 %v2844_v1  ;;  %v79_v14 = vld [vmem:[%s5821_s7] sm:$0xff]  ;;  %s5824_s7 = sld [smem:[#allocation12_spill]] }
  0x2e   :  { %v4485_v22 = vld [vmem:[%s5822_s3] sm:$0x7] }
  0x2f   :  { %v199_v23 = vperm.slane %v4485_v22, 1  ;;  %v200_v24 = vperm.slane %v4485_v22, 2 }
  0x30   :  { %339 = vmatpush.bf16.msra.mxu1 %v2824_v5 }
  0x31   :  { %353 = vmatpush.bf16.msra.mxu2 %v2828_v9  ;;  %367 = vmatpush.bf16.msra.mxu3 %v2832_v10  ;;  %v4573_v9 = vld [vmem:[%s5800_s19 + $0x60] sm:$0xff] }
  0x91   :  { %v106_v11 = vpop.f32.mrf.mxu0 }
  0x92   :  { %v107_v13 = vadd.f32 %v4089_v12, %v106_v11 }
  0x94   :  { %v4476_v17 = vadd.f32 %v107_v13, %v79_v14  ;;  %v4580_v13 = vld [vmem:[%s5800_s19 + $0x58] sm:$0xff] }
  0x99   :  { %v108_v15 = vpop.f32.mrf.mxu0 }
  0x9a   :  { %v109_v16 = vadd.f32 %v4089_v12, %v108_v15 }
  0x9c   :  { %v4478_v18 = vadd.f32 %v109_v16, %v79_v14  ;;  %v4585_v14 = vld [vmem:[%s5800_s19 + $0x50] sm:$0xff] }
  0x9e   :  { %v163_v19 = vpack.c.bf16 %v4478_v18, %v4476_v17 }
  0xa0   :  { %340 = vmatmul.bf16.vlgmr.msra.gmra.mxu1 %v163_v19  ;;  %354 = vmatmul.bf16.vlgmr.msra.gmra.mxu2 %v163_v19 }
  0xa1   :  { %368 = vmatmul.bf16.vlgmr.msra.gmra.mxu3 %v163_v19 }
 0x123   :  { %v355_v20 = vpop.f32.mrf.mxu2 }
 0x124   :  { %v369_v21 = vpop.f32.mrf.mxu3  ;;  %v356_v26 = vadd.f32 %v355_v20, %v199_v23  ;;  %v4592_v20 = vld [vmem:[%s5800_s19 + $0x28] sm:$0xff] }
 0x125   :  { %v370_v29 = vadd.f32 %v369_v21, %v200_v24  ;;  %v4597_v21 = vld [vmem:[%s5800_s19 + $0x20] sm:$0xff] }
 0x12b   :  { %v357_v25 = vpop.f32.mrf.mxu2 }
 0x12c   :  { %v358_v27 = vadd.f32 %v357_v25, %v199_v23  ;;  %v371_v28 = vpop.f32.mrf.mxu3 }
 0x12d   :  { %v372_v30 = vadd.f32 %v371_v28, %v200_v24 }
 0x12e   :  { %v374_v31 = vpack.c.bf16 %v358_v27, %v356_v26  ;;  %v4604_v26 = vld [vmem:[%s5800_s19 + $0x18] sm:$0xff]  ;;  %v4609_v27 = vld [vmem:[%s5800_s19 + $0x10] sm:$0xff] }
 0x12f   :  { %v375_v32 = vpack.c.bf16 %v372_v30, %v370_v29  ;;  %v341_v29 = vpop.f32.mrf.mxu1 }
 0x130   :  { %448 = vmatpush.bf16.msrb.mxu0 %v374_v31 }
 0x131   :  { %497 = vmatpush.bf16.msrb.mxu1 %v375_v32  ;;  %v4616_v32 = vld [vmem:[%s5800_s19 + $0x8] sm:$0xff] }
 0x133   :  { %2949 = vmatmul.msk.bf16.vlgmr.msrb.gmra.mxu0 %vm416_vm2, %v3871_v33 }
 0x134   :  { %2957 = vmatmul.msk.bf16.vlgmr.msrb.gmra.mxu1 %vm416_vm2, %v3871_v33  ;;  %v4621_v33 = vld [vmem:[%s5800_s19] sm:$0xff] }
 0x143   :  { %2950 = vmatmul.msk.bf16.gmra.mxu0 %vm416_vm2, %v3872_v34 }
 0x144   :  { %2958 = vmatmul.msk.bf16.gmra.mxu1 %vm416_vm2, %v3872_v34 }
 0x153   :  { %2951 = vmatmul.msk.bf16.gmra.mxu0 %vm416_vm2, %v3873_v35 }
 0x154   :  { %2959 = vmatmul.msk.bf16.gmra.mxu1 %vm416_vm2, %v3873_v35 }
 0x163   :  { %2952 = vmatmul.msk.bf16.gmra.mxu0 %vm416_vm2, %v3874_v36 }
 0x164   :  { %2960 = vmatmul.msk.bf16.gmra.mxu1 %vm416_vm2, %v3874_v36  ;;  %v343_v36 = vpop.f32.mrf.mxu1 }
 0x173   :  { %2953 = vmatmul.msk.bf16.gmra.mxu0 %vm416_vm2, %v3875_v37 }
 0x174   :  { %2961 = vmatmul.msk.bf16.gmra.mxu1 %vm416_vm2, %v3875_v37 }
 0x183   :  { %2954 = vmatmul.msk.bf16.gmra.mxu0 %vm416_vm2, %v3876_v38 }
 0x184   :  { %2962 = vmatmul.msk.bf16.gmra.mxu1 %vm416_vm2, %v3876_v38  ;;  %v198_v38 = vperm.slane %v4485_v22, 0 }
 0x193   :  { %2955 = vmatmul.msk.bf16.gmra.mxu0 %vm416_vm2, %v3877_v39 }
 0x194   :  { %2963 = vmatmul.msk.bf16.gmra.mxu1 %vm416_vm2, %v3877_v39  ;;  %v344_v39 = vadd.f32 %v343_v36, %v198_v38 }
 0x1a3   :  { %2956 = vmatmul.msk.bf16.gmra.mxu0 %vm416_vm2, %v3878_v40 }
 0x1a4   :  { %2964 = vmatmul.msk.bf16.gmra.mxu1 %vm416_vm2, %v3878_v40  ;;  %v342_v40 = vadd.f32 %v341_v29, %v198_v38 }
 0x1b0   :  { %v450_v41 = vpop.f32.mrf.mxu0 }
 0x1b1   :  { %v539_v35 = vmul.f32 %v450_v41, %v4621_v33  ;;  %v161_v41 = vld [vmem:[%s5802_s21] sm:$0xff] }
 0x1b8   :  { %v452_v42 = vpop.f32.mrf.mxu0 }
 0x1b9   :  { %v540_v34 = vmul.f32 %v452_v42, %v4616_v32 }
 0x1bb   :  { %v555_v37 = vpack.c.bf16 %v540_v34, %v539_v35 }
 0x1c0   :  { %v455_v43 = vpop.f32.mrf.mxu0 }
 0x1c1   :  { %v541_v30 = vmul.f32 %v455_v43, %v4609_v27  ;;  %v587_v43 = vpack.c.bf16 %v344_v39, %v342_v40 }
 0x1c8   :  { %v457_v44 = vpop.f32.mrf.mxu0 }
 0x1c9   :  { %v542_v28 = vmul.f32 %v457_v44, %v4604_v26  ;;  %v4626_v44 = vpop.f32.mrf.mxu1 }
 0x1cb   :  { %v556_v31 = vpack.c.bf16 %v542_v28, %v541_v30 }
 0x1d0   :  { %v460_v45 = vpop.f32.mrf.mxu0 }
 0x1d1   :  { %v543_v24 = vmul.f32 %v460_v45, %v4597_v21  ;;  %v4628_v45 = vpop.f32.mrf.mxu1 }
 0x1d8   :  { %v462_v46 = vpop.f32.mrf.mxu0 }
 0x1d9   :  { %v544_v23 = vmul.f32 %v462_v46, %v4592_v20  ;;  %v504_v46 = vpop.f32.mrf.mxu1 }
 0x1db   :  { %v557_v25 = vpack.c.bf16 %v544_v23, %v543_v24 }
 0x1e0   :  { %v465_v47 = vpop.f32.mrf.mxu0 }
 0x1e1   :  { %v545_v51 = vmul.f32 %v465_v47, %v4532_v48  ;;  %v506_v47 = vpop.f32.mrf.mxu1 }
 0x1e8   :  { %v467_v50 = vpop.f32.mrf.mxu0 }
 0x1e9   :  { %v546_v52 = vmul.f32 %v467_v50, %v4537_v49  ;;  %v509_v50 = vpop.f32.mrf.mxu1 }
 0x1eb   :  { %v558_v53 = vpack.c.bf16 %v546_v52, %v545_v51 }
 0x1f0   :  { %v470_v54 = vpop.f32.mrf.mxu0 }
 0x1f1   :  { %v547_v58 = vmul.f32 %v470_v54, %v4544_v55  ;;  %v511_v51 = vpop.f32.mrf.mxu1 }
 0x1f8   :  { %v472_v57 = vpop.f32.mrf.mxu0 }
 0x1f9   :  { %v548_v59 = vmul.f32 %v472_v57, %v4549_v56  ;;  %v162_v57 = vld [vmem:[%s5802_s21 + $0x8] sm:$0xff] }
 0x1fb   :  { %v559_v60 = vpack.c.bf16 %v548_v59, %v547_v58 }
 0x200   :  { %v475_v61 = vpop.f32.mrf.mxu0 }
 0x201   :  { %v549_v16 = vmul.f32 %v475_v61, %v4585_v14 }
 0x208   :  { %v477_v62 = vpop.f32.mrf.mxu0 }
 0x209   :  { %v550_v15 = vmul.f32 %v477_v62, %v4580_v13  ;;  %v3886_v62 = vld [vmem:[%s5801_s20 + $0x38] sm:$0xff] }
 0x20a   :  { %665 = vmatpush.bf16.msrb.mxu3 %v3886_v62  ;;  %v3913_v62 = vld [vmem:[%s5823_s5 + $0x10] sm:$0xff] }
 0x20b   :  { %v560_v19 = vpack.c.bf16 %v550_v15, %v549_v16 }
 0x210   :  { %v480_v63 = vpop.f32.mrf.mxu0 }
 0x211   :  { %v551_v11 = vmul.f32 %v480_v63, %v4573_v9  ;;  %v3885_v63 = vld [vmem:[%s5801_s20 + $0x30] sm:$0xff] }
 0x212   :  { %666 = vmatpush.bf16.msrb.mxu3 %v3885_v63  ;;  %v3912_v63 = vld [vmem:[%s5823_s5 + $0x8] sm:$0xff] }
 0x218   :  { %v482_v0 = vpop.f32.mrf.mxu0 }
 0x219   :  { %v552_v10 = vmul.f32 %v482_v0, %v4568_v8 }
 0x21b   :  { %v561_v12 = vpack.c.bf16 %v552_v10, %v551_v11  ;;  %v3880_v11 = vld [vmem:[%s5801_s20 + $0x8] sm:$0xff] }
 0x220   :  { %v485_v1 = vpop.f32.mrf.mxu0 }
 0x221   :  { %v553_v5 = vmul.f32 %v485_v1, %v4556_v2  ;;  %v3884_v1 = vld [vmem:[%s5801_s20 + $0x28] sm:$0xff] }
 0x222   :  { %667 = vmatpush.bf16.msrb.mxu3 %v3884_v1 }
 0x228   :  { %v487_v4 = vpop.f32.mrf.mxu0 }
 0x229   :  { %v554_v6 = vmul.f32 %v487_v4, %v4561_v3  ;;  %v3883_v4 = vld [vmem:[%s5801_s20 + $0x20] sm:$0xff] }
 0x22a   :  { %668 = vmatpush.bf16.msrb.mxu3 %v3883_v4 }
 0x22b   :  { %v562_v7 = vpack.c.bf16 %v554_v6, %v553_v5  ;;  %v3882_v6 = vld [vmem:[%s5801_s20 + $0x18] sm:$0xff] }
 0x22d   :  { %588 = vmatpush.bf16.xpose.msrb.mxu2 %v562_v7  ;;  %v3881_v7 = vld [vmem:[%s5801_s20 + $0x10] sm:$0xff] }
 0x22e   :  { %669 = vmatpush.bf16.msrb.mxu3 %v3882_v6  ;;  %v4090_v6 = vld [vmem:[%s5824_s7] ss:$0 sm:$0xff] }
 0x232   :  { %670 = vmatpush.bf16.msrb.mxu3 %v3881_v7 }
 0x235   :  { %589 = vmatpush.bf16.xpose.msrb.mxu2 %v561_v12  ;;  %v3879_v12 = vld [vmem:[%s5801_s20] sm:$0xff] }
 0x236   :  { %671 = vmatpush.bf16.msrb.mxu3 %v3880_v11 }
 0x23a   :  { %672 = vmatpush.bf16.msrb.mxu3 %v3879_v12 }
 0x23d   :  { %590 = vmatpush.bf16.xpose.msrb.mxu2 %v560_v19 }
 0x245   :  { %591 = vmatpush.bf16.xpose.msrb.mxu2 %v559_v60 }
 0x24d   :  { %592 = vmatpush.bf16.xpose.msrb.mxu2 %v558_v53  ;;  %v514_v53 = vpop.f32.mrf.mxu1 }
 0x255   :  { %593 = vmatpush.bf16.xpose.msrb.mxu2 %v557_v25  ;;  %v516_v60 = vpop.f32.mrf.mxu1 }
 0x25d   :  { %594 = vmatpush.bf16.xpose.msrb.mxu2 %v556_v31  ;;  %v519_v61 = vpop.f32.mrf.mxu1 }
 0x25e   :  { %v571_v36 = vmul.f32 %v519_v61, %v4544_v55  ;;  %v566_v55 = vmul.f32 %v506_v47, %v4604_v26 }
 0x265   :  { %595 = vmatpush.bf16.xpose.msrb.mxu2 %v555_v37  ;;  %v521_v0 = vpop.f32.mrf.mxu1 }
 0x266   :  { %v572_v37 = vmul.f32 %v521_v0, %v4549_v56  ;;  %v563_v56 = vmul.f32 %v4626_v44, %v4621_v33  ;;  %v3911_v0 = vld [vmem:[%s5823_s5] sm:$0xff] }
 0x26c   :  { %596 = vmatmul.bf16.vlgmr.msrb.gmra.mxu2 %v587_v43 }
 0x26d   :  { %v524_v5 = vpop.f32.mrf.mxu1 }
 0x26e   :  { %v573_v31 = vmul.f32 %v524_v5, %v4585_v14  ;;  %v568_v14 = vmul.f32 %v511_v51, %v4592_v20  ;;  %v3916_v51 = vld [vmem:[%s5823_s5 + $0x28] sm:$0xff] }
 0x275   :  { %v526_v10 = vpop.f32.mrf.mxu1 }
 0x276   :  { %v574_v34 = vmul.f32 %v526_v10, %v4580_v13  ;;  %v565_v13 = vmul.f32 %v504_v46, %v4609_v27 }
 0x278   :  { %v584_v38 = vpack.c.bf16 %v574_v34, %v573_v31  ;;  %v3949_v31 = vld [vmem:[%s5789_s8 + $0xec] sm:$0xf0] }
 0x27d   :  { %v529_v15 = vpop.f32.mrf.mxu1 }
 0x27e   :  { %v575_v25 = vmul.f32 %v529_v15, %v4573_v9  ;;  %v570_v9 = vmul.f32 %v516_v60, %v4537_v49  ;;  %v580_v49 = vpack.c.bf16 %v566_v55, %v565_v13  ;;  %v3097_v13 = vld [vmem:[%s5789_s8 + $0x90] sm:$0xf0] }
 0x285   :  { %v531_v16 = vpop.f32.mrf.mxu1 }
 0x286   :  { %v576_v28 = vmul.f32 %v531_v16, %v4568_v8  ;;  %v583_v8 = vpack.c.bf16 %v572_v37, %v571_v36  ;;  %v3127_v37 = vld [vmem:[%s5789_s8 + $0xc0] sm:$0xf] }
 0x288   :  { %v585_v35 = vpack.c.bf16 %v576_v28, %v575_v25  ;;  %v3947_v25 = vld [vmem:[%s5789_s8 + $0xe4] sm:$0xf]  ;;  %v3145_v28 = vld [vmem:[%s5789_s8 + $0xf0] sm:$0xf0] }
 0x28d   :  { %v534_v19 = vpop.f32.mrf.mxu1 }
 0x28e   :  { %v577_v23 = vmul.f32 %v534_v19, %v4556_v2  ;;  %v569_v2 = vmul.f32 %v514_v53, %v4532_v48  ;;  %v564_v48 = vmul.f32 %v4628_v45, %v4616_v32  ;;  %v3918_v32 = vld [vmem:[%s5823_s5 + $0x38] sm:$0xff]  ;;  %v3917_v45 = vld [vmem:[%s5823_s5 + $0x30] sm:$0xff]  ;;  %v4197_v19 = vmov 128.0  }
 0x28f   :  { %769 = vmatpush.bf16.msra.mxu2 %v3918_v32  ;;  %v3937_v32 = vld [vmem:[%s5789_s8 + $0x8c] sm:$0xf0] }
 0x290   :  { %v582_v39 = vpack.c.bf16 %v570_v9, %v569_v2  ;;  %v579_v43 = vpack.c.bf16 %v564_v48, %v563_v56  ;;  %v3939_v2 = vld [vmem:[%s5789_s8 + $0xa4] sm:$0xf]  ;;  %v3113_v9 = vld [vmem:[%s5789_s8 + $0xb0] sm:$0xf0] }
 0x293   :  { %770 = vmatpush.bf16.msra.mxu2 %v3917_v45 }
 0x295   :  { %v536_v24 = vpop.f32.mrf.mxu1 }
 0x296   :  { %v578_v29 = vmul.f32 %v536_v24, %v4561_v3  ;;  %v567_v3 = vmul.f32 %v509_v50, %v4597_v21 }
 0x297   :  { %771 = vmatpush.bf16.msra.mxu2 %v3916_v51  ;;  %v3151_v51 = vld [vmem:[%s5789_s8 + $0xe8] sm:$0xf] }
 0x298   :  { %v586_v30 = vpack.c.bf16 %v578_v29, %v577_v23  ;;  %v581_v40 = vpack.c.bf16 %v568_v14, %v567_v3  ;;  %v3148_v29 = vor.u32 %v3947_v25, %v3145_v28  ;;  %v3116_v14 = vor.u32 %v3939_v2, %v3113_v9  ;;  %v3934_v25 = vld [vmem:[%s5789_s8 + $0x74] sm:$0xf0]  ;;  %v3948_v28 = vld [vmem:[%s5789_s8 + $0xec] sm:$0xf] }
 0x29a   :  { %686 = vmatpush.bf16.msra.mxu3 %v586_v30  ;;  %v3143_v30 = vld [vmem:[%s5789_s8 + $0xe0] sm:$0xf]  ;;  %1061 = vmatpush.bf16.msra.mxu0 %v3148_v29 }
 0x29b   :  { %v3144_v36 = vor.u32 %v3949_v31, %v3143_v30  ;;  %v3927_v30 = vld [vmem:[%s5789_s8 + $0x44] sm:$0xf]  ;;  %v3065_v31 = vld [vmem:[%s5789_s8 + $0x50] sm:$0xf0] }
 0x29e   :  { %687 = vmatpush.bf16.msra.mxu3 %v585_v35 }
 0x2a2   :  { %688 = vmatpush.bf16.msra.mxu3 %v584_v38  ;;  %v3945_v38 = vld [vmem:[%s5789_s8 + $0xcc] sm:$0xf0] }
 0x2a6   :  { %689 = vmatpush.bf16.msra.mxu3 %v583_v8  ;;  %v3128_v8 = vor.u32 %v3945_v38, %v3127_v37  ;;  %v3944_v37 = vld [vmem:[%s5789_s8 + $0xcc] sm:$0xf]  ;;  %v3137_v38 = vld [vmem:[%s5789_s8 + $0xd8] sm:$0xf0] }
 0x2a7   :  { %v3140_v9 = vor.u32 %v3944_v37, %v3137_v38  ;;  %v3956_v37 = vld [vmem:[%s5791_s10 + $0x28] sm:$0xff] }
 0x2aa   :  { %690 = vmatpush.bf16.msra.mxu3 %v582_v39  ;;  %v3935_v39 = vld [vmem:[%s5789_s8 + $0x84] sm:$0xf] }
 0x2ae   :  { %691 = vmatpush.bf16.msra.mxu3 %v581_v40  ;;  %v3100_v40 = vor.u32 %v3935_v39, %v3097_v13  ;;  %v3926_v13 = vld [vmem:[%s5789_s8 + $0x34] sm:$0xf0] }
 0x2b2   :  { %692 = vmatpush.bf16.msra.mxu3 %v580_v49 }
 0x2b6   :  { %693 = vmatpush.bf16.msra.mxu3 %v579_v43 }
 0x2ef   :  { %v597_v42 = vpop.f32.mrf.mxu2 }
 0x2f0   :  { %v602_v52 = vmul.f32 0.25, %v597_v42 }
 0x2f2   :  { %v4633_v22 = vadd.f32 %v602_v52, %v161_v41  ;;  %v3915_v41 = vld [vmem:[%s5823_s5 + $0x20] sm:$0xff]  ;;  %v3914_v52 = vld [vmem:[%s5823_s5 + $0x18] sm:$0xff] }
 0x2f3   :  { %772 = vmatpush.bf16.msra.mxu2 %v3915_v41 }
 0x2f4   :  { %606 = vmax.xlane.f32.xlu0 %v4633_v22 }
 0x2f7   :  { %v599_v54 = vpop.f32.mrf.mxu2  ;;  %773 = vmatpush.bf16.msra.mxu2 %v3914_v52  ;;  %v3079_v52 = vld [vmem:[%s5789_s8 + $0x60] sm:$0xf] }
 0x2f8   :  { %v603_v58 = vmul.f32 0.25, %v599_v54 }
 0x2fa   :  { %v4639_v59 = vadd.f32 %v603_v58, %v162_v57 }
 0x2fb   :  { %774 = vmatpush.bf16.msra.mxu2 %v3913_v62  ;;  %v3119_v62 = vld [vmem:[%s5789_s8 + $0xa8] sm:$0xf] }
 0x2fc   :  { %608 = vmax.xlane.f32.xlu0 %v4639_v59 }
 0x2ff   :  { %775 = vmatpush.bf16.msra.mxu2 %v3912_v63  ;;  %v3942_v63 = vld [vmem:[%s5789_s8 + $0xb4] sm:$0xf0] }
 0x303   :  { %776 = vmatpush.bf16.msra.mxu2 %v3911_v0  ;;  %v3120_v0 = vor.u32 %v3942_v63, %v3119_v62  ;;  %v3924_v62 = vld [vmem:[%s5789_s8 + $0x2c] sm:$0xf]  ;;  %v3057_v63 = vld [vmem:[%s5789_s8 + $0x38] sm:$0xf0] }
 0x367   :  { %v607_v20 = vpop.xlane.xlu0 %606 }
 0x368   :  { %v610_v21 = vsub.f32 %v4633_v22, %v607_v20 }
 0x36a   :  { %v612_v50 = vmul.f32 1.442695, %v610_v21 }
 0x36c   :  { %4103 = vpow2.f32 %v612_v50 }
 0x36f   :  { %v609_v27 = vpop.xlane.xlu0 %608 }
 0x370   :  { %v611_v26 = vsub.f32 %v4639_v59, %v609_v27 }
 0x372   :  { %v614_v46 = vmul.f32 1.442695, %v611_v26  ;;  %v4104_v47 = vpop.eup %4103 }
 0x374   :  { %4105 = vpow2.f32 %v614_v46  ;;  %v3111_v46 = vld [vmem:[%s5789_s8 + $0xa0] sm:$0xf] }
 0x37a   :  { %v4106_v33 = vpop.eup %4105 }
 0x37b   :  { %v616_v44 = vpack.c.bf16 %v4106_v33, %v4104_v47 }
 0x37d   :  { %673 = vmatmul.bf16.vlgmr.msrb.gmra.mxu3 %v616_v44  ;;  %v3095_v44 = vld [vmem:[%s5789_s8 + $0x80] sm:$0xf] }
 0x37e   :  { %1047 = vmatpush.bf16.msrb.mxu3 %v3144_v36  ;;  %v3096_v45 = vor.u32 %v3937_v32, %v3095_v44  ;;  %v3930_v36 = vld [vmem:[%s5789_s8 + $0x54] sm:$0xf0]  ;;  %v3936_v44 = vld [vmem:[%s5789_s8 + $0x8c] sm:$0xf]  ;;  %v3105_v32 = vld [vmem:[%s5789_s8 + $0x98] sm:$0xf0] }
 0x382   :  { %1048 = vmatpush.bf16.msrb.mxu3 %v3128_v8  ;;  %v3923_v8 = vld [vmem:[%s5789_s8 + $0x24] sm:$0xf] }
 0x400   :  { %v674_v42 = vpop.f32.mrf.mxu3 }
 0x401   :  { %v679_v22 = vmax.f32 %v674_v42, 1e-20  ;;  %v3950_v42 = vld [vmem:[%s5789_s8 + $0xf4] sm:$0xf0] }
 0x402   :  { %v3152_v41 = vor.u32 %v3950_v42, %v3151_v51  ;;  %v3108_v51 = vor.u32 %v3936_v44, %v3105_v32  ;;  %v3981_v44 = vld [vmem:[%s5791_s10 + $0xf0] sm:$0xff]  ;;  %v3959_v32 = vld [vmem:[%s5791_s10 + $0x40] sm:$0xff] }
 0x403   :  { %4107 = vrcp.f32 %v679_v22  ;;  %v3933_v22 = vld [vmem:[%s5789_s8 + $0x6c] sm:$0xf0] }
 0x404   :  { %1075 = vmatpush.bf16.msrb.mxu2 %v3152_v41  ;;  %v3932_v41 = vld [vmem:[%s5789_s8 + $0x6c] sm:$0xf] }
 0x408   :  { %v676_v53 = vpop.f32.mrf.mxu3 }
 0x409   :  { %v680_v54 = vmax.f32 %v676_v53, 1e-20  ;;  %v4108_v57 = vpop.eup %4107  ;;  %v3080_v53 = vor.u32 %v3933_v22, %v3079_v52  ;;  %v3089_v52 = vld [vmem:[%s5789_s8 + $0x78] sm:$0xf0] }
 0x40a   :  { %v683_v59 = vmul.f32 %v4108_v57, %v4104_v47  ;;  %v3941_v47 = vld [vmem:[%s5789_s8 + $0xac] sm:$0xf0]  ;;  %v3946_v57 = vld [vmem:[%s5789_s8 + $0xd4] sm:$0xf0]  ;;  %v3092_v22 = vor.u32 %v3932_v41, %v3089_v52  ;;  %v3951_v41 = vld [vmem:[%s5791_s10] sm:$0xff] }
 0x40b   :  { %4109 = vrcp.f32 %v680_v54  ;;  %v3135_v54 = vld [vmem:[%s5789_s8 + $0xc8] sm:$0xf]  ;;  %v3967_v52 = vld [vmem:[%s5791_s10 + $0x80] sm:$0xff] }
 0x40c   :  { %4111 = vrcp.f32 %v4197_v19 }
 0x411   :  { %v4110_v58 = vpop.eup %4109 }
 0x412   :  { %v684_v60 = vmul.f32 %v4110_v58, %v4106_v33  ;;  %v4112_v23 = vpop.eup %4111  ;;  %v3112_v33 = vor.u32 %v3941_v47, %v3111_v46  ;;  %v3136_v58 = vor.u32 %v3946_v57, %v3135_v54  ;;  %v3928_v54 = vld [vmem:[%s5789_s8 + $0x4c] sm:$0xf]  ;;  %v3073_v57 = vld [vmem:[%s5789_s8 + $0x58] sm:$0xf0] }
 0x413   :  { %v792_v24 = vmul.f32 128.0, %v4112_v23  ;;  %vm796_vm3 = vweird.f32 %v4112_v23 }
 0x414   :  { %v685_v61 = vpack.c.bf16 %v684_v60, %v683_v59  ;;  %1049 = vmatpush.bf16.msrb.mxu3 %v3112_v33  ;;  %1076 = vmatpush.bf16.msrb.mxu2 %v3136_v58  ;;  %v3063_v59 = vld [vmem:[%s5789_s8 + $0x40] sm:$0xf]  ;;  %v3929_v60 = vld [vmem:[%s5789_s8 + $0x4c] sm:$0xf0]  ;;  %v3922_v33 = vld [vmem:[%s5789_s8 + $0x14] sm:$0xf0] }
 0x415   :  { %v793_v34 = vsub.f32 1.0, %v792_v24 }
 0x416   :  { %694 = vmatmul.bf16.vlgmr.msra.gmra.mxu3 %v685_v61  ;;  %v3064_v61 = vor.u32 %v3929_v60, %v3063_v59  ;;  %v3076_v59 = vor.u32 %v3928_v54, %v3073_v57  ;;  %v3977_v54 = vld [vmem:[%s5791_s10 + $0xd0] sm:$0xff]  ;;  %v3976_v57 = vld [vmem:[%s5791_s10 + $0xc8] sm:$0xff] }
 0x417   :  { %v794_v3 = vmul.f32 %v4112_v23, %v793_v34  ;;  %v3071_v34 = vld [vmem:[%s5789_s8 + $0x48] sm:$0xf] }
 0x418   :  { %1050 = vmatpush.bf16.msrb.mxu3 %v3096_v45  ;;  %1077 = vmatpush.bf16.msrb.mxu2 %v3120_v0  ;;  %v3072_v2 = vor.u32 %v3930_v36, %v3071_v34  ;;  %v4091_v34 = vld [vmem:[%s5793_s12] ss:$0 sm:$0xff] }
 0x419   :  { %v795_v55 = vadd.f32 %v4112_v23, %v794_v3  ;;  %v3049_v3 = vld [vmem:[%s5789_s8 + $0x30] sm:$0xf0] }
 0x41a   :  { %v3052_v39 = vor.u32 %v3923_v8, %v3049_v3  ;;  %v4092_v8 = vld [vmem:[%s5794_s13] ss:$0 sm:$0xff]  ;;  %v3972_v3 = vld [vmem:[%s5791_s10 + $0xa8] sm:$0xff] }
 0x41b   :  { %v4751_v56 = vsel %vm796_vm3, %v4112_v23, %v795_v55  ;;  %v3087_v23 = vld [vmem:[%s5789_s8 + $0x68] sm:$0xf]  ;;  %v3940_v55 = vld [vmem:[%s5789_s8 + $0xac] sm:$0xf] }
 0x41c   :  { %1051 = vmatpush.bf16.msrb.mxu3 %v3080_v53  ;;  %v3088_v29 = vor.u32 %v3934_v25, %v3087_v23  ;;  %v3958_v23 = vld [vmem:[%s5791_s10 + $0x38] sm:$0xff] }
 0x41d   :  { %1375 = vmatpush.bf16.msra.mxu1 %v3958_v23 }
 0x420   :  { %1052 = vmatpush.bf16.msrb.mxu3 %v3064_v61 }
 0x499   :  { %v695_v1 = vpop.f32.mrf.mxu3 }
 0x4a1   :  { %v697_v4 = vpop.f32.mrf.mxu3 }
 0x4a2   :  { %v700_v5 = vpack.c.bf16 %v697_v4, %v695_v1  ;;  %v3047_v1 = vld [vmem:[%s5789_s8 + $0x20] sm:$0xf]  ;;  %v3925_v4 = vld [vmem:[%s5789_s8 + $0x2c] sm:$0xf0] }
 0x4a4   :  { %777 = vmatmul.bf16.vlgmr.msra.gmra.mxu2 %v700_v5  ;;  %v3048_v5 = vor.u32 %v3925_v4, %v3047_v1  ;;  %v3060_v4 = vor.u32 %v3924_v62, %v3057_v63 }
 0x4a6   :  { %1053 = vmatpush.bf16.msrb.mxu3 %v3048_v5  ;;  %v3920_v5 = vld [vmem:[%s5789_s8 + $0xc] sm:$0xf] }
 0x527   :  { %v778_v7 = vpop.f32.mrf.mxu2 }
 0x528   :  { %v779_v10 = vadd.f32 %v4090_v6, %v778_v7  ;;  %v3938_v7 = vld [vmem:[%s5789_s8 + $0x94] sm:$0xf0] }
 0x52a   :  { %v783_v11 = vadd.f32 %v779_v10, %v4476_v17  ;;  %v3943_v17 = vld [vmem:[%s5789_s8 + $0xc4] sm:$0xf] }
 0x52c   :  { %787 = vadd.xlane.f32.xlu1 %v783_v11 }
 0x52f   :  { %v780_v12 = vpop.f32.mrf.mxu2 }
 0x530   :  { %v781_v15 = vadd.f32 %v4090_v6, %v780_v12  ;;  %v3103_v6 = vld [vmem:[%s5789_s8 + $0x88] sm:$0xf]  ;;  %v3921_v12 = vld [vmem:[%s5789_s8 + $0xc] sm:$0xf0] }
 0x531   :  { %v3104_v10 = vor.u32 %v3938_v7, %v3103_v6  ;;  %v3041_v6 = vld [vmem:[%s5789_s8 + $0x18] sm:$0xf0] }
 0x532   :  { %v784_v16 = vadd.f32 %v781_v15, %v4478_v18  ;;  %v3129_v18 = vld [vmem:[%s5789_s8 + $0xd0] sm:$0xf0]  ;;  %v3931_v15 = vld [vmem:[%s5789_s8 + $0x64] sm:$0xf] }
 0x533   :  { %v3132_v35 = vor.u32 %v3943_v17, %v3129_v18  ;;  %1078 = vmatpush.bf16.msrb.mxu2 %v3104_v10  ;;  %v3153_v17 = vld [vmem:[%s5789_s8 + $0xf8] sm:$0xf0] }
 0x534   :  { %789 = vadd.xlane.f32.xlu1 %v784_v16  ;;  %v3156_v18 = vor.u32 %v3948_v28, %v3153_v17  ;;  %v3966_v28 = vld [vmem:[%s5791_s10 + $0x78] sm:$0xff]  ;;  %v3957_v17 = vld [vmem:[%s5791_s10 + $0x30] sm:$0xff] }
 0x535   :  { %1062 = vmatpush.bf16.msra.mxu0 %v3132_v35  ;;  %v3068_v35 = vor.u32 %v3927_v30, %v3065_v31  ;;  %v3965_v30 = vld [vmem:[%s5791_s10 + $0x70] sm:$0xff]  ;;  %1376 = vmatpush.bf16.msra.mxu1 %v3957_v17 }
 0x537   :  { %1079 = vmatpush.bf16.msrb.mxu2 %v3088_v29  ;;  %v3974_v29 = vld [vmem:[%s5791_s10 + $0xb8] sm:$0xff] }
 0x539   :  { %1063 = vmatpush.bf16.msra.mxu0 %v3116_v14  ;;  %v3055_v14 = vld [vmem:[%s5789_s8 + $0x28] sm:$0xf]  ;;  %1377 = vmatpush.bf16.msra.mxu1 %v3956_v37 }
 0x53b   :  { %1080 = vmatpush.bf16.msrb.mxu2 %v3072_v2 }
 0x53d   :  { %1064 = vmatpush.bf16.msra.mxu0 %v3100_v40  ;;  %v3121_v40 = vld [vmem:[%s5789_s8 + $0xb8] sm:$0xf0] }
 0x59f   :  { %v788_v48 = vpop.xlane.xlu1 %787 }
 0x5a0   :  { %v798_v49 = vmul.f32 %v4751_v56, %v788_v48 }
 0x5a2   :  { %v4754_v43 = vsub.f32 %v783_v11, %v798_v49  ;;  %v3031_v11 = vld [vmem:[%s5789_s8] sm:$0xf]  ;;  %v3056_v49 = vor.u32 %v3926_v13, %v3055_v14 }
 0x5a3   :  { %v3032_v19 = vor.u32 %v3921_v12, %v3031_v11  ;;  %v3044_v11 = vor.u32 %v3920_v5, %v3041_v6 }
 0x5a4   :  { %v802_v20 = vmul.f32 %v4754_v43, %v4754_v43  ;;  %1081 = vmatpush.bf16.msrb.mxu2 %v3056_v49  ;;  %v3962_v49 = vld [vmem:[%s5791_s10 + $0x58] sm:$0xff] }
 0x5a5   :  { %1054 = vmatpush.bf16.msrb.mxu3 %v3032_v19 }
 0x5a6   :  { %804 = vadd.xlane.f32.xlu2 %v802_v20  ;;  %v3124_v20 = vor.u32 %v3940_v55, %v3121_v40 }
 0x5a7   :  { %v790_v21 = vpop.xlane.xlu1 %789 }
 0x5a8   :  { %v799_v50 = vmul.f32 %v4751_v56, %v790_v21  ;;  %v3919_v21 = vld [vmem:[%s5789_s8 + $0x4] sm:$0xf] }
 0x5a9   :  { %1089 = vmatpush.bf16.msra.mxu3 %v3156_v18 }
 0x5aa   :  { %v4759_v27 = vsub.f32 %v784_v16, %v799_v50  ;;  %v3081_v16 = vld [vmem:[%s5789_s8 + $0x70] sm:$0xf0] }
 0x5ab   :  { %v3084_v24 = vor.u32 %v3931_v15, %v3081_v16  ;;  %v3033_v50 = vld [vmem:[%s5789_s8 + $0x10] sm:$0xf0] }
 0x5ac   :  { %v803_v26 = vmul.f32 %v4759_v27, %v4759_v27  ;;  %v3036_v47 = vor.u32 %v3919_v21, %v3033_v50  ;;  %v3953_v21 = vld [vmem:[%s5791_s10 + $0x10] sm:$0xff] }
 0x5ad   :  { %1065 = vmatpush.bf16.msra.mxu0 %v3084_v24  ;;  %1090 = vmatpush.bf16.msra.mxu3 %v3140_v9  ;;  %v3961_v50 = vld [vmem:[%s5791_s10 + $0x50] sm:$0xff] }
 0x5ae   :  { %806 = vadd.xlane.f32.xlu2 %v803_v26  ;;  %v3039_v26 = vld [vmem:[%s5789_s8 + $0x8] sm:$0xf] }
 0x5af   :  { %v3040_v45 = vor.u32 %v3922_v33, %v3039_v26  ;;  %v3970_v26 = vld [vmem:[%s5791_s10 + $0x98] sm:$0xff]  ;;  %v3969_v33 = vld [vmem:[%s5791_s10 + $0x90] sm:$0xff] }
 0x5b1   :  { %1066 = vmatpush.bf16.msra.mxu0 %v3068_v35  ;;  %1091 = vmatpush.bf16.msra.mxu3 %v3124_v20  ;;  %v3973_v35 = vld [vmem:[%s5791_s10 + $0xb0] sm:$0xff]  ;;  %v3971_v20 = vld [vmem:[%s5791_s10 + $0xa0] sm:$0xff] }
 0x5b2   :  { %1082 = vmatpush.bf16.msrb.mxu2 %v3040_v45  ;;  %v3952_v45 = vld [vmem:[%s5791_s10 + $0x8] sm:$0xff] }
 0x5b5   :  { %1067 = vmatpush.bf16.msra.mxu0 %v3052_v39  ;;  %1092 = vmatpush.bf16.msra.mxu3 %v3108_v51  ;;  %v3955_v39 = vld [vmem:[%s5791_s10 + $0x20] sm:$0xff]  ;;  %v3968_v51 = vld [vmem:[%s5791_s10 + $0x88] sm:$0xff] }
 0x5b6   :  { %1403 = vmatpush.bf16.msra.mxu2 %v3974_v29  ;;  %1378 = vmatpush.bf16.msra.mxu1 %v3955_v39 }
 0x5b9   :  { %1068 = vmatpush.bf16.msra.mxu0 %v3036_v47  ;;  %1093 = vmatpush.bf16.msra.mxu3 %v3092_v22  ;;  %v3960_v47 = vld [vmem:[%s5791_s10 + $0x48] sm:$0xff]  ;;  %v3979_v22 = vld [vmem:[%s5791_s10 + $0xe0] sm:$0xff] }
 0x5ba   :  { %1404 = vmatpush.bf16.msra.mxu2 %v3973_v35 }
 0x5bd   :  { %1094 = vmatpush.bf16.msra.mxu3 %v3076_v59  ;;  %1389 = vmatpush.bf16.msrb.mxu0 %v3966_v28 }
 0x5be   :  { %1405 = vmatpush.bf16.msra.mxu2 %v3972_v3 }
 0x5c1   :  { %1095 = vmatpush.bf16.msra.mxu3 %v3060_v4  ;;  %1390 = vmatpush.bf16.msrb.mxu0 %v3965_v30 }
 0x5c2   :  { %1406 = vmatpush.bf16.msra.mxu2 %v3971_v20 }
 0x5c5   :  { %1096 = vmatpush.bf16.msra.mxu3 %v3044_v11 }
 0x5c6   :  { %1407 = vmatpush.bf16.msra.mxu2 %v3970_v26 }
 0x5ca   :  { %1408 = vmatpush.bf16.msra.mxu2 %v3969_v33 }
 0x5ce   :  { %1409 = vmatpush.bf16.msra.mxu2 %v3968_v51 }
 0x5d2   :  { %1410 = vmatpush.bf16.msra.mxu2 %v3967_v52 }
 0x619   :  { %v805_v48 = vpop.xlane.xlu2 %804 }
 0x61a   :  { %v808_v46 = vmul.f32 %v805_v48, %v4751_v56  ;;  %v3954_v48 = vld [vmem:[%s5791_s10 + $0x18] sm:$0xff] }
 0x61b   :  { %1379 = vmatpush.bf16.msra.mxu1 %v3954_v48 }
 0x61c   :  { %v810_v42 = vadd.f32 1e-05, %v808_v46  ;;  %v3982_v46 = vld [vmem:[%s5791_s10 + $0xf8] sm:$0xff] }
 0x61e   :  { %4113 = vrsqrt.f32 %v810_v42  ;;  %vm818_vm5 = vweird.f32 %v810_v42 }
 0x61f   :  { %1380 = vmatpush.bf16.msra.mxu1 %v3953_v21 }
 0x621   :  { %v807_v53 = vpop.xlane.xlu2 %806 }
 0x622   :  { %v809_v58 = vmul.f32 %v807_v53, %v4751_v56  ;;  %v3978_v53 = vld [vmem:[%s5791_s10 + $0xd8] sm:$0xff] }
 0x623   :  { %1381 = vmatpush.bf16.msra.mxu1 %v3952_v45 }
 0x624   :  { %v4114_v60 = vpop.eup %4113  ;;  %v811_v61 = vadd.f32 1e-05, %v809_v58  ;;  %v877_v58 = vld [vmem:[%s5790_s9] sm:$0xf] }
 0x625   :  { %v813_v0 = vmul.f32 %v4114_v60, %v810_v42  ;;  %vm819_vm4 = vweird.f32 %v4114_v60  ;;  %v3980_v42 = vld [vmem:[%s5791_s10 + $0xe8] sm:$0xff]  ;;  %v879_v4 = vperm.slane %v877_v58, 0  ;;  %v881_v6 = vperm.slane %v877_v58, 2 }
 0x626   :  { %4115 = vrsqrt.f32 %v811_v61  ;;  %vm820_vm6 = vmor %vm818_vm5, %vm819_vm4  ;;  %vm828_vm8 = vweird.f32 %v811_v61 }
 0x627   :  { %v814_v1 = vmul.f32 %v4114_v60, %v813_v0  ;;  %1382 = vmatpush.bf16.msra.mxu1 %v3951_v41 }
 0x629   :  { %v815_v7 = vmul.f32 0.5, %v814_v1 }
 0x62b   :  { %v816_v10 = vsub.f32 1.5, %v815_v7 }
 0x62c   :  { %v4116_v12 = vpop.eup %4115 }
 0x62d   :  { %v817_v15 = vmul.f32 %v4114_v60, %v816_v10  ;;  %v823_v16 = vmul.f32 %v4116_v12, %v811_v61  ;;  %vm829_vm7 = vweird.f32 %v4116_v12  ;;  %v880_v61 = vperm.slane %v877_v58, 1 }
 0x62e   :  { %vm830_vm9 = vmor %vm828_vm8, %vm829_vm7 }
 0x62f   :  { %v824_v19 = vmul.f32 %v4116_v12, %v823_v16  ;;  %v821_v24 = vsel %vm820_vm6, %v4114_v60, %v817_v15  ;;  %v3975_v60 = vld [vmem:[%s5791_s10 + $0xc0] sm:$0xff] }
 0x630   :  { %v832_v31 = vmul.f32 %v821_v24, %v4754_v43  ;;  %v3964_v43 = vld [vmem:[%s5791_s10 + $0x68] sm:$0xff] }
 0x631   :  { %v825_v25 = vmul.f32 0.5, %v824_v19  ;;  %1391 = vmatpush.bf16.msrb.mxu0 %v3964_v43 }
 0x632   :  { %v837_v9 = vmul.f32 %v4091_v34, %v832_v31 }
 0x633   :  { %v826_v18 = vsub.f32 1.5, %v825_v25 }
 0x634   :  { %v4962_v13 = vadd.f32 %v4092_v8, %v837_v9 }
 0x635   :  { %v827_v36 = vmul.f32 %v4116_v12, %v826_v18 }
 0x637   :  { %v831_v38 = vsel %vm830_vm9, %v4116_v12, %v827_v36 }
 0x638   :  { %v833_v2 = vmul.f32 %v831_v38, %v4759_v27  ;;  %v3963_v27 = vld [vmem:[%s5791_s10 + $0x60] sm:$0xff] }
 0x639   :  { %1392 = vmatpush.bf16.msrb.mxu0 %v3963_v27 }
 0x63a   :  { %v838_v14 = vmul.f32 %v4091_v34, %v833_v2  ;;  %v882_v34 = vperm.slane %v877_v58, 3  ;;  %v4004_v58 = vld [vmem:[%s5819_s6 + $0x16c] sm:$0xf] }
 0x63c   :  { %v4964_v55 = vadd.f32 %v4092_v8, %v838_v14  ;;  %v4093_v8 = vld [vmem:[%s5792_s11] ss:$0 sm:$0xff] }
 0x63d   :  { %1393 = vmatpush.bf16.msrb.mxu0 %v3962_v49 }
 0x63e   :  { %v844_v40 = vpack.c.bf16 %v4964_v55, %v4962_v13 }
 0x640   :  { %1055 = vmatmul.bf16.vlgmr.msrb.gmra.mxu3 %v844_v40  ;;  %1069 = vmatmul.bf16.vlgmr.msra.gmra.mxu0 %v844_v40 }
 0x641   :  { %1083 = vmatmul.bf16.vlgmr.msrb.gmra.mxu2 %v844_v40  ;;  %1394 = vmatpush.bf16.msrb.mxu0 %v3961_v50 }
 0x642   :  { %1417 = vmatpush.bf16.msrb.mxu3 %v3982_v46 }
 0x645   :  { %1395 = vmatpush.bf16.msrb.mxu0 %v3960_v47 }
 0x646   :  { %1418 = vmatpush.bf16.msrb.mxu3 %v3981_v44 }
 0x649   :  { %1396 = vmatpush.bf16.msrb.mxu0 %v3959_v32 }
 0x64a   :  { %1419 = vmatpush.bf16.msrb.mxu3 %v3980_v42 }
 0x64e   :  { %1420 = vmatpush.bf16.msrb.mxu3 %v3979_v22 }
 0x650   :  { %1097 = vmatmul.bf16.vlgmr.msra.gmra.mxu3 %v844_v40 }
 0x652   :  { %1421 = vmatpush.bf16.msrb.mxu3 %v3978_v53 }
 0x656   :  { %1422 = vmatpush.bf16.msrb.mxu3 %v3977_v54 }
 0x65a   :  { %1423 = vmatpush.bf16.msrb.mxu3 %v3976_v57  ;;  %v4005_v57 = vld [vmem:[%s5819_s6 + $0x170] sm:$0xf0] }
 0x65e   :  { %1424 = vmatpush.bf16.msrb.mxu3 %v3975_v60  ;;  %v3406_v60 = vld [vmem:[%s5819_s6 + $0x174] sm:$0xf0] }
 0x6bd   :  { %v1070_v59 = vpop.f32.mrf.mxu0 }
 0x6be   :  { %v1071_v63 = vadd.f32 %v1070_v59, %v880_v61 }
 0x6c0   :  { %v1104_v7 = vmax.f32 %v1071_v63, 0.0  ;;  %v3409_v63 = vor.u32 %v4004_v58, %v3406_v60  ;;  %v3984_v60 = vld [vmem:[%s5819_s6 + $0xc8] sm:$0xf0] }
 0x6c2   :  { %1670 = vmatpush.bf16.msra.mxu0 %v3409_v63 }
 0x6c3   :  { %v1056_v62 = vpop.f32.mrf.mxu3 }
 0x6c4   :  { %v1084_v0 = vpop.f32.mrf.mxu2  ;;  %v1057_v11 = vadd.f32 %v1056_v62, %v879_v4  ;;  %v4006_v62 = vld [vmem:[%s5819_s6 + $0x178] sm:$0xf0] }
 0x6c5   :  { %v1072_v1 = vpop.f32.mrf.mxu0  ;;  %v1085_v15 = vadd.f32 %v1084_v0, %v881_v6 }
 0x6c6   :  { %v1073_v5 = vadd.f32 %v1072_v1, %v880_v61  ;;  %v1103_v25 = vmax.f32 %v1057_v11, 0.0  ;;  %v3412_v61 = vld [vmem:[%s5819_s6 + $0x170] sm:$0xf]  ;;  %v4003_v11 = vld [vmem:[%s5819_s6 + $0x160] sm:$0xf0] }
 0x6c7   :  { %v1105_v17 = vmax.f32 %v1085_v15, 0.0  ;;  %v3413_v0 = vor.u32 %v4006_v62, %v3412_v61  ;;  %v3392_v1 = vld [vmem:[%s5819_s6 + $0x150] sm:$0xf]  ;;  %v3983_v61 = vld [vmem:[%s5819_s6 + $0xc4] sm:$0xf] }
 0x6c8   :  { %v1108_v10 = vmax.f32 %v1073_v5, 0.0  ;;  %v4001_v5 = vld [vmem:[%s5819_s6 + $0x154] sm:$0xf] }
 0x6c9   :  { %1684 = vmatpush.bf16.msrb.mxu2 %v3413_v0  ;;  %v3322_v0 = vld [vmem:[%s5819_s6 + $0xcc] sm:$0xf0] }
 0x6ca   :  { %v1112_v12 = vpack.c.bf16 %v1108_v10, %v1104_v7  ;;  %v3394_v7 = vld [vmem:[%s5819_s6 + $0x15c] sm:$0xf0]  ;;  %v3400_v10 = vld [vmem:[%s5819_s6 + $0x158] sm:$0xf] }
 0x6cb   :  { %v1058_v16 = vpop.f32.mrf.mxu3  ;;  %v3401_v15 = vor.u32 %v4003_v11, %v3400_v10  ;;  %v4137_v10 = vld [vmem:[%s5801_s20 + $0x38] sm:$0xff] }
 0x6cc   :  { %v1059_v19 = vadd.f32 %v1058_v16, %v879_v4  ;;  %v1086_v23 = vpop.f32.mrf.mxu2  ;;  %1397 = vmatmul.bf16.vlgmr.msrb.gmra.mxu0 %v1112_v12  ;;  %v4002_v4 = vld [vmem:[%s5819_s6 + $0x158] sm:$0xf0]  ;;  %v3397_v12 = vor.u32 %v4001_v5, %v3394_v7  ;;  %v3380_v16 = vld [vmem:[%s5819_s6 + $0x138] sm:$0xf]  ;;  %v3325_v5 = vor.u32 %v3983_v61, %v3322_v0  ;;  %v5283_v0 = vld [vmem:[%s5800_s19] sm:$0xff] }
 0x6cd   :  { %v1087_v24 = vadd.f32 %v1086_v23, %v881_v6  ;;  %v3393_v6 = vor.u32 %v4002_v4, %v3392_v1  ;;  %1685 = vmatpush.bf16.msrb.mxu2 %v3401_v15  ;;  %v3998_v23 = vld [vmem:[%s5819_s6 + $0x13c] sm:$0xf]  ;;  %v3328_v1 = vld [vmem:[%s5819_s6 + $0xc8] sm:$0xf]  ;;  %v3985_v4 = vld [vmem:[%s5819_s6 + $0xd0] sm:$0xf0] }
 0x6ce   :  { %v1107_v28 = vmax.f32 %v1059_v19, 0.0  ;;  %1671 = vmatpush.bf16.msra.mxu0 %v3397_v12  ;;  %v3999_v19 = vld [vmem:[%s5819_s6 + $0x140] sm:$0xf0]  ;;  %v4152_v61 = vld [vmem:[%s5799_s18 + $0x38] sm:$0xff] }
 0x6cf   :  { %v1109_v29 = vmax.f32 %v1087_v24, 0.0  ;;  %v3381_v24 = vor.u32 %v3999_v19, %v3380_v16  ;;  %v4138_v19 = vld [vmem:[%s5801_s20 + $0x30] sm:$0xff] }
 0x6d0   :  { %v1111_v18 = vpack.c.bf16 %v1107_v28, %v1103_v25  ;;  %v3382_v25 = vld [vmem:[%s5819_s6 + $0x144] sm:$0xf0]  ;;  %v3388_v28 = vld [vmem:[%s5819_s6 + $0x140] sm:$0xf] }
 0x6d1   :  { %v1113_v30 = vpack.c.bf16 %v1109_v29, %v1105_v17  ;;  %v4000_v17 = vld [vmem:[%s5819_s6 + $0x148] sm:$0xf0]  ;;  %v3385_v29 = vor.u32 %v3998_v23, %v3382_v25 }
 0x6d2   :  { %1383 = vmatmul.bf16.vlgmr.msra.gmra.mxu1 %v1111_v18  ;;  %v3389_v18 = vor.u32 %v4000_v17, %v3388_v28  ;;  %v4139_v25 = vld [vmem:[%s5801_s20 + $0x28] sm:$0xff] }
 0x6d3   :  { %1411 = vmatmul.bf16.vlgmr.msra.gmra.mxu2 %v1113_v30  ;;  %v1098_v31 = vpop.f32.mrf.mxu3  ;;  %1672 = vmatpush.bf16.msra.mxu0 %v3385_v29  ;;  %v3368_v30 = vld [vmem:[%s5819_s6 + $0x120] sm:$0xf] }
 0x6d4   :  { %v1099_v35 = vadd.f32 %v1098_v31, %v882_v34  ;;  %1686 = vmatpush.bf16.msrb.mxu2 %v3389_v18  ;;  %v3996_v31 = vld [vmem:[%s5819_s6 + $0x128] sm:$0xf0]  ;;  %v4140_v18 = vld [vmem:[%s5801_s20 + $0x20] sm:$0xff] }
 0x6d6   :  { %v1106_v38 = vmax.f32 %v1099_v35, 0.0  ;;  %v3369_v35 = vor.u32 %v3996_v31, %v3368_v30 }
 0x6db   :  { %v1100_v36 = vpop.f32.mrf.mxu3 }
 0x6dc   :  { %v1101_v37 = vadd.f32 %v1100_v36, %v882_v34  ;;  %v3995_v34 = vld [vmem:[%s5819_s6 + $0x124] sm:$0xf]  ;;  %v3370_v36 = vld [vmem:[%s5819_s6 + $0x12c] sm:$0xf0] }
 0x6de   :  { %v1110_v43 = vmax.f32 %v1101_v37, 0.0  ;;  %v3376_v37 = vld [vmem:[%s5819_s6 + $0x128] sm:$0xf] }
 0x6e0   :  { %v1114_v2 = vpack.c.bf16 %v1110_v43, %v1106_v38  ;;  %v3997_v38 = vld [vmem:[%s5819_s6 + $0x130] sm:$0xf0]  ;;  %v3373_v43 = vor.u32 %v3995_v34, %v3370_v36 }
 0x6e2   :  { %1425 = vmatmul.bf16.vlgmr.msrb.gmra.mxu3 %v1114_v2  ;;  %v3377_v2 = vor.u32 %v3997_v38, %v3376_v37  ;;  %1673 = vmatpush.bf16.msra.mxu0 %v3373_v43 }
 0x6e4   :  { %1687 = vmatpush.bf16.msrb.mxu2 %v3377_v2  ;;  %v4094_v2 = vld [vmem:[%s5795_s14] ss:$0 sm:$0xff] }
 0x749   :  { %v1398_v14 = vpop.f32.mrf.mxu0 }
 0x74f   :  { %v1384_v9 = vpop.f32.mrf.mxu1 }
 0x750   :  { %v1385_v3 = vadd.f32 %v4093_v8, %v1384_v9  ;;  %v3356_v9 = vld [vmem:[%s5819_s6 + $0x108] sm:$0xf] }
 0x751   :  { %v1400_v26 = vpop.f32.mrf.mxu0 }
 0x752   :  { %v1399_v27 = vadd.f32 %v1398_v14, %v1385_v3  ;;  %v3992_v3 = vld [vmem:[%s5819_s6 + $0x10c] sm:$0xf] }
 0x756   :  { %v1412_v39 = vpop.f32.mrf.mxu2 }
 0x757   :  { %v1386_v40 = vpop.f32.mrf.mxu1  ;;  %v1413_v48 = vadd.f32 %v1412_v39, %v1399_v27  ;;  %v3358_v39 = vld [vmem:[%s5819_s6 + $0x114] sm:$0xf0]  ;;  %v3364_v27 = vld [vmem:[%s5819_s6 + $0x110] sm:$0xf] }
 0x758   :  { %v1387_v20 = vadd.f32 %v4093_v8, %v1386_v40  ;;  %v3993_v8 = vld [vmem:[%s5819_s6 + $0x110] sm:$0xf0]  ;;  %v3994_v40 = vld [vmem:[%s5819_s6 + $0x118] sm:$0xf0] }
 0x759   :  { %v3357_v14 = vor.u32 %v3993_v8, %v3356_v9  ;;  %v4142_v9 = vld [vmem:[%s5801_s20 + $0x10] sm:$0xff] }
 0x75a   :  { %v1401_v47 = vadd.f32 %v1400_v26, %v1387_v20  ;;  %v3344_v20 = vld [vmem:[%s5819_s6 + $0xf0] sm:$0xf] }
 0x75e   :  { %v1414_v46 = vpop.f32.mrf.mxu2 }
 0x75f   :  { %v1415_v33 = vadd.f32 %v1414_v46, %v1401_v47  ;;  %v3346_v46 = vld [vmem:[%s5819_s6 + $0xfc] sm:$0xf0]  ;;  %v3352_v47 = vld [vmem:[%s5819_s6 + $0xf8] sm:$0xf] }
 0x765   :  { %v1426_v49 = vpop.f32.mrf.mxu3 }
 0x766   :  { %v1427_v21 = vadd.f32 %v1426_v49, %v1413_v48  ;;  %v3361_v48 = vor.u32 %v3992_v3, %v3358_v39  ;;  %v3365_v49 = vor.u32 %v3994_v40, %v3364_v27  ;;  %v4143_v27 = vld [vmem:[%s5801_s20 + $0x8] sm:$0xff] }
 0x768   :  { %v1431_v50 = vadd.f32 %v1427_v21, %v4962_v13  ;;  %1674 = vmatpush.bf16.msra.mxu0 %v3361_v48  ;;  %1688 = vmatpush.bf16.msrb.mxu2 %v3365_v49  ;;  %v3990_v21 = vld [vmem:[%s5819_s6 + $0xf8] sm:$0xf0] }
 0x769   :  { %v3345_v26 = vor.u32 %v3990_v21, %v3344_v20  ;;  %v4144_v20 = vld [vmem:[%s5801_s20] sm:$0xff] }
 0x76a   :  { %1435 = vadd.xlane.f32.xlu0 %v1431_v50 }
 0x76d   :  { %v1428_v44 = vpop.f32.mrf.mxu3 }
 0x76e   :  { %v1429_v32 = vadd.f32 %v1428_v44, %v1415_v33  ;;  %v3991_v33 = vld [vmem:[%s5819_s6 + $0x100] sm:$0xf0] }
 0x770   :  { %v1432_v45 = vadd.f32 %v1429_v32, %v4964_v55  ;;  %v3404_v55 = vld [vmem:[%s5819_s6 + $0x168] sm:$0xf]  ;;  %v3353_v32 = vor.u32 %v3991_v33, %v3352_v47 }
 0x771   :  { %v3405_v59 = vor.u32 %v4005_v57, %v3404_v55 }
 0x772   :  { %1437 = vadd.xlane.f32.xlu1 %v1432_v45  ;;  %1689 = vmatpush.bf16.msrb.mxu2 %v3353_v32 }
 0x773   :  { %1656 = vmatpush.bf16.msrb.mxu1 %v3405_v59  ;;  %v3320_v59 = vld [vmem:[%s5819_s6 + $0xc0] sm:$0xf] }
 0x774   :  { %v3321_v63 = vor.u32 %v3984_v60, %v3320_v59  ;;  %v4150_v59 = vld [vmem:[%s5799_s18 + $0x28] sm:$0xff]  ;;  %v4151_v60 = vld [vmem:[%s5799_s18 + $0x30] sm:$0xff] }
 0x777   :  { %1657 = vmatpush.bf16.msrb.mxu1 %v3393_v6  ;;  %v3329_v6 = vor.u32 %v3985_v4, %v3328_v1  ;;  %v5291_v4 = vld [vmem:[%s5800_s19 + $0x8] sm:$0xff] }
 0x77b   :  { %1658 = vmatpush.bf16.msrb.mxu1 %v3381_v24 }
 0x77f   :  { %1659 = vmatpush.bf16.msrb.mxu1 %v3369_v35  ;;  %v4141_v35 = vld [vmem:[%s5801_s20 + $0x18] sm:$0xff] }
 0x783   :  { %1660 = vmatpush.bf16.msrb.mxu1 %v3357_v14 }
 0x787   :  { %1661 = vmatpush.bf16.msrb.mxu1 %v3345_v26 }
 0x7dd   :  { %v1436_v51 = vpop.xlane.xlu0 %1435 }
 0x7de   :  { %v1439_v42 = vmul.f32 %v1436_v51, %v4751_v56  ;;  %v3987_v51 = vld [vmem:[%s5819_s6 + $0xe0] sm:$0xf0] }
 0x7e0   :  { %v5040_v41 = vsub.f32 %v1431_v50, %v1439_v42  ;;  %v3989_v50 = vld [vmem:[%s5819_s6 + $0xf4] sm:$0xf]  ;;  %v3986_v42 = vld [vmem:[%s5819_s6 + $0xdc] sm:$0xf] }
 0x7e1   :  { %v3349_v44 = vor.u32 %v3989_v50, %v3346_v46  ;;  %v5236_v50 = vld [vmem:[%s5822_s3 + $0x3] sm:$0x7] }
 0x7e2   :  { %v1443_v52 = vmul.f32 %v5040_v41, %v5040_v41  ;;  %v1523_v26 = vperm.slane %v5236_v50, 1 }
 0x7e3   :  { %1675 = vmatpush.bf16.msra.mxu0 %v3349_v44 }
 0x7e4   :  { %1445 = vadd.xlane.f32.xlu2 %v1443_v52 }
 0x7e5   :  { %v1438_v13 = vpop.xlane.xlu1 %1437 }
 0x7e6   :  { %v1440_v22 = vmul.f32 %v1438_v13, %v4751_v56  ;;  %v3334_v13 = vld [vmem:[%s5819_s6 + $0xe4] sm:$0xf0] }
 0x7e7   :  { %v3337_v57 = vor.u32 %v3986_v42, %v3334_v13  ;;  %v4145_v13 = vld [vmem:[%s5799_s18] sm:$0xff] }
 0x7e8   :  { %v5045_v53 = vsub.f32 %v1432_v45, %v1440_v22  ;;  %v3332_v45 = vld [vmem:[%s5819_s6 + $0xd8] sm:$0xf]  ;;  %v3340_v22 = vld [vmem:[%s5819_s6 + $0xe0] sm:$0xf] }
 0x7e9   :  { %v3333_v52 = vor.u32 %v3987_v51, %v3332_v45  ;;  %1676 = vmatpush.bf16.msra.mxu0 %v3337_v57  ;;  %v1524_v45 = vperm.slane %v5236_v50, 2  ;;  %v4148_v57 = vld [vmem:[%s5799_s18 + $0x18] sm:$0xff] }
 0x7ea   :  { %v1444_v54 = vmul.f32 %v5045_v53, %v5045_v53 }
 0x7eb   :  { %1662 = vmatpush.bf16.msrb.mxu1 %v3333_v52 }
 0x7ec   :  { %1447 = vadd.xlane.f32.xlu0 %v1444_v54  ;;  %v3988_v54 = vld [vmem:[%s5819_s6 + $0xe8] sm:$0xf0] }
 0x7ed   :  { %v3341_v58 = vor.u32 %v3988_v54, %v3340_v22  ;;  %1677 = vmatpush.bf16.msra.mxu0 %v3325_v5  ;;  %v4146_v54 = vld [vmem:[%s5799_s18 + $0x8] sm:$0xff] }
 0x7ef   :  { %1690 = vmatpush.bf16.msrb.mxu2 %v3341_v58  ;;  %1663 = vmatpush.bf16.msrb.mxu1 %v3321_v63  ;;  %v4149_v58 = vld [vmem:[%s5799_s18 + $0x20] sm:$0xff] }
 0x7f3   :  { %1691 = vmatpush.bf16.msrb.mxu2 %v3329_v6 }
 0x7f7   :  { %1876 = vmatpush.bf16.msra.mxu2 %v4137_v10 }
 0x7fb   :  { %1877 = vmatpush.bf16.msra.mxu2 %v4138_v19 }
 0x7ff   :  { %1878 = vmatpush.bf16.msra.mxu2 %v4139_v25  ;;  %v5310_v25 = vld [vmem:[%s5800_s19 + $0x20] sm:$0xff] }
 0x803   :  { %1879 = vmatpush.bf16.msra.mxu2 %v4140_v18 }
 0x807   :  { %1880 = vmatpush.bf16.msra.mxu2 %v4141_v35 }
 0x80b   :  { %1881 = vmatpush.bf16.msra.mxu2 %v4142_v9  ;;  %v5334_v9 = vld [vmem:[%s5800_s19 + $0x40] sm:$0xff] }
 0x80f   :  { %1882 = vmatpush.bf16.msra.mxu2 %v4143_v27 }
 0x813   :  { %1883 = vmatpush.bf16.msra.mxu2 %v4144_v20 }
 0x857   :  { %v1446_v55 = vpop.xlane.xlu2 %1445 }
 0x858   :  { %v1449_v62 = vmul.f32 %v1446_v55, %v4751_v56  ;;  %v4147_v55 = vld [vmem:[%s5799_s18 + $0x10] sm:$0xff] }
 0x85a   :  { %v1451_v7 = vadd.f32 1e-05, %v1449_v62 }
 0x85c   :  { %4117 = vrsqrt.f32 %v1451_v7  ;;  %vm1459_vm11 = vweird.f32 %v1451_v7 }
 0x85f   :  { %v1448_v11 = vpop.xlane.xlu0 %1447 }
 0x860   :  { %v1450_v12 = vmul.f32 %v1448_v11, %v4751_v56  ;;  %v5298_v11 = vld [vmem:[%s5800_s19 + $0x10] sm:$0xff] }
 0x862   :  { %v4118_v15 = vpop.eup %4117  ;;  %v1452_v16 = vadd.f32 1e-05, %v1450_v12 }
 0x863   :  { %v1454_v23 = vmul.f32 %v4118_v15, %v1451_v7  ;;  %vm1460_vm10 = vweird.f32 %v4118_v15 }
 0x864   :  { %4119 = vrsqrt.f32 %v1452_v16  ;;  %vm1461_vm12 = vmor %vm1459_vm11, %vm1460_vm10  ;;  %vm1469_vm14 = vweird.f32 %v1452_v16 }
 0x865   :  { %v1455_v24 = vmul.f32 %v4118_v15, %v1454_v23 }
 0x867   :  { %v1456_v28 = vmul.f32 0.5, %v1455_v24 }
 0x869   :  { %v1457_v17 = vsub.f32 1.5, %v1456_v28 }
 0x86a   :  { %v4120_v29 = vpop.eup %4119 }
 0x86b   :  { %v1458_v30 = vmul.f32 %v4118_v15, %v1457_v17  ;;  %v1464_v31 = vmul.f32 %v4120_v29, %v1452_v16  ;;  %vm1470_vm13 = vweird.f32 %v4120_v29  ;;  %v5316_v17 = vld [vmem:[%s5800_s19 + $0x28] sm:$0xff] }
 0x86c   :  { %vm1471_vm15 = vmor %vm1469_vm14, %vm1470_vm13 }
 0x86d   :  { %v1465_v34 = vmul.f32 %v4120_v29, %v1464_v31  ;;  %v1462_v36 = vsel %vm1461_vm12, %v4118_v15, %v1458_v30  ;;  %v5304_v15 = vld [vmem:[%s5800_s19 + $0x18] sm:$0xff] }
 0x86e   :  { %v1473_v43 = vmul.f32 %v1462_v36, %v5040_v41  ;;  %v4095_v41 = vld [vmem:[%s5796_s15] ss:$0 sm:$0xff]  ;;  %v5328_v36 = vld [vmem:[%s5800_s19 + $0x38] sm:$0xff] }
 0x86f   :  { %v1466_v37 = vmul.f32 0.5, %v1465_v34  ;;  %v5322_v34 = vld [vmem:[%s5800_s19 + $0x30] sm:$0xff] }
 0x870   :  { %v1478_v39 = vmul.f32 %v4094_v2, %v1473_v43 }
 0x871   :  { %v1467_v38 = vsub.f32 1.5, %v1466_v37 }
 0x872   :  { %v5224_v48 = vadd.f32 %v4095_v41, %v1478_v39 }
 0x873   :  { %v1468_v8 = vmul.f32 %v4120_v29, %v1467_v38 }
 0x875   :  { %v1472_v3 = vsel %vm1471_vm15, %v4120_v29, %v1468_v8 }
 0x876   :  { %v1474_v14 = vmul.f32 %v1472_v3, %v5045_v53  ;;  %v5340_v3 = vld [vmem:[%s5800_s19 + $0x48] sm:$0xff] }
 0x878   :  { %v1479_v40 = vmul.f32 %v4094_v2, %v1474_v14 }
 0x87a   :  { %v5226_v49 = vadd.f32 %v4095_v41, %v1479_v40 }
 0x87c   :  { %v1485_v53 = vpack.c.bf16 %v5226_v49, %v5224_v48 }
 0x87e   :  { %1664 = vmatmul.bf16.vlgmr.msrb.gmra.mxu1 %v1485_v53  ;;  %1678 = vmatmul.bf16.vlgmr.msra.gmra.mxu0 %v1485_v53 }
 0x87f   :  { %1692 = vmatmul.bf16.vlgmr.msrb.gmra.mxu2 %v1485_v53 }
 0x8fb   :  { %v1679_v21 = vpop.f32.mrf.mxu0 }
 0x8fc   :  { %v1680_v33 = vadd.f32 %v1679_v21, %v1523_v26 }
 0x902   :  { %v1693_v46 = vpop.f32.mrf.mxu2 }
 0x903   :  { %v1681_v47 = vpop.f32.mrf.mxu0  ;;  %v1694_v42 = vadd.f32 %v1693_v46, %v1524_v45 }
 0x904   :  { %v1682_v44 = vadd.f32 %v1681_v47, %v1523_v26  ;;  %v5346_v26 = vld [vmem:[%s5800_s19 + $0x70] sm:$0xff]  ;;  %v5352_v47 = vld [vmem:[%s5800_s19 + $0x78] sm:$0xff] }
 0x906   :  { %v1698_v32 = vpack.c.bf16 %v1682_v44, %v1680_v33 }
 0x908   :  { %1707 = vmatpush.bf16.msra.mxu3 %v1698_v32  ;;  %v4165_v32 = vld [vmem:[%s5800_s19 + $0x68] sm:$0xff] }
 0x90a   :  { %v1695_v51 = vpop.f32.mrf.mxu2 }
 0x90b   :  { %v1696_v52 = vadd.f32 %v1695_v51, %v1524_v45  ;;  %3414 = vmatmul.msk.bf16.vlgmr.msra.gmra.mxu3 %vm416_vm2, %v4145_v13  ;;  %v4166_v51 = vld [vmem:[%s5800_s19 + $0x60] sm:$0xff] }
 0x90d   :  { %v1699_v22 = vpack.c.bf16 %v1696_v52, %v1694_v42 }
 0x90f   :  { %1756 = vmatpush.bf16.msra.mxu1 %v1699_v22 }
 0x912   :  { %3422 = vmatmul.msk.bf16.vlgmr.msra.gmra.mxu1 %vm416_vm2, %v4145_v13  ;;  %v4167_v13 = vld [vmem:[%s5800_s19 + $0x58] sm:$0xff] }
 0x91b   :  { %3415 = vmatmul.msk.bf16.gmra.mxu3 %vm416_vm2, %v4146_v54 }
 0x922   :  { %3423 = vmatmul.msk.bf16.gmra.mxu1 %vm416_vm2, %v4146_v54  ;;  %v4168_v54 = vld [vmem:[%s5800_s19 + $0x50] sm:$0xff] }
 0x92b   :  { %3416 = vmatmul.msk.bf16.gmra.mxu3 %vm416_vm2, %v4147_v55 }
 0x932   :  { %3424 = vmatmul.msk.bf16.gmra.mxu1 %vm416_vm2, %v4147_v55 }
 0x93b   :  { %3417 = vmatmul.msk.bf16.gmra.mxu3 %vm416_vm2, %v4148_v57 }
 0x942   :  { %3425 = vmatmul.msk.bf16.gmra.mxu1 %vm416_vm2, %v4148_v57 }
 0x94b   :  { %3418 = vmatmul.msk.bf16.gmra.mxu3 %vm416_vm2, %v4149_v58 }
 0x952   :  { %3426 = vmatmul.msk.bf16.gmra.mxu1 %vm416_vm2, %v4149_v58  ;;  %v1665_v58 = vpop.f32.mrf.mxu1 }
 0x95b   :  { %3419 = vmatmul.msk.bf16.gmra.mxu3 %vm416_vm2, %v4150_v59 }
 0x962   :  { %3427 = vmatmul.msk.bf16.gmra.mxu1 %vm416_vm2, %v4150_v59  ;;  %v1667_v59 = vpop.f32.mrf.mxu1 }
 0x96b   :  { %3420 = vmatmul.msk.bf16.gmra.mxu3 %vm416_vm2, %v4151_v60 }
 0x972   :  { %3428 = vmatmul.msk.bf16.gmra.mxu1 %vm416_vm2, %v4151_v60  ;;  %v1522_v60 = vperm.slane %v5236_v50, 0 }
 0x97b   :  { %3421 = vmatmul.msk.bf16.gmra.mxu3 %vm416_vm2, %v4152_v61 }
 0x982   :  { %3429 = vmatmul.msk.bf16.gmra.mxu1 %vm416_vm2, %v4152_v61  ;;  %v1668_v61 = vadd.f32 %v1667_v59, %v1522_v60 }
 0x98e   :  { %v1709_v62 = vpop.f32.mrf.mxu3 }
 0x98f   :  { %v5286_v1 = vmul.f32 %v5283_v0, %v1709_v62  ;;  %v1666_v62 = vadd.f32 %v1665_v58, %v1522_v60 }
 0x996   :  { %v1711_v63 = vpop.f32.mrf.mxu3 }
 0x997   :  { %v1799_v5 = vmul.f32 %v5291_v4, %v1711_v63  ;;  %v1846_v63 = vpack.c.bf16 %v1668_v61, %v1666_v62  ;;  %v4012_v62 = vld [vmem:[%s5823_s5 + $0x68] sm:$0xff] }
 0x999   :  { %v1814_v6 = vpack.c.bf16 %v1799_v5, %v5286_v1  ;;  %v1758_v1 = vpop.f32.mrf.mxu1 }
 0x99e   :  { %v1714_v7 = vpop.f32.mrf.mxu3 }
 0x99f   :  { %v1800_v12 = vmul.f32 %v5298_v11, %v1714_v7 }
 0x9a1   :  { %v1760_v5 = vpop.f32.mrf.mxu1 }
 0x9a6   :  { %v1716_v10 = vpop.f32.mrf.mxu3 }
 0x9a7   :  { %v1801_v16 = vmul.f32 %v5304_v15, %v1716_v10 }
 0x9a9   :  { %v1815_v19 = vpack.c.bf16 %v1801_v16, %v1800_v12  ;;  %v1763_v7 = vpop.f32.mrf.mxu1 }
 0x9aa   :  { %v1824_v10 = vmul.f32 %v5298_v11, %v1763_v7 }
 0x9ae   :  { %v1719_v23 = vpop.f32.mrf.mxu3 }
 0x9af   :  { %v1802_v28 = vmul.f32 %v5310_v25, %v1719_v23 }
 0x9b1   :  { %v1765_v12 = vpop.f32.mrf.mxu1 }
 0x9b2   :  { %v1825_v16 = vmul.f32 %v5304_v15, %v1765_v12  ;;  %v4170_v15 = vld [vmem:[%s5802_s21 + $0x8] sm:$0xff] }
 0x9b4   :  { %v1839_v23 = vpack.c.bf16 %v1825_v16, %v1824_v10 }
 0x9b6   :  { %v1721_v24 = vpop.f32.mrf.mxu3 }
 0x9b7   :  { %v1803_v29 = vmul.f32 %v5316_v17, %v1721_v24 }
 0x9b9   :  { %v1816_v18 = vpack.c.bf16 %v1803_v29, %v1802_v28  ;;  %v1768_v24 = vpop.f32.mrf.mxu1 }
 0x9be   :  { %v1724_v30 = vpop.f32.mrf.mxu3 }
 0x9bf   :  { %v1804_v35 = vmul.f32 %v5322_v34, %v1724_v30  ;;  %v4169_v30 = vld [vmem:[%s5802_s21] sm:$0xff] }
 0x9c1   :  { %v1770_v28 = vpop.f32.mrf.mxu1 }
 0x9c2   :  { %v1827_v50 = vmul.f32 %v5316_v17, %v1770_v28 }
 0x9c6   :  { %v1726_v31 = vpop.f32.mrf.mxu3 }
 0x9c7   :  { %v1805_v37 = vmul.f32 %v5328_v36, %v1726_v31 }
 0x9c9   :  { %v1817_v38 = vpack.c.bf16 %v1805_v37, %v1804_v35  ;;  %v1773_v11 = vpop.f32.mrf.mxu1 }
 0x9ce   :  { %v1729_v43 = vpop.f32.mrf.mxu3 }
 0x9cf   :  { %v1806_v8 = vmul.f32 %v5334_v9, %v1729_v43 }
 0x9d1   :  { %v1775_v17 = vpop.f32.mrf.mxu1 }
 0x9d2   :  { %v1829_v43 = vmul.f32 %v5328_v36, %v1775_v17 }
 0x9d6   :  { %v1731_v2 = vpop.f32.mrf.mxu3 }
 0x9d7   :  { %v1807_v14 = vmul.f32 %v5340_v3, %v1731_v2 }
 0x9d9   :  { %v1818_v39 = vpack.c.bf16 %v1807_v14, %v1806_v8  ;;  %v1778_v8 = vpop.f32.mrf.mxu1 }
 0x9da   :  { %v1830_v36 = vmul.f32 %v5334_v9, %v1778_v8  ;;  %v4039_v8 = vld [vmem:[%s5789_s8 + $0x1c4] sm:$0xf] }
 0x9de   :  { %v1734_v41 = vpop.f32.mrf.mxu3 }
 0x9df   :  { %v1808_v55 = vmul.f32 %v4168_v54, %v1734_v41 }
 0x9e1   :  { %v1780_v14 = vpop.f32.mrf.mxu1 }
 0x9e6   :  { %v1736_v27 = vpop.f32.mrf.mxu3 }
 0x9e7   :  { %v1809_v22 = vmul.f32 %v4167_v13, %v1736_v27 }
 0x9e9   :  { %v1819_v57 = vpack.c.bf16 %v1809_v22, %v1808_v55  ;;  %v1831_v22 = vmul.f32 %v5340_v3, %v1780_v14 }
 0x9ee   :  { %v1739_v40 = vpop.f32.mrf.mxu3 }
 0x9ef   :  { %v1810_v42 = vmul.f32 %v4166_v51, %v1739_v40 }
 0x9f6   :  { %v1741_v20 = vpop.f32.mrf.mxu3 }
 0x9f7   :  { %v1811_v45 = vmul.f32 %v4165_v32, %v1741_v20 }
 0x9f9   :  { %v1820_v52 = vpack.c.bf16 %v1811_v45, %v1810_v42 }
 0x9fe   :  { %v1744_v53 = vpop.f32.mrf.mxu3 }
 0x9ff   :  { %v1812_v46 = vmul.f32 %v5346_v26, %v1744_v53 }
 0xa06   :  { %v1746_v21 = vpop.f32.mrf.mxu3 }
 0xa07   :  { %v1813_v33 = vmul.f32 %v5352_v47, %v1746_v21 }
 0xa09   :  { %v1821_v44 = vpack.c.bf16 %v1813_v33, %v1812_v46 }
 0xa0b   :  { %1847 = vmatpush.bf16.xpose.msrb.mxu0 %v1821_v44 }
 0xa13   :  { %1848 = vmatpush.bf16.xpose.msrb.mxu0 %v1820_v52 }
 0xa1b   :  { %1849 = vmatpush.bf16.xpose.msrb.mxu0 %v1819_v57  ;;  %v1842_v57 = vpack.c.bf16 %v1831_v22, %v1830_v36  ;;  %v4032_v36 = vld [vmem:[%s5789_s8 + $0x18c] sm:$0xf]  ;;  %v3590_v22 = vld [vmem:[%s5789_s8 + $0x198] sm:$0xf0] }
 0xa23   :  { %1850 = vmatpush.bf16.xpose.msrb.mxu0 %v1818_v39  ;;  %v1783_v39 = vpop.f32.mrf.mxu1 }
 0xa24   :  { %v1832_v45 = vmul.f32 %v4168_v54, %v1783_v39  ;;  %v3638_v39 = vld [vmem:[%s5789_s8 + $0x1f8] sm:$0xf0] }
 0xa2b   :  { %1851 = vmatpush.bf16.xpose.msrb.mxu0 %v1817_v38  ;;  %v1828_v38 = vmul.f32 %v5322_v34, %v1773_v11  ;;  %v1785_v41 = vpop.f32.mrf.mxu1  ;;  %v4096_v11 = vld [vmem:[%s5824_s7 + $0x1] ss:$0 sm:$0xff] }
 0xa2c   :  { %v1833_v42 = vmul.f32 %v4167_v13, %v1785_v41 }
 0xa2d   :  { %v1841_v2 = vpack.c.bf16 %v1829_v43, %v1828_v38  ;;  %v4043_v43 = vld [vmem:[%s5789_s8 + $0x1e4] sm:$0xf] }
 0xa2e   :  { %v1843_v55 = vpack.c.bf16 %v1833_v42, %v1832_v45  ;;  %v4031_v45 = vld [vmem:[%s5789_s8 + $0x184] sm:$0xf]  ;;  %v3582_v42 = vld [vmem:[%s5789_s8 + $0x190] sm:$0xf0] }
 0xa33   :  { %1852 = vmatpush.bf16.xpose.msrb.mxu0 %v1816_v18  ;;  %v1788_v27 = vpop.f32.mrf.mxu1 }
 0xa34   :  { %v1834_v46 = vmul.f32 %v4166_v51, %v1788_v27  ;;  %v4040_v27 = vld [vmem:[%s5789_s8 + $0x1cc] sm:$0xf] }
 0xa3b   :  { %1853 = vmatpush.bf16.xpose.msrb.mxu0 %v1815_v19  ;;  %v1826_v19 = vmul.f32 %v5310_v25, %v1768_v24  ;;  %v1790_v40 = vpop.f32.mrf.mxu1 }
 0xa3c   :  { %v1835_v33 = vmul.f32 %v4165_v32, %v1790_v40  ;;  %v1823_v32 = vmul.f32 %v5291_v4, %v1760_v5  ;;  %v4013_v4 = vld [vmem:[%s5823_s5 + $0x70] sm:$0xff]  ;;  %v4010_v5 = vld [vmem:[%s5823_s5 + $0x58] sm:$0xff] }
 0xa3d   :  { %v1840_v29 = vpack.c.bf16 %v1827_v50, %v1826_v19  ;;  %v4009_v50 = vld [vmem:[%s5823_s5 + $0x50] sm:$0xff] }
 0xa3e   :  { %v1844_v52 = vpack.c.bf16 %v1835_v33, %v1834_v46  ;;  %v4036_v33 = vld [vmem:[%s5789_s8 + $0x1ac] sm:$0xf] }
 0xa43   :  { %1854 = vmatpush.bf16.xpose.msrb.mxu0 %v1814_v6  ;;  %v1793_v20 = vpop.f32.mrf.mxu1 }
 0xa44   :  { %v1836_v53 = vmul.f32 %v5346_v26, %v1793_v20  ;;  %v1822_v26 = vmul.f32 %v5283_v0, %v1758_v1  ;;  %v4014_v0 = vld [vmem:[%s5823_s5 + $0x78] sm:$0xff]  ;;  %v4011_v1 = vld [vmem:[%s5823_s5 + $0x60] sm:$0xff] }
 0xa45   :  { %v3622_v20 = vld [vmem:[%s5789_s8 + $0x1d8] sm:$0xf0] }
 0xa46   :  { %v3625_v46 = vor.u32 %v4040_v27, %v3622_v20  ;;  %v4024_v27 = vld [vmem:[%s5789_s8 + $0x14c] sm:$0xf]  ;;  %v3548_v20 = vld [vmem:[%s5789_s8 + $0x140] sm:$0xf] }
 0xa4a   :  { %1855 = vmatmul.bf16.vlgmr.msrb.gmra.mxu0 %v1846_v63 }
 0xa4b   :  { %v1795_v21 = vpop.f32.mrf.mxu1  ;;  %1982 = vmatpush.bf16.msra.mxu0 %v4014_v0  ;;  %v4045_v0 = vld [vmem:[%s5789_s8 + $0x1ec] sm:$0xf0] }
 0xa4c   :  { %v1837_v44 = vmul.f32 %v5352_v47, %v1795_v21  ;;  %v1838_v47 = vpack.c.bf16 %v1823_v32, %v1822_v26  ;;  %v3598_v21 = vld [vmem:[%s5789_s8 + $0x1b0] sm:$0xf0]  ;;  %v3593_v32 = vor.u32 %v4032_v36, %v3590_v22  ;;  %v4021_v22 = vld [vmem:[%s5789_s8 + $0x12c] sm:$0xf0] }
 0xa4d   :  { %v3566_v26 = vld [vmem:[%s5789_s8 + $0x170] sm:$0xf0] }
 0xa4e   :  { %v1845_v34 = vpack.c.bf16 %v1837_v44, %v1836_v53  ;;  %v4035_v53 = vld [vmem:[%s5789_s8 + $0x1a4] sm:$0xf]  ;;  %v3606_v44 = vld [vmem:[%s5789_s8 + $0x1b8] sm:$0xf0] }
 0xa4f   :  { %1983 = vmatpush.bf16.msra.mxu0 %v4013_v4  ;;  %v3636_v4 = vld [vmem:[%s5789_s8 + $0x1e8] sm:$0xf] }
 0xa50   :  { %1897 = vmatpush.bf16.msrb.mxu2 %v1845_v34  ;;  %v3601_v34 = vor.u32 %v4035_v53, %v3598_v21  ;;  %v4025_v21 = vld [vmem:[%s5789_s8 + $0x14c] sm:$0xf0] }
 0xa53   :  { %1984 = vmatpush.bf16.msra.mxu0 %v4012_v62 }
 0xa54   :  { %1898 = vmatpush.bf16.msrb.mxu2 %v1844_v52  ;;  %v3609_v52 = vor.u32 %v4036_v33, %v3606_v44  ;;  %v4026_v33 = vld [vmem:[%s5789_s8 + $0x154] sm:$0xf0]  ;;  %v3549_v44 = vor.u32 %v4025_v21, %v3548_v20 }
 0xa57   :  { %1985 = vmatpush.bf16.msra.mxu0 %v4011_v1 }
 0xa58   :  { %1899 = vmatpush.bf16.msrb.mxu2 %v1843_v55  ;;  %v3585_v55 = vor.u32 %v4031_v45, %v3582_v42  ;;  %v4019_v45 = vld [vmem:[%s5789_s8 + $0x124] sm:$0xf]  ;;  %v3534_v42 = vld [vmem:[%s5789_s8 + $0x130] sm:$0xf0] }
 0xa59   :  { %v3537_v36 = vor.u32 %v4019_v45, %v3534_v42  ;;  %v4098_v42 = vld [vmem:[%s5794_s13 + $0x1] ss:$0 sm:$0xff] }
 0xa5b   :  { %1986 = vmatpush.bf16.msra.mxu0 %v4010_v5  ;;  %v3612_v5 = vld [vmem:[%s5789_s8 + $0x1c0] sm:$0xf] }
 0xa5c   :  { %1900 = vmatpush.bf16.msrb.mxu2 %v1842_v57  ;;  %v4027_v57 = vld [vmem:[%s5789_s8 + $0x164] sm:$0xf] }
 0xa5f   :  { %1987 = vmatpush.bf16.msra.mxu0 %v4009_v50 }
 0xa60   :  { %1901 = vmatpush.bf16.msrb.mxu2 %v1841_v2  ;;  %v3630_v2 = vld [vmem:[%s5789_s8 + $0x1f0] sm:$0xf0] }
 0xa61   :  { %v3633_v14 = vor.u32 %v4043_v43, %v3630_v2  ;;  %v3550_v43 = vld [vmem:[%s5789_s8 + $0x150] sm:$0xf0] }
 0xa63   :  { %2271 = vmatpush.bf16.msrb.mxu3 %v3633_v14 }
 0xa64   :  { %1902 = vmatpush.bf16.msrb.mxu2 %v1840_v29  ;;  %v4007_v29 = vld [vmem:[%s5823_s5 + $0x40] sm:$0xff] }
 0xa68   :  { %1903 = vmatpush.bf16.msrb.mxu2 %v1839_v23 }
 0xa6c   :  { %1904 = vmatpush.bf16.msrb.mxu2 %v1838_v47  ;;  %v3569_v47 = vor.u32 %v4027_v57, %v3566_v26  ;;  %v4022_v57 = vld [vmem:[%s5789_s8 + $0x134] sm:$0xf0] }
 0xac7   :  { %v1856_v6 = vpop.f32.mrf.mxu0 }
 0xac8   :  { %v1861_v18 = vmul.f32 0.25, %v1856_v6  ;;  %v4008_v6 = vld [vmem:[%s5823_s5 + $0x48] sm:$0xff]  ;;  %s4198_s5 = smov [#allocation2]  }
 0xac9   :  { %1988 = vmatpush.bf16.msra.mxu0 %v4008_v6  ;;  %v4038_v6 = vld [vmem:[%s5789_s8 + $0x1b4] sm:$0xf0] }
 0xaca   :  { %v1863_v31 = vadd.f32 %v4169_v30, %v1861_v18 }
 0xacc   :  { %1865 = vmax.xlane.f32.xlu1 %v1863_v31 }
 0xacd   :  { %1989 = vmatpush.bf16.msra.mxu0 %v4007_v29 }
 0xacf   :  { %v1858_v35 = vpop.f32.mrf.mxu0 }
 0xad0   :  { %v1862_v37 = vmul.f32 0.25, %v1858_v35 }
 0xad2   :  { %v1864_v25 = vadd.f32 %v4170_v15, %v1862_v37 }
 0xad4   :  { %1867 = vmax.xlane.f32.xlu2 %v1864_v25 }
 0xb3f   :  { %v1866_v51 = vpop.xlane.xlu1 %1865 }
 0xb40   :  { %v1869_v13 = vsub.f32 %v1863_v31, %v1866_v51 }
 0xb42   :  { %v1871_v54 = vmul.f32 1.442695, %v1869_v13 }
 0xb44   :  { %4121 = vpow2.f32 %v1871_v54 }
 0xb47   :  { %v1868_v9 = vpop.xlane.xlu2 %1867 }
 0xb48   :  { %v1870_v58 = vsub.f32 %v1864_v25, %v1868_v9 }
 0xb4a   :  { %v1873_v3 = vmul.f32 1.442695, %v1870_v58  ;;  %v4122_v59 = vpop.eup %4121 }
 0xb4c   :  { %4123 = vpow2.f32 %v1873_v3 }
 0xb52   :  { %v4124_v60 = vpop.eup %4123 }
 0xb53   :  { %v1875_v61 = vpack.c.bf16 %v4124_v60, %v4122_v59 }
 0xb55   :  { %1884 = vmatmul.bf16.vlgmr.msra.gmra.mxu2 %v1875_v61  ;;  %v3628_v61 = vld [vmem:[%s5789_s8 + $0x1e0] sm:$0xf] }
 0xb56   :  { %v3629_v62 = vor.u32 %v4045_v0, %v3628_v61  ;;  %v4015_v61 = vld [vmem:[%s5789_s8 + $0x104] sm:$0xf]  ;;  %v3518_v0 = vld [vmem:[%s5789_s8 + $0x110] sm:$0xf0] }
 0xb58   :  { %2257 = vmatpush.bf16.msra.mxu2 %v3629_v62  ;;  %v3521_v62 = vor.u32 %v4015_v61, %v3518_v0  ;;  %v4063_v61 = vld [vmem:[%s5791_s10 + $0x180] sm:$0xff] }
 0xb59   :  { %v4071_v0 = vld [vmem:[%s5791_s10 + $0x1c0] sm:$0xff] }
 0xbd8   :  { %v1885_v63 = vpop.f32.mrf.mxu2 }
 0xbd9   :  { %v1890_v7 = vmax.f32 %v1885_v63, 1e-20  ;;  %v4046_v63 = vld [vmem:[%s5789_s8 + $0x1f4] sm:$0xf0] }
 0xbda   :  { %v3637_v1 = vor.u32 %v4046_v63, %v3636_v4  ;;  %v3524_v63 = vld [vmem:[%s5789_s8 + $0x108] sm:$0xf] }
 0xbdb   :  { %4125 = vrcp.f32 %v1890_v7  ;;  %v4041_v7 = vld [vmem:[%s5789_s8 + $0x1cc] sm:$0xf0] }
 0xbdc   :  { %2285 = vmatpush.bf16.msrb.mxu0 %v3637_v1  ;;  %v4018_v1 = vld [vmem:[%s5789_s8 + $0x114] sm:$0xf0] }
 0xbe0   :  { %v1887_v10 = vpop.f32.mrf.mxu2 }
 0xbe1   :  { %v1891_v12 = vmax.f32 %v1887_v10, 1e-20  ;;  %v4126_v16 = vpop.eup %4125  ;;  %v3620_v10 = vld [vmem:[%s5789_s8 + $0x1c8] sm:$0xf] }
 0xbe2   :  { %v1894_v24 = vmul.f32 %v4126_v16, %v4122_v59  ;;  %v4042_v16 = vld [vmem:[%s5789_s8 + $0x1d4] sm:$0xf0] }
 0xbe3   :  { %4127 = vrcp.f32 %v1891_v12  ;;  %v3613_v12 = vor.u32 %v4041_v7, %v3612_v5  ;;  %v4016_v5 = vld [vmem:[%s5789_s8 + $0x10c] sm:$0xf] }
 0xbe5   :  { %2258 = vmatpush.bf16.msra.mxu2 %v3613_v12  ;;  %v3526_v12 = vld [vmem:[%s5789_s8 + $0x118] sm:$0xf0] }
 0xbe9   :  { %v4128_v23 = vpop.eup %4127 }
 0xbea   :  { %v1895_v19 = vmul.f32 %v4128_v23, %v4124_v60  ;;  %v3621_v23 = vor.u32 %v4042_v16, %v3620_v10  ;;  %v3525_v10 = vor.u32 %v4018_v1, %v3524_v63  ;;  %v3529_v16 = vor.u32 %v4016_v5, %v3526_v12  ;;  %v4047_v63 = vld [vmem:[%s5791_s10 + $0x100] sm:$0xff] }
 0xbeb   :  { %v4055_v1 = vld [vmem:[%s5791_s10 + $0x140] sm:$0xff] }
 0xbec   :  { %v1896_v28 = vpack.c.bf16 %v1895_v19, %v1894_v24  ;;  %2286 = vmatpush.bf16.msrb.mxu0 %v3621_v23  ;;  %v3596_v24 = vld [vmem:[%s5789_s8 + $0x1a0] sm:$0xf]  ;;  %v4037_v19 = vld [vmem:[%s5789_s8 + $0x1ac] sm:$0xf0]  ;;  %v3513_v5 = vld [vmem:[%s5790_s9 + $0x4] sm:$0xf] }
 0xbed   :  { %v3597_v50 = vor.u32 %v4037_v19, %v3596_v24  ;;  %v4070_v24 = vld [vmem:[%s5791_s10 + $0x1b8] sm:$0xff]  ;;  %v2091_v12 = vperm.slane %v3513_v5, 2  ;;  %s2805_s9 = sshll.u32 %s4198_s5, 4  ;;  %s2806_s9 = int_to_ptr.vmem [resolvable:$true] %s2805_s9 }
 0xbee   :  { %1905 = vmatmul.bf16.vlgmr.msrb.gmra.mxu2 %v1896_v28  ;;  %v3604_v28 = vld [vmem:[%s5789_s8 + $0x1a8] sm:$0xf]  ;;  %v4078_v19 = vld [vmem:[%s5791_s10 + $0x1f8] sm:$0xff] }
 0xbef   :  { %v3605_v29 = vor.u32 %v4038_v6, %v3604_v28  ;;  %2259 = vmatpush.bf16.msra.mxu2 %v3597_v50  ;;  %v4054_v50 = vld [vmem:[%s5791_s10 + $0x138] sm:$0xff] }
 0xbf0   :  { %v4062_v6 = vld [vmem:[%s5791_s10 + $0x178] sm:$0xff] }
 0xbf1   :  { %2287 = vmatpush.bf16.msrb.mxu0 %v3605_v29  ;;  %v4069_v29 = vld [vmem:[%s5791_s10 + $0x1b0] sm:$0xff] }
 0xc71   :  { %v1906_v18 = vpop.f32.mrf.mxu2 }
 0xc79   :  { %v1908_v30 = vpop.f32.mrf.mxu2 }
 0xc7a   :  { %v1911_v31 = vpack.c.bf16 %v1908_v30, %v1906_v18  ;;  %v3580_v18 = vld [vmem:[%s5789_s8 + $0x180] sm:$0xf]  ;;  %v4033_v30 = vld [vmem:[%s5789_s8 + $0x18c] sm:$0xf0] }
 0xc7c   :  { %1990 = vmatmul.bf16.vlgmr.msra.gmra.mxu0 %v1911_v31  ;;  %v3588_v31 = vld [vmem:[%s5789_s8 + $0x188] sm:$0xf] }
 0xcf9   :  { %v1991_v35 = vpop.f32.mrf.mxu0 }
 0xcfa   :  { %v1992_v37 = vadd.f32 %v4096_v11, %v1991_v35  ;;  %v4034_v35 = vld [vmem:[%s5789_s8 + $0x194] sm:$0xf0] }
 0xcfc   :  { %v1996_v15 = vadd.f32 %v1992_v37, %v5224_v48  ;;  %v3614_v48 = vld [vmem:[%s5789_s8 + $0x1d0] sm:$0xf0]  ;;  %v3589_v37 = vor.u32 %v4034_v35, %v3588_v31 }
 0xcfd   :  { %v3617_v40 = vor.u32 %v4039_v8, %v3614_v48  ;;  %v4029_v8 = vld [vmem:[%s5789_s8 + $0x16c] sm:$0xf0] }
 0xcfe   :  { %2002 = vadd.xlane.f32.xlu0 %v1996_v15  ;;  %2288 = vmatpush.bf16.msrb.mxu0 %v3589_v37  ;;  %v4061_v35 = vld [vmem:[%s5791_s10 + $0x170] sm:$0xff] }
 0xcff   :  { %2272 = vmatpush.bf16.msrb.mxu3 %v3617_v40  ;;  %v3558_v40 = vld [vmem:[%s5789_s8 + $0x158] sm:$0xf0] }
 0xd00   :  { %v3561_v53 = vor.u32 %v4024_v27, %v3558_v40 }
 0xd01   :  { %v1993_v25 = vpop.f32.mrf.mxu0 }
 0xd02   :  { %v1994_v38 = vadd.f32 %v4096_v11, %v1993_v25  ;;  %v3581_v11 = vor.u32 %v4033_v30, %v3580_v18  ;;  %v3574_v25 = vld [vmem:[%s5789_s8 + $0x178] sm:$0xf0]  ;;  %v4077_v18 = vld [vmem:[%s5791_s10 + $0x1f0] sm:$0xff] }
 0xd03   :  { %2273 = vmatpush.bf16.msrb.mxu3 %v3601_v34 }
 0xd04   :  { %v1997_v17 = vadd.f32 %v1994_v38, %v5226_v49  ;;  %v4044_v49 = vld [vmem:[%s5789_s8 + $0x1ec] sm:$0xf]  ;;  %2260 = vmatpush.bf16.msra.mxu2 %v3581_v11  ;;  %v3564_v38 = vld [vmem:[%s5789_s8 + $0x160] sm:$0xf]  ;;  %v4053_v11 = vld [vmem:[%s5791_s10 + $0x130] sm:$0xff] }
 0xd05   :  { %v3641_v41 = vor.u32 %v4044_v49, %v3638_v39  ;;  %v3565_v48 = vor.u32 %v4029_v8, %v3564_v38  ;;  %v3572_v49 = vld [vmem:[%s5789_s8 + $0x168] sm:$0xf]  ;;  %v4030_v39 = vld [vmem:[%s5789_s8 + $0x174] sm:$0xf0] }
 0xd06   :  { %2004 = vadd.xlane.f32.xlu1 %v1997_v17  ;;  %v4076_v38 = vld [vmem:[%s5791_s10 + $0x1e8] sm:$0xff] }
 0xd07   :  { %2299 = vmatpush.bf16.msrb.mxu1 %v3641_v41  ;;  %2274 = vmatpush.bf16.msrb.mxu3 %v3585_v55  ;;  %v3573_v41 = vor.u32 %v4030_v39, %v3572_v49  ;;  %v3540_v55 = vld [vmem:[%s5789_s8 + $0x128] sm:$0xf] }
 0xd08   :  { %2261 = vmatpush.bf16.msra.mxu2 %v3565_v48  ;;  %v4075_v48 = vld [vmem:[%s5791_s10 + $0x1e0] sm:$0xff] }
 0xd09   :  { %2289 = vmatpush.bf16.msrb.mxu0 %v3573_v41 }
 0xd0b   :  { %2300 = vmatpush.bf16.msrb.mxu1 %v3625_v46  ;;  %2275 = vmatpush.bf16.msrb.mxu3 %v3569_v47  ;;  %v3556_v46 = vld [vmem:[%s5789_s8 + $0x148] sm:$0xf]  ;;  %v3541_v47 = vor.u32 %v4022_v57, %v3540_v55  ;;  %v4074_v55 = vld [vmem:[%s5791_s10 + $0x1d8] sm:$0xff]  ;;  %v4051_v57 = vld [vmem:[%s5791_s10 + $0x120] sm:$0xff] }
 0xd0c   :  { %v3557_v34 = vor.u32 %v4026_v33, %v3556_v46  ;;  %2262 = vmatpush.bf16.msra.mxu2 %v3549_v44  ;;  %v4097_v46 = vld [vmem:[%s5793_s12 + $0x1] ss:$0 sm:$0xff] }
 0xd0e   :  { %2290 = vmatpush.bf16.msrb.mxu0 %v3557_v34 }
 0xd0f   :  { %2301 = vmatpush.bf16.msrb.mxu1 %v3609_v52  ;;  %v3532_v52 = vld [vmem:[%s5789_s8 + $0x120] sm:$0xf] }
 0xd12   :  { %2291 = vmatpush.bf16.msrb.mxu0 %v3541_v47  ;;  %v4073_v47 = vld [vmem:[%s5791_s10 + $0x1d0] sm:$0xff] }
 0xd13   :  { %2302 = vmatpush.bf16.msrb.mxu1 %v3593_v32  ;;  %v3533_v32 = vor.u32 %v4021_v22, %v3532_v52 }
 0xd15   :  { %2263 = vmatpush.bf16.msra.mxu2 %v3533_v32  ;;  %v4065_v32 = vld [vmem:[%s5791_s10 + $0x190] sm:$0xff] }
 0xd16   :  { %2292 = vmatpush.bf16.msrb.mxu0 %v3525_v10 }
 0xd1a   :  { %2615 = vmatpush.bf16.msra.mxu0 %v4070_v24 }
 0xd1e   :  { %2616 = vmatpush.bf16.msra.mxu0 %v4069_v29 }
 0xd71   :  { %v2003_v51 = vpop.xlane.xlu0 %2002 }
 0xd72   :  { %v2006_v13 = vmul.f32 %v2003_v51, %v4751_v56  ;;  %v4020_v51 = vld [vmem:[%s5789_s8 + $0x12c] sm:$0xf] }
 0xd74   :  { %v5470_v54 = vsub.f32 %v1996_v15, %v2006_v13  ;;  %v4028_v15 = vld [vmem:[%s5789_s8 + $0x16c] sm:$0xf]  ;;  %v3542_v13 = vld [vmem:[%s5789_s8 + $0x138] sm:$0xf0] }
 0xd75   :  { %v3577_v2 = vor.u32 %v4028_v15, %v3574_v25  ;;  %v4068_v25 = vld [vmem:[%s5791_s10 + $0x1a8] sm:$0xff] }
 0xd76   :  { %v2010_v9 = vmul.f32 %v5470_v54, %v5470_v54  ;;  %2617 = vmatpush.bf16.msra.mxu0 %v4068_v25 }
 0xd77   :  { %2303 = vmatpush.bf16.msrb.mxu1 %v3577_v2 }
 0xd78   :  { %2012 = vadd.xlane.f32.xlu2 %v2010_v9  ;;  %v3516_v9 = vld [vmem:[%s5789_s8 + $0x100] sm:$0xf] }
 0xd79   :  { %v2005_v58 = vpop.xlane.xlu1 %2004 }
 0xd7a   :  { %v2007_v3 = vmul.f32 %v2005_v58, %v4751_v56 }
 0xd7b   :  { %2304 = vmatpush.bf16.msrb.mxu1 %v3561_v53 }
 0xd7c   :  { %v5475_v59 = vsub.f32 %v1997_v17, %v2007_v3  ;;  %v4023_v17 = vld [vmem:[%s5789_s8 + $0x144] sm:$0xf]  ;;  %v3545_v3 = vor.u32 %v4020_v51, %v3542_v13  ;;  %v4050_v51 = vld [vmem:[%s5791_s10 + $0x118] sm:$0xff] }
 0xd7d   :  { %v3553_v14 = vor.u32 %v4023_v17, %v3550_v43  ;;  %v4052_v17 = vld [vmem:[%s5791_s10 + $0x128] sm:$0xff]  ;;  %v4058_v13 = vld [vmem:[%s5791_s10 + $0x158] sm:$0xff] }
 0xd7e   :  { %v2011_v60 = vmul.f32 %v5475_v59, %v5475_v59  ;;  %v4060_v43 = vld [vmem:[%s5791_s10 + $0x168] sm:$0xff] }
 0xd7f   :  { %2276 = vmatpush.bf16.msrb.mxu3 %v3553_v14  ;;  %2305 = vmatpush.bf16.msrb.mxu1 %v3545_v3  ;;  %v4067_v14 = vld [vmem:[%s5791_s10 + $0x1a0] sm:$0xff]  ;;  %v4049_v3 = vld [vmem:[%s5791_s10 + $0x110] sm:$0xff] }
 0xd80   :  { %2014 = vadd.xlane.f32.xlu0 %v2011_v60  ;;  %v4017_v60 = vld [vmem:[%s5789_s8 + $0x10c] sm:$0xf0]  ;;  %2618 = vmatpush.bf16.msra.mxu0 %v4067_v14 }
 0xd81   :  { %v3517_v4 = vor.u32 %v4017_v60, %v3516_v9  ;;  %v4064_v9 = vld [vmem:[%s5791_s10 + $0x188] sm:$0xff]  ;;  %v4057_v60 = vld [vmem:[%s5791_s10 + $0x150] sm:$0xff] }
 0xd83   :  { %2277 = vmatpush.bf16.msrb.mxu3 %v3537_v36  ;;  %2264 = vmatpush.bf16.msra.mxu2 %v3517_v4  ;;  %v4048_v4 = vld [vmem:[%s5791_s10 + $0x108] sm:$0xff] }
 0xd84   :  { %2306 = vmatpush.bf16.msrb.mxu1 %v3529_v16  ;;  %v2092_v16 = vperm.slane %v3513_v5, 3 }
 0xd87   :  { %2278 = vmatpush.bf16.msrb.mxu3 %v3521_v62  ;;  %2587 = vmatpush.bf16.msrb.mxu2 %v4054_v50  ;;  %v4056_v62 = vld [vmem:[%s5791_s10 + $0x148] sm:$0xff]  ;;  %v2089_v50 = vperm.slane %v3513_v5, 0 }
 0xd88   :  { %2629 = vmatpush.bf16.msra.mxu1 %v4078_v19 }
 0xd8b   :  { %2601 = vmatpush.bf16.msra.mxu3 %v4062_v6  ;;  %2588 = vmatpush.bf16.msrb.mxu2 %v4053_v11  ;;  %v2090_v6 = vperm.slane %v3513_v5, 1 }
 0xd8c   :  { %2630 = vmatpush.bf16.msra.mxu1 %v4077_v18 }
 0xd8f   :  { %2602 = vmatpush.bf16.msra.mxu3 %v4061_v35  ;;  %2589 = vmatpush.bf16.msrb.mxu2 %v4052_v17 }
 0xd90   :  { %2631 = vmatpush.bf16.msra.mxu1 %v4076_v38 }
 0xd93   :  { %2603 = vmatpush.bf16.msra.mxu3 %v4060_v43  ;;  %2590 = vmatpush.bf16.msrb.mxu2 %v4051_v57 }
 0xd94   :  { %2632 = vmatpush.bf16.msra.mxu1 %v4075_v48 }
 0xd97   :  { %2591 = vmatpush.bf16.msrb.mxu2 %v4050_v51 }
 0xd98   :  { %2633 = vmatpush.bf16.msra.mxu1 %v4074_v55 }
 0xd9b   :  { %2592 = vmatpush.bf16.msrb.mxu2 %v4049_v3 }
 0xd9c   :  { %2634 = vmatpush.bf16.msra.mxu1 %v4073_v47 }
 0xd9f   :  { %2593 = vmatpush.bf16.msrb.mxu2 %v4048_v4 }
 0xda3   :  { %2594 = vmatpush.bf16.msrb.mxu2 %v4047_v63 }
 0xdeb   :  { %v2013_v26 = vpop.xlane.xlu2 %2012 }
 0xdec   :  { %v2016_v58 = vmul.f32 %v2013_v26, %v4751_v56  ;;  %v4059_v26 = vld [vmem:[%s5791_s10 + $0x160] sm:$0xff] }
 0xded   :  { %2604 = vmatpush.bf16.msra.mxu3 %v4059_v26 }
 0xdee   :  { %v2018_v7 = vadd.f32 1e-05, %v2016_v58  ;;  %v4072_v58 = vld [vmem:[%s5791_s10 + $0x1c8] sm:$0xff] }
 0xdef   :  { %2635 = vmatpush.bf16.msra.mxu1 %v4072_v58 }
 0xdf0   :  { %4129 = vrsqrt.f32 %v2018_v7  ;;  %vm2026_vm1 = vweird.f32 %v2018_v7 }
 0xdf1   :  { %2605 = vmatpush.bf16.msra.mxu3 %v4058_v13 }
 0xdf3   :  { %v2015_v23 = vpop.xlane.xlu0 %2014  ;;  %2636 = vmatpush.bf16.msra.mxu1 %v4071_v0 }
 0xdf4   :  { %v2017_v28 = vmul.f32 %v2015_v23, %v4751_v56 }
 0xdf5   :  { %2606 = vmatpush.bf16.msra.mxu3 %v4057_v60 }
 0xdf6   :  { %v4130_v30 = vpop.eup %4129  ;;  %v2019_v31 = vadd.f32 1e-05, %v2017_v28 }
 0xdf7   :  { %v2021_v37 = vmul.f32 %v4130_v30, %v2018_v7  ;;  %vm2027_vm0 = vweird.f32 %v4130_v30 }
 0xdf8   :  { %4131 = vrsqrt.f32 %v2019_v31  ;;  %vm2028_vm3 = vmor %vm2026_vm1, %vm2027_vm0  ;;  %vm2036_vm5 = vweird.f32 %v2019_v31 }
 0xdf9   :  { %v2022_v15 = vmul.f32 %v4130_v30, %v2021_v37  ;;  %2607 = vmatpush.bf16.msra.mxu3 %v4056_v62 }
 0xdfb   :  { %v2023_v2 = vmul.f32 0.5, %v2022_v15 }
 0xdfd   :  { %v2024_v8 = vsub.f32 1.5, %v2023_v2  ;;  %2608 = vmatpush.bf16.msra.mxu3 %v4055_v1 }
 0xdfe   :  { %v4132_v49 = vpop.eup %4131 }
 0xdff   :  { %v2025_v39 = vmul.f32 %v4130_v30, %v2024_v8  ;;  %v2031_v41 = vmul.f32 %v4132_v49, %v2019_v31  ;;  %vm2037_vm4 = vweird.f32 %v4132_v49 }
 0xe00   :  { %vm2038_vm6 = vmor %vm2036_vm5, %vm2037_vm4 }
 0xe01   :  { %v2032_v27 = vmul.f32 %v4132_v49, %v2031_v41  ;;  %v2029_v40 = vsel %vm2028_vm3, %v4130_v30, %v2025_v39 }
 0xe02   :  { %v2040_v21 = vmul.f32 %v2029_v40, %v5470_v54 }
 0xe03   :  { %v2033_v20 = vmul.f32 0.5, %v2032_v27 }
 0xe04   :  { %v2045_v45 = vmul.f32 %v4097_v46, %v2040_v21 }
 0xe05   :  { %v2034_v53 = vsub.f32 1.5, %v2033_v20 }
 0xe06   :  { %v5669_v36 = vadd.f32 %v4098_v42, %v2045_v45 }
 0xe07   :  { %v2035_v33 = vmul.f32 %v4132_v49, %v2034_v53  ;;  %v4099_v53 = vld [vmem:[%s5792_s11 + $0x1] ss:$0 sm:$0xff] }
 0xe09   :  { %v2039_v44 = vsel %vm2038_vm6, %v4132_v49, %v2035_v33 }
 0xe0a   :  { %v2041_v34 = vmul.f32 %v2039_v44, %v5475_v59  ;;  %v4066_v59 = vld [vmem:[%s5791_s10 + $0x198] sm:$0xff] }
 0xe0b   :  { %2619 = vmatpush.bf16.msra.mxu0 %v4066_v59 }
 0xe0c   :  { %v2046_v52 = vmul.f32 %v4097_v46, %v2041_v34 }
 0xe0e   :  { %v5671_v22 = vadd.f32 %v4098_v42, %v2046_v52 }
 0xe0f   :  { %2620 = vmatpush.bf16.msra.mxu0 %v4065_v32 }
 0xe10   :  { %v2052_v54 = vpack.c.bf16 %v5671_v22, %v5669_v36 }
 0xe12   :  { %2265 = vmatmul.bf16.vlgmr.msra.gmra.mxu2 %v2052_v54  ;;  %2279 = vmatmul.bf16.vlgmr.msrb.gmra.mxu3 %v2052_v54 }
 0xe13   :  { %2293 = vmatmul.bf16.vlgmr.msrb.gmra.mxu0 %v2052_v54  ;;  %2307 = vmatmul.bf16.vlgmr.msrb.gmra.mxu1 %v2052_v54 }
 0xe14   :  { %2621 = vmatpush.bf16.msra.mxu0 %v4064_v9 }
 0xe18   :  { %2622 = vmatpush.bf16.msra.mxu0 %v4063_v61 }
 0xe90   :  { %v2294_v7 = vpop.f32.mrf.mxu0  ;;  %v2308_v10 = vpop.f32.mrf.mxu1 }
 0xe91   :  { %v2295_v19 = vadd.f32 %v2294_v7, %v2091_v12  ;;  %v2309_v28 = vadd.f32 %v2308_v10, %v2092_v16  ;;  %v4086_v10 = vld [vmem:[%s5797_s16 + $0x38] sm:$0xff] }
 0xe92   :  { %2786 = vmatpush.bf16.msra.mxu2 %v4086_v10 }
 0xe93   :  { %v2315_v11 = vmax.f32 %v2295_v19, 0.0  ;;  %v2316_v35 = vmax.f32 %v2309_v28, 0.0 }
 0xe95   :  { %v2266_v23 = vpop.f32.mrf.mxu2  ;;  %v2280_v24 = vpop.f32.mrf.mxu3 }
 0xe96   :  { %v2267_v25 = vadd.f32 %v2266_v23, %v2089_v50  ;;  %v2281_v38 = vadd.f32 %v2280_v24, %v2090_v6  ;;  %v4085_v24 = vld [vmem:[%s5797_s16 + $0x30] sm:$0xff] }
 0xe97   :  { %2787 = vmatpush.bf16.msra.mxu2 %v4085_v24 }
 0xe98   :  { %v2296_v29 = vpop.f32.mrf.mxu0  ;;  %v2310_v18 = vpop.f32.mrf.mxu1  ;;  %v2313_v49 = vmax.f32 %v2267_v25, 0.0  ;;  %v2314_v39 = vmax.f32 %v2281_v38, 0.0  ;;  %v4100_v38 = vld [vmem:[%s5795_s14 + $0x1] ss:$0 sm:$0xff] }
 0xe99   :  { %v2297_v30 = vadd.f32 %v2296_v29, %v2091_v12  ;;  %v2311_v31 = vadd.f32 %v2310_v18, %v2092_v16 }
 0xe9b   :  { %v2319_v37 = vmax.f32 %v2297_v30, 0.0  ;;  %v2320_v15 = vmax.f32 %v2311_v31, 0.0  ;;  %v4083_v30 = vld [vmem:[%s5797_s16 + $0x20] sm:$0xff] }
 0xe9d   :  { %v2323_v17 = vpack.c.bf16 %v2319_v37, %v2315_v11  ;;  %v2324_v43 = vpack.c.bf16 %v2320_v15, %v2316_v35  ;;  %v2268_v2 = vpop.f32.mrf.mxu2  ;;  %v2282_v8 = vpop.f32.mrf.mxu3  ;;  %v4082_v37 = vld [vmem:[%s5797_s16 + $0x18] sm:$0xff] }
 0xe9e   :  { %v2269_v14 = vadd.f32 %v2268_v2, %v2089_v50  ;;  %v2283_v48 = vadd.f32 %v2282_v8, %v2090_v6 }
 0xe9f   :  { %2623 = vmatmul.bf16.vlgmr.msra.gmra.mxu0 %v2323_v17  ;;  %2637 = vmatmul.bf16.vlgmr.msra.gmra.mxu1 %v2324_v43  ;;  %v4081_v43 = vld [vmem:[%s5797_s16 + $0x10] sm:$0xff] }
 0xea0   :  { %v2317_v41 = vmax.f32 %v2269_v14, 0.0  ;;  %v2318_v27 = vmax.f32 %v2283_v48, 0.0  ;;  %v4101_v48 = vld [vmem:[%s5796_s15 + $0x1] ss:$0 sm:$0xff] }
 0xea2   :  { %v2321_v40 = vpack.c.bf16 %v2317_v41, %v2313_v49  ;;  %v2322_v20 = vpack.c.bf16 %v2318_v27, %v2314_v39  ;;  %v4080_v49 = vld [vmem:[%s5797_s16 + $0x8] sm:$0xff] }
 0xea4   :  { %2595 = vmatmul.bf16.vlgmr.msrb.gmra.mxu2 %v2321_v40  ;;  %2609 = vmatmul.bf16.vlgmr.msra.gmra.mxu3 %v2322_v20  ;;  %v2699_v20 = vld [vmem:[%s5803_s22] sm:$0x1]  ;;  %s2807_s22 = sshll.u32 %s5804_s23, 4  ;;  %s2808_s22 = int_to_ptr.hbm [resolvable:$true] %s2807_s22 }
 0xf1c   :  { %v2624_v44 = vpop.f32.mrf.mxu0  ;;  %v2638_v45 = vpop.f32.mrf.mxu1 }
 0xf24   :  { %v2626_v32 = vpop.f32.mrf.mxu0  ;;  %v2640_v51 = vpop.f32.mrf.mxu1 }
 0xf27   :  { %v2596_v21 = vpop.f32.mrf.mxu2  ;;  %v2610_v46 = vpop.f32.mrf.mxu3 }
 0xf28   :  { %v2597_v33 = vadd.f32 %v4099_v53, %v2596_v21 }
 0xf2a   :  { %v2611_v34 = vadd.f32 %v2610_v46, %v2597_v33 }
 0xf2c   :  { %v2625_v42 = vadd.f32 %v2624_v44, %v2611_v34  ;;  %v4102_v44 = vld [vmem:[%s5798_s17] ss:$0 sm:$0xff] }
 0xf2e   :  { %v2639_v52 = vadd.f32 %v2638_v45, %v2625_v42 }
 0xf2f   :  { %v2598_v54 = vpop.f32.mrf.mxu2  ;;  %v2612_v57 = vpop.f32.mrf.mxu3 }
 0xf30   :  { %v2599_v59 = vadd.f32 %v4099_v53, %v2598_v54  ;;  %v2643_v55 = vadd.f32 %v2639_v52, %v5669_v36  ;;  %v4079_v53 = vld [vmem:[%s5797_s16] sm:$0xff] }
 0xf32   :  { %v2613_v26 = vadd.f32 %v2612_v57, %v2599_v59  ;;  %2649 = vadd.xlane.f32.xlu1 %v2643_v55 }
 0xf34   :  { %v2627_v47 = vadd.f32 %v2626_v32, %v2613_v26 }
 0xf36   :  { %v2641_v13 = vadd.f32 %v2640_v51, %v2627_v47 }
 0xf38   :  { %v2644_v9 = vadd.f32 %v2641_v13, %v5671_v22 }
 0xf3a   :  { %2651 = vadd.xlane.f32.xlu2 %v2644_v9 }
 0xfa5   :  { %v2650_v58 = vpop.xlane.xlu1 %2649 }
 0xfa6   :  { %v2653_v3 = vmul.f32 %v2650_v58, %v4751_v56 }
 0xfa8   :  { %v2655_v60 = vsub.f32 %v2643_v55, %v2653_v3 }
 0xfaa   :  { %v2657_v61 = vmul.f32 %v2655_v60, %v2655_v60 }
 0xfac   :  { %2659 = vadd.xlane.f32.xlu0 %v2657_v61 }
 0xfad   :  { %v2652_v0 = vpop.xlane.xlu2 %2651 }
 0xfae   :  { %v2654_v4 = vmul.f32 %v2652_v0, %v4751_v56 }
 0xfb0   :  { %v2656_v36 = vsub.f32 %v2644_v9, %v2654_v4 }
 0xfb2   :  { %v2658_v62 = vmul.f32 %v2656_v36, %v2656_v36 }
 0xfb4   :  { %2661 = vadd.xlane.f32.xlu1 %v2658_v62 }
0x101f   :  { %v2660_v63 = vpop.xlane.xlu0 %2659 }
0x1020   :  { %v2663_v1 = vmul.f32 %v2660_v63, %v4751_v56 }
0x1022   :  { %v2665_v5 = vadd.f32 1e-05, %v2663_v1 }
0x1024   :  { %4133 = vrsqrt.f32 %v2665_v5  ;;  %vm2673_vm8 = vweird.f32 %v2665_v5 }
0x1027   :  { %v2662_v7 = vpop.xlane.xlu1 %2661 }
0x1028   :  { %v2664_v22 = vmul.f32 %v2662_v7, %v4751_v56  ;;  %v4084_v56 = vld [vmem:[%s5797_s16 + $0x28] sm:$0xff] }
0x1029   :  { %2788 = vmatpush.bf16.msra.mxu2 %v4084_v56 }
0x102a   :  { %v4134_v12 = vpop.eup %4133  ;;  %v2666_v16 = vadd.f32 1e-05, %v2664_v22 }
0x102b   :  { %v2668_v23 = vmul.f32 %v4134_v12, %v2665_v5  ;;  %vm2674_vm7 = vweird.f32 %v4134_v12 }
0x102c   :  { %4135 = vrsqrt.f32 %v2666_v16  ;;  %vm2675_vm9 = vmor %vm2673_vm8, %vm2674_vm7  ;;  %vm2683_vm11 = vweird.f32 %v2666_v16 }
0x102d   :  { %v2669_v19 = vmul.f32 %v4134_v12, %v2668_v23  ;;  %2789 = vmatpush.bf16.msra.mxu2 %v4083_v30 }
0x102f   :  { %v2670_v28 = vmul.f32 0.5, %v2669_v19 }
0x1031   :  { %v2671_v50 = vsub.f32 1.5, %v2670_v28  ;;  %2790 = vmatpush.bf16.msra.mxu2 %v4082_v37 }
0x1032   :  { %v4136_v6 = vpop.eup %4135 }
0x1033   :  { %v2672_v29 = vmul.f32 %v4134_v12, %v2671_v50  ;;  %v2678_v18 = vmul.f32 %v4136_v6, %v2666_v16  ;;  %vm2684_vm10 = vweird.f32 %v4136_v6 }
0x1034   :  { %vm2685_vm12 = vmor %vm2683_vm11, %vm2684_vm10 }
0x1035   :  { %v2679_v31 = vmul.f32 %v4136_v6, %v2678_v18  ;;  %v2676_v11 = vsel %vm2675_vm9, %v4134_v12, %v2672_v29  ;;  %2791 = vmatpush.bf16.msra.mxu2 %v4081_v43 }
0x1036   :  { %v2687_v25 = vmul.f32 %v2676_v11, %v2655_v60 }
0x1037   :  { %v2680_v35 = vmul.f32 0.5, %v2679_v31 }
0x1038   :  { %v2692_v14 = vmul.f32 %v4100_v38, %v2687_v25 }
0x1039   :  { %v2681_v15 = vsub.f32 1.5, %v2680_v35  ;;  %2792 = vmatpush.bf16.msra.mxu2 %v4080_v49 }
0x103a   :  { %v2697_v41 = vadd.f32 %v4101_v48, %v2692_v14 }
0x103b   :  { %v2682_v17 = vmul.f32 %v4136_v6, %v2681_v15 }
0x103d   :  { %v2686_v2 = vsel %vm2685_vm12, %v4136_v6, %v2682_v17  ;;  %2793 = vmatpush.bf16.msra.mxu2 %v4079_v53 }
0x103e   :  { %v2688_v8 = vmul.f32 %v2686_v2, %v2656_v36 }
0x1040   :  { %v2693_v39 = vmul.f32 %v4100_v38, %v2688_v8 }
0x1042   :  { %v2698_v27 = vadd.f32 %v4101_v48, %v2693_v39 }
0x1044   :  { %v2700_v40 = vpack.c.bf16 %v2698_v27, %v2697_v41 }
0x1046   :  { %2711 = vmatpush.bf16.msrb.mxu3 %v2700_v40 }
0x1049   :  { %3837 = vmatmul.msk.bf16.vlgmr.msrb.gmra.mxu3 %vm416_vm2, %v2699_v20 }
0x10cc   :  { %v2713_v21 = vpop.f32.mrf.mxu3 }
0x10cd   :  { %v2717_v46 = vpack.c.bf16 %v2713_v21, %v2713_v21 }
0x10cf   :  { %2794 = vmatmul.bf16.vlgmr.msra.gmra.mxu2 %v2717_v46 }
0x10d4   :  { %v2715_v33 = vpop.f32.mrf.mxu3 }
0x1152   :  { %v2795_v34 = vpop.f32.mrf.mxu2 }
0x1153   :  { %v2796_v45 = vadd.f32 %v4102_v44, %v2795_v34 }
0x1155   :  { %2799 = vst [vmem:[#allocation2] sm:$0x3] %v2796_v45 }
0x1156   :  { %2810 = dma.vmem_to_hbm [thread:$0]  %s2806_s9, 32, %s2808_s22, [#allocation3]  }
0x115a   :  { %v2797_v42 = vpop.f32.mrf.mxu2 }
0x115b   :  { %4195 = dma.done.wait [#allocation3], 32  }
0x115c   :  { %4196 = vsyncadd [#allocation3], 4294967264 }
0x115d   :  { %2815 = vsyncpa [#allocation3], 1 }

</bundles_post_ra>
